<compile_context>
chip_gen: v7x
topology: tpu7x:2x2x1
jax: 0.10.0
libtpu: 0.0.40
codegen_flags: <defaults>
</compile_context>

<pallas_src>
import functools

import jax
import jax.numpy as jnp
from jax.experimental import pallas as pl
from jax.experimental.pallas import tpu as pltpu

TM = 512  # lattice points per grid step (multiple of 128 -> lane aligned)


def _make_decoder_kernel(zdim: int, players: int):
    def kernel(lat_ref, freqs_ref, w0_ref, b0_ref, wh_ref, bh_ref,
               wo_ref, bo_ref, out_ref):
        lat = lat_ref[...]                                   # (3+zdim, TM) f32
        # hemisphere sign: -1 where z > 0 (flip xyz), reused for imag fix
        sgn = jnp.where(lat[2:3, :] > 0.0, -1.0, 1.0).astype(jnp.float32)
        xyz = lat[0:3, :] * sgn                              # (3, TM)

        fcol = freqs_ref[...]                                # (D2, 1) f32
        # k rows grouped as [x*f | y*f | z*f] -> one wide sin + one wide cos
        k = jnp.concatenate([fcol * xyz[0:1, :],
                             fcol * xyz[1:2, :],
                             fcol * xyz[2:3, :]], axis=0)    # (3*D2, TM)
        s = jnp.sin(k)
        c = jnp.cos(k)
        if zdim > 0:
            x = jnp.concatenate([s, c, lat[3:, :]], axis=0)  # (in_dim, TM)
        else:
            x = jnp.concatenate([s, c], axis=0)

        # ResidLinearMLP (transposed): Linear(in_dim, pdim) + ReLU
        h = jnp.dot(w0_ref[...], x.astype(jnp.bfloat16),
                    preferred_element_type=jnp.float32)
        h = jnp.maximum(h + b0_ref[...], 0.0)                # (pdim, TM) f32
        # players x (ResidLinear(pdim, pdim) + ReLU)
        for l in range(players):
            r = jnp.dot(wh_ref[l], h.astype(jnp.bfloat16),
                        preferred_element_type=jnp.float32)
            h = jnp.maximum(r + bh_ref[l] + h, 0.0)
        # Linear(pdim, 2)
        out = jnp.dot(wo_ref[...], h.astype(jnp.bfloat16),
                      preferred_element_type=jnp.float32)
        out = out + bo_ref[...]                              # (2, TM)

        # result[..., 1][w] *= -1, then Hermitian combine, fused:
        #   row 0 = real - imag_fixed   (image[..., 0:cc])
        #   row 1 = real + imag_fixed   (reversed in the wrapper for the rest)
        real = out[0:1, :]
        imag = out[1:2, :] * sgn
        out_ref[...] = jnp.concatenate([real - imag, real + imag], axis=0)

    return kernel


def decoder_pallas(lat_t, freqs_col, w0t, b0t, wht, bht, wot, bot, *,
                   zdim, players):
    F, Mp = lat_t.shape
    pdim, in_dim = w0t.shape
    D2 = freqs_col.shape[0]
    assert Mp % TM == 0
    kernel = _make_decoder_kernel(zdim, players)
    return pl.pallas_call(
        kernel,
        out_shape=jax.ShapeDtypeStruct((2, Mp), jnp.float32),
        grid_spec=pltpu.PrefetchScalarGridSpec(
            num_scalar_prefetch=0,
            grid=(Mp // TM,),
            in_specs=[
                pl.BlockSpec((F, TM), lambda i: (0, i)),           # lattice^T (streamed)
                pl.BlockSpec((D2, 1), lambda i: (0, 0)),           # freqs column
                pl.BlockSpec((pdim, in_dim), lambda i: (0, 0)),    # W0^T (bf16, permuted)
                pl.BlockSpec((pdim, 1), lambda i: (0, 0)),         # b0
                pl.BlockSpec((players, pdim, pdim), lambda i: (0, 0, 0)),  # Wh^T (bf16)
                pl.BlockSpec((players, pdim, 1), lambda i: (0, 0, 0)),     # bh
                pl.BlockSpec((2, pdim), lambda i: (0, 0)),         # Wo^T (bf16)
                pl.BlockSpec((2, 1), lambda i: (0, 0)),            # bo
            ],
            out_specs=pl.BlockSpec((2, TM), lambda i: (0, i)),     # lane-dense output
        ),
        compiler_params=pltpu.CompilerParams(
            dimension_semantics=("parallel",),
            vmem_limit_bytes=56 * 1024 * 1024),
    )(lat_t, freqs_col, w0t, b0t, wht, bht, wot, bot)


def het_only_vae_forward(coords, z, params, *, zdim, players):
    """coords: (B, N, 3); z: (B, zdim) -> image (B, N).

    `params` are in the original (PyTorch nn.Linear) layout; they are repacked
    here (row permutation + transpose + bf16 cast) for the transposed kernel.
    """
    freqs, w0, b0, wh, bh, wo, bo = params
    B, N, _ = coords.shape
    D2 = freqs.shape[-1]
    pdim = w0.shape[1]

    # cat_z
    zb = jnp.broadcast_to(z[:, None, :], (B, N, zdim))
    lattice = jnp.concatenate([coords, zb], axis=-1)         # (B, N, 3+zdim)
    c = N // 2
    cc = c + 1 if N % 2 == 1 else c
    top = lattice[:, 0:cc, :].reshape(B * cc, 3 + zdim)      # (M, F)

    M = B * cc
    Mp = ((M + TM - 1) // TM) * TM
    if Mp != M:
        top = jnp.pad(top, ((0, Mp - M), (0, 0)))            # zero cols are sliced off
    lat_t = top.T                                            # (F, Mp) lane-dense points

    # Repack weights: permute W0 rows from PyTorch PE order [s0 c0 s1 c1 s2 c2 z]
    # to the fused-kernel order [s0 s1 s2 c0 c1 c2 z]; transpose; bf16 matmul weights.
    t = jnp.arange(D2)
    sin_rows = (jnp.arange(3)[:, None] * (2 * D2) + t[None, :]).reshape(-1)
    cos_rows = sin_rows + D2
    perm = jnp.concatenate([sin_rows, cos_rows, 6 * D2 + jnp.arange(zdim)])
    w0t = w0[perm].T.astype(jnp.bfloat16)                    # (pdim, in_dim)
    b0t = b0.reshape(pdim, 1).astype(jnp.float32)
    wht = jnp.swapaxes(wh, 1, 2).astype(jnp.bfloat16)        # (players, pdim, pdim)
    bht = bh.reshape(players, pdim, 1).astype(jnp.float32)
    wot = wo.T.astype(jnp.bfloat16)                          # (2, pdim)
    bot = bo.reshape(2, 1).astype(jnp.float32)
    freqs_col = freqs.reshape(D2, 1).astype(jnp.float32)

    out_t = decoder_pallas(lat_t, freqs_col, w0t, b0t, wht, bht, wot, bot,
                           zdim=zdim, players=players)[:, :M]     # (2, M)
    minus = out_t[0].reshape(B, cc)                          # real - imag -> image[..., 0:cc]
    plus = out_t[1].reshape(B, cc)                           # real + imag
    second = plus[..., jnp.arange(c - 1, -1, -1)]            # image[..., cc:]
    return jnp.concatenate([minus, second], axis=-1)         # (B, N)


def reference_forward(coords, z, params, *, zdim, players):
    """Pure-JAX f32 mirror of the PyTorch forward (ground truth)."""
    freqs, w0, b0, wh, bh, wo, bo = params
    B, N, _ = coords.shape
    zb = jnp.broadcast_to(z[:, None, :], (B, N, zdim))
    lat = jnp.concatenate([coords, zb], axis=-1)
    c = N // 2
    cc = c + 1 if N % 2 == 1 else c
    latt = lat[:, 0:cc, :]
    flip = latt[..., 2] > 0.0
    xyz = jnp.where(flip[..., None], -latt[..., 0:3], latt[..., 0:3])
    k = xyz[..., :, None] * freqs.reshape(-1)                # (B, cc, 3, D2)
    pe = jnp.concatenate([jnp.sin(k), jnp.cos(k)], axis=-1).reshape(B, cc, -1)
    x = jnp.concatenate([pe, latt[..., 3:]], axis=-1)
    h = jax.nn.relu(x @ w0 + b0[0])
    for l in range(players):
        h = jax.nn.relu(h @ wh[l] + bh[l, 0] + h)
    out = h @ wo + bo[0]
    sign = jnp.where(flip, -1.0, 1.0)
    real = out[..., 0]
    imag = out[..., 1] * sign
    first = real - imag
    second = (real + imag)[..., jnp.arange(c - 1, -1, -1)]
    return jnp.concatenate([first, second], axis=-1)


def _linear_init(key, nin, nout):
    k1, k2 = jax.random.split(key)
    bound = 1.0 / float(nin) ** 0.5
    w = jax.random.uniform(k1, (nin, nout), jnp.float32, -bound, bound)
    b = jax.random.uniform(k2, (1, nout), jnp.float32, -bound, bound)
    return w, b


if __name__ == "__main__":
    # Small config consistent with HetOnlyVAE(..., players, pdim, zdim, ...),
    # enc_type='linear_lowf', domain='fourier'.
    D = 16                # lattice.D
    D2 = D // 2           # enc_dim (linear_lowf)
    zdim = 1
    players = 2           # decoder hidden layers
    pdim = 128            # decoder hidden dim (lane-aligned)
    in_dim_dec = 3 * D2 * 2 + zdim   # 49
    B, N = 8, D * D       # 8 images x 256 lattice points -> M = 1024 = 2*TM

    key = jax.random.PRNGKey(0)
    kc, kz, k0, kh, ko = jax.random.split(key, 5)

    # Coordinates: in [-0.5, 0.5], antisymmetric so mean(coords) == 0 (central slice).
    half = jax.random.uniform(kc, (B, N // 2, 3), jnp.float32, -0.5, 0.5)
    coords = jnp.concatenate([half, -half[:, ::-1, :]], axis=1)   # (B, N, 3)
    z = jax.random.uniform(kz, (B, zdim), jnp.float32, -1.0, 1.0)

    # Deterministic decoder params (Linear, players x ResidLinear, Linear(.,2))
    # in the original PyTorch layout.
    freqs = jnp.arange(1, D2 + 1, dtype=jnp.float32).reshape(1, D2)
    w0, b0 = _linear_init(k0, in_dim_dec, pdim)
    wh_list, bh_list = [], []
    for kl in jax.random.split(kh, players):
        w, b = _linear_init(kl, pdim, pdim)
        wh_list.append(w[None])
        bh_list.append(b[None])                                   # (1, 1, pdim)
    wh = jnp.concatenate(wh_list, axis=0)                         # (players, pdim, pdim)
    bh = jnp.concatenate(bh_list, axis=0)                         # (players, 1, pdim)
    wo, bo = _linear_init(ko, pdim, 2)
    params = (freqs, w0, b0, wh, bh, wo, bo)

    fwd = functools.partial(het_only_vae_forward, zdim=zdim, players=players)
    image = jax.block_until_ready(fwd(coords, z, params))
    ref = jax.block_until_ready(
        reference_forward(coords, z, params, zdim=zdim, players=players))

    assert image.shape == (B, N) and image.dtype == jnp.float32
    # Kernel uses bf16 weights/activations (f32 accumulation), so the tolerance
    # vs. the f32 reference is loosened accordingly.
    err = float(jnp.max(jnp.abs(image - ref)))
    assert err < 5e-2, f"max abs err {err}"
    print("KERNEL_OK")
</pallas_src>

<mosaic_0001>
module attributes {stable_mosaic.version = 11 : i64} {
  func.func @kernel(%arg0: i32, %arg1: memref<4x512xf32, #tpu.memory_space<vmem>>, %arg2: memref<8x1xf32, #tpu.memory_space<vmem>>, %arg3: memref<128x49xbf16, #tpu.memory_space<vmem>>, %arg4: memref<128x1xf32, #tpu.memory_space<vmem>>, %arg5: memref<2x128x128xbf16, #tpu.memory_space<vmem>>, %arg6: memref<2x128x1xf32, #tpu.memory_space<vmem>>, %arg7: memref<2x128xbf16, #tpu.memory_space<vmem>>, %arg8: memref<2x1xf32, #tpu.memory_space<vmem>>, %arg9: memref<2x512xf32, #tpu.memory_space<vmem>>) attributes {dimension_semantics = [#tpu.dimension_semantics<parallel>], iteration_bounds = array<i64: 2>, scalar_prefetch = 0 : i64, scratch_operands = 0 : i64, tpu.core_type = #tpu.core_type<tc>, window_params = [{transform_indices = @transform_0, window_bounds = array<i64: 4, 512>}, {pipeline_mode = #tpu.pipeline_mode<synchronous>, transform_indices = @transform_1, window_bounds = array<i64: 8, 1>}, {pipeline_mode = #tpu.pipeline_mode<synchronous>, transform_indices = @transform_2, window_bounds = array<i64: 128, 49>}, {pipeline_mode = #tpu.pipeline_mode<synchronous>, transform_indices = @transform_3, window_bounds = array<i64: 128, 1>}, {pipeline_mode = #tpu.pipeline_mode<synchronous>, transform_indices = @transform_4, window_bounds = array<i64: 2, 128, 128>}, {pipeline_mode = #tpu.pipeline_mode<synchronous>, transform_indices = @transform_5, window_bounds = array<i64: 2, 128, 1>}, {pipeline_mode = #tpu.pipeline_mode<synchronous>, transform_indices = @transform_6, window_bounds = array<i64: 2, 128>}, {pipeline_mode = #tpu.pipeline_mode<synchronous>, transform_indices = @transform_7, window_bounds = array<i64: 2, 1>}, {transform_indices = @transform_8, window_bounds = array<i64: 2, 512>}]} {
    %c0 = arith.constant 0 : index
    %c0_0 = arith.constant 0 : index
    %0 = vector.load %arg1[%c0, %c0_0] : memref<4x512xf32, #tpu.memory_space<vmem>>, vector<4x512xf32>
    %1 = vector.extract_strided_slice %0 {offsets = [2, 0], sizes = [1, 512], strides = [1, 1]} : vector<4x512xf32> to vector<1x512xf32>
    %cst = arith.constant 0.000000e+00 : f32
    %2 = vector.broadcast %cst : f32 to vector<1x512xf32>
    %3 = arith.cmpf ogt, %1, %2 : vector<1x512xf32>
    %cst_1 = arith.constant -1.000000e+00 : f32
    %cst_2 = arith.constant 1.000000e+00 : f32
    %4 = vector.broadcast %cst_1 : f32 to vector<1x512xf32>
    %5 = vector.broadcast %cst_2 : f32 to vector<1x512xf32>
    %6 = arith.select %3, %4, %5 : vector<1x512xi1>, vector<1x512xf32>
    %7 = vector.extract_strided_slice %0 {offsets = [0, 0], sizes = [3, 512], strides = [1, 1]} : vector<4x512xf32> to vector<3x512xf32>
    %8 = vector.broadcast %6 : vector<1x512xf32> to vector<3x512xf32>
    %9 = arith.mulf %7, %8 : vector<3x512xf32>
    %c0_3 = arith.constant 0 : index
    %c0_4 = arith.constant 0 : index
    %10 = vector.load %arg2[%c0_3, %c0_4] : memref<8x1xf32, #tpu.memory_space<vmem>>, vector<8x1xf32>
    %11 = vector.extract_strided_slice %9 {offsets = [0, 0], sizes = [1, 512], strides = [1, 1]} : vector<3x512xf32> to vector<1x512xf32>
    %12 = vector.broadcast %10 : vector<8x1xf32> to vector<8x512xf32>
    %13 = vector.broadcast %11 : vector<1x512xf32> to vector<8x512xf32>
    %14 = arith.mulf %12, %13 : vector<8x512xf32>
    %15 = vector.extract_strided_slice %9 {offsets = [1, 0], sizes = [1, 512], strides = [1, 1]} : vector<3x512xf32> to vector<1x512xf32>
    %16 = vector.broadcast %10 : vector<8x1xf32> to vector<8x512xf32>
    %17 = vector.broadcast %15 : vector<1x512xf32> to vector<8x512xf32>
    %18 = arith.mulf %16, %17 : vector<8x512xf32>
    %19 = vector.extract_strided_slice %9 {offsets = [2, 0], sizes = [1, 512], strides = [1, 1]} : vector<3x512xf32> to vector<1x512xf32>
    %20 = vector.broadcast %10 : vector<8x1xf32> to vector<8x512xf32>
    %21 = vector.broadcast %19 : vector<1x512xf32> to vector<8x512xf32>
    %22 = arith.mulf %20, %21 : vector<8x512xf32>
    %23 = tpu.concatenate %14, %18, %22 in 0 : vector<8x512xf32>, vector<8x512xf32>, vector<8x512xf32> -> vector<24x512xf32>
    %24 = math.sin %23 : vector<24x512xf32>
    %25 = math.cos %23 : vector<24x512xf32>
    %26 = vector.extract_strided_slice %0 {offsets = [3, 0], sizes = [1, 512], strides = [1, 1]} : vector<4x512xf32> to vector<1x512xf32>
    %27 = tpu.concatenate %24, %25, %26 in 0 : vector<24x512xf32>, vector<24x512xf32>, vector<1x512xf32> -> vector<49x512xf32>
    %c0_5 = arith.constant 0 : index
    %c0_6 = arith.constant 0 : index
    %28 = vector.load %arg3[%c0_5, %c0_6] : memref<128x49xbf16, #tpu.memory_space<vmem>>, vector<128x49xbf16>
    %29 = arith.truncf %27 : vector<49x512xf32> to vector<49x512xbf16>
    %cst_7 = arith.constant dense<0.000000e+00> : vector<128x512xf32>
    %30 = tpu.matmul %28, %29, %cst_7 {dimension_numbers = #tpu.dot_dimension_numbers<[1], [0], [0], [1], [0, 0, 1, 1], [], []>} : vector<128x49xbf16>, vector<49x512xbf16>, vector<128x512xf32> -> vector<128x512xf32>
    %c0_8 = arith.constant 0 : index
    %c0_9 = arith.constant 0 : index
    %31 = vector.load %arg4[%c0_8, %c0_9] : memref<128x1xf32, #tpu.memory_space<vmem>>, vector<128x1xf32>
    %32 = vector.broadcast %31 : vector<128x1xf32> to vector<128x512xf32>
    %33 = arith.addf %30, %32 : vector<128x512xf32>
    %cst_10 = arith.constant 0.000000e+00 : f32
    %34 = vector.broadcast %cst_10 : f32 to vector<128x512xf32>
    %35 = arith.maximumf %33, %34 : vector<128x512xf32>
    %c0_11 = arith.constant 0 : index
    %c0_12 = arith.constant 0 : index
    %c0_13 = arith.constant 0 : index
    %36 = vector.load %arg5[%c0_11, %c0_12, %c0_13] : memref<2x128x128xbf16, #tpu.memory_space<vmem>>, vector<1x128x128xbf16>
    %37 = vector.shape_cast %36 : vector<1x128x128xbf16> to vector<128x128xbf16>
    %38 = arith.truncf %35 : vector<128x512xf32> to vector<128x512xbf16>
    %cst_14 = arith.constant dense<0.000000e+00> : vector<128x512xf32>
    %39 = tpu.matmul %37, %38, %cst_14 {dimension_numbers = #tpu.dot_dimension_numbers<[1], [0], [0], [1], [0, 0, 1, 1], [], []>} : vector<128x128xbf16>, vector<128x512xbf16>, vector<128x512xf32> -> vector<128x512xf32>
    %c0_15 = arith.constant 0 : index
    %c0_16 = arith.constant 0 : index
    %c0_17 = arith.constant 0 : index
    %40 = vector.load %arg6[%c0_15, %c0_16, %c0_17] : memref<2x128x1xf32, #tpu.memory_space<vmem>>, vector<1x128x1xf32>
    %41 = vector.shape_cast %40 : vector<1x128x1xf32> to vector<128x1xf32>
    %42 = vector.broadcast %41 : vector<128x1xf32> to vector<128x512xf32>
    %43 = arith.addf %39, %42 : vector<128x512xf32>
    %44 = arith.addf %43, %35 : vector<128x512xf32>
    %cst_18 = arith.constant 0.000000e+00 : f32
    %45 = vector.broadcast %cst_18 : f32 to vector<128x512xf32>
    %46 = arith.maximumf %44, %45 : vector<128x512xf32>
    %c1 = arith.constant 1 : index
    %c0_19 = arith.constant 0 : index
    %c0_20 = arith.constant 0 : index
    %47 = vector.load %arg5[%c1, %c0_19, %c0_20] : memref<2x128x128xbf16, #tpu.memory_space<vmem>>, vector<1x128x128xbf16>
    %48 = vector.shape_cast %47 : vector<1x128x128xbf16> to vector<128x128xbf16>
    %49 = arith.truncf %46 : vector<128x512xf32> to vector<128x512xbf16>
    %cst_21 = arith.constant dense<0.000000e+00> : vector<128x512xf32>
    %50 = tpu.matmul %48, %49, %cst_21 {dimension_numbers = #tpu.dot_dimension_numbers<[1], [0], [0], [1], [0, 0, 1, 1], [], []>} : vector<128x128xbf16>, vector<128x512xbf16>, vector<128x512xf32> -> vector<128x512xf32>
    %c1_22 = arith.constant 1 : index
    %c0_23 = arith.constant 0 : index
    %c0_24 = arith.constant 0 : index
    %51 = vector.load %arg6[%c1_22, %c0_23, %c0_24] : memref<2x128x1xf32, #tpu.memory_space<vmem>>, vector<1x128x1xf32>
    %52 = vector.shape_cast %51 : vector<1x128x1xf32> to vector<128x1xf32>
    %53 = vector.broadcast %52 : vector<128x1xf32> to vector<128x512xf32>
    %54 = arith.addf %50, %53 : vector<128x512xf32>
    %55 = arith.addf %54, %46 : vector<128x512xf32>
    %cst_25 = arith.constant 0.000000e+00 : f32
    %56 = vector.broadcast %cst_25 : f32 to vector<128x512xf32>
    %57 = arith.maximumf %55, %56 : vector<128x512xf32>
    %c0_26 = arith.constant 0 : index
    %c0_27 = arith.constant 0 : index
    %58 = vector.load %arg7[%c0_26, %c0_27] : memref<2x128xbf16, #tpu.memory_space<vmem>>, vector<2x128xbf16>
    %59 = arith.truncf %57 : vector<128x512xf32> to vector<128x512xbf16>
    %cst_28 = arith.constant dense<0.000000e+00> : vector<2x512xf32>
    %60 = tpu.matmul %58, %59, %cst_28 {dimension_numbers = #tpu.dot_dimension_numbers<[1], [0], [0], [1], [0, 0, 1, 1], [], []>} : vector<2x128xbf16>, vector<128x512xbf16>, vector<2x512xf32> -> vector<2x512xf32>
    %c0_29 = arith.constant 0 : index
    %c0_30 = arith.constant 0 : index
    %61 = vector.load %arg8[%c0_29, %c0_30] : memref<2x1xf32, #tpu.memory_space<vmem>>, vector<2x1xf32>
    %62 = vector.broadcast %61 : vector<2x1xf32> to vector<2x512xf32>
    %63 = arith.addf %60, %62 : vector<2x512xf32>
    %64 = vector.extract_strided_slice %63 {offsets = [0, 0], sizes = [1, 512], strides = [1, 1]} : vector<2x512xf32> to vector<1x512xf32>
    %65 = vector.extract_strided_slice %63 {offsets = [1, 0], sizes = [1, 512], strides = [1, 1]} : vector<2x512xf32> to vector<1x512xf32>
    %66 = arith.mulf %65, %6 : vector<1x512xf32>
    %67 = arith.subf %64, %66 : vector<1x512xf32>
    %68 = arith.addf %64, %66 : vector<1x512xf32>
    %69 = tpu.concatenate %67, %68 in 0 : vector<1x512xf32>, vector<1x512xf32> -> vector<2x512xf32>
    %c0_31 = arith.constant 0 : index
    %c0_32 = arith.constant 0 : index
    %70 = vector.load %arg9[%c0_31, %c0_32] : memref<2x512xf32, #tpu.memory_space<vmem>>, vector<2x512xf32>
    tpu.vector_store %arg9[%c0_31, %c0_32], %69 {strides = array<i32>} : memref<2x512xf32, #tpu.memory_space<vmem>>, vector<2x512xf32>,
    return
  }
  func.func @transform_0(%arg0: i32) -> (i32, i32) {
    %c0_i32 = arith.constant 0 : i32
    %c0_i32_0 = arith.constant 0 : i32
    return %c0_i32, %arg0 : i32, i32
  }
  func.func @transform_1(%arg0: i32) -> (i32, i32) {
    %c0_i32 = arith.constant 0 : i32
    %c0_i32_0 = arith.constant 0 : i32
    %c0_i32_1 = arith.constant 0 : i32
    return %c0_i32, %c0_i32_0 : i32, i32
  }
  func.func @transform_2(%arg0: i32) -> (i32, i32) {
    %c0_i32 = arith.constant 0 : i32
    %c0_i32_0 = arith.constant 0 : i32
    %c0_i32_1 = arith.constant 0 : i32
    return %c0_i32, %c0_i32_0 : i32, i32
  }
  func.func @transform_3(%arg0: i32) -> (i32, i32) {
    %c0_i32 = arith.constant 0 : i32
    %c0_i32_0 = arith.constant 0 : i32
    %c0_i32_1 = arith.constant 0 : i32
    return %c0_i32, %c0_i32_0 : i32, i32
  }
  func.func @transform_4(%arg0: i32) -> (i32, i32, i32) {
    %c0_i32 = arith.constant 0 : i32
    %c0_i32_0 = arith.constant 0 : i32
    %c0_i32_1 = arith.constant 0 : i32
    %c0_i32_2 = arith.constant 0 : i32
    return %c0_i32, %c0_i32_0, %c0_i32_1 : i32, i32, i32
  }
  func.func @transform_5(%arg0: i32) -> (i32, i32, i32) {
    %c0_i32 = arith.constant 0 : i32
    %c0_i32_0 = arith.constant 0 : i32
    %c0_i32_1 = arith.constant 0 : i32
    %c0_i32_2 = arith.constant 0 : i32
    return %c0_i32, %c0_i32_0, %c0_i32_1 : i32, i32, i32
  }
  func.func @transform_6(%arg0: i32) -> (i32, i32) {
    %c0_i32 = arith.constant 0 : i32
    %c0_i32_0 = arith.constant 0 : i32
    %c0_i32_1 = arith.constant 0 : i32
    return %c0_i32, %c0_i32_0 : i32, i32
  }
  func.func @transform_7(%arg0: i32) -> (i32, i32) {
    %c0_i32 = arith.constant 0 : i32
    %c0_i32_0 = arith.constant 0 : i32
    %c0_i32_1 = arith.constant 0 : i32
    return %c0_i32, %c0_i32_0 : i32, i32
  }
  func.func @transform_8(%arg0: i32) -> (i32, i32) {
    %c0_i32 = arith.constant 0 : i32
    %c0_i32_0 = arith.constant 0 : i32
    return %c0_i32, %arg0 : i32, i32
  }
}

</mosaic_0001>

<bundles_post_ra>
// kernel: tpu_custom_call.1
= control target key start
LH: loop header
LB: loop body
LE: loop exit
PB: predicated region body
PF: predicated region fallthrough
CT: control target
= control target key end

     0   :  { %13 = vsyncpa [#allocation3], 0  ;;  %s8234_s0 = inlined_call_operand.vmem [shape: f32[4,1024], index: 0, kind: input, shape index: {}]   ;;  %s8235_s1 = inlined_call_operand.vmem [shape: f32[8,1], index: 1, kind: input, shape index: {}]   ;;  %s8236_s2 = inlined_call_operand.vmem [shape: bf16[128,49], index: 2, kind: input, shape index: {}]   ;;  %s8237_s3 = inlined_call_operand.vmem [shape: f32[128,1], index: 3, kind: input, shape index: {}]   ;;  %s8238_s4 = inlined_call_operand.vmem [shape: bf16[2,128,128], index: 4, kind: input, shape index: {}]   ;;  %s8239_s5 = inlined_call_operand.vmem [shape: f32[2,128,1], index: 5, kind: input, shape index: {}]   ;;  %s8240_s6 = inlined_call_operand.vmem [shape: bf16[2,128], index: 6, kind: input, shape index: {}]   ;;  %s8241_s7 = inlined_call_operand.vmem [shape: f32[2,1], index: 7, kind: input, shape index: {}]   ;;  %s8242_s8 = inlined_call_operand.hbm [shape: f32[2,1024], index: 8, kind: output, shape index: {}]  }
   0x1   :  { %15 = vsyncpa [#allocation3 + $0x1], 0  ;;  %s5318_s27 = smov 0   ;;  %s5320_s28 = smov 0  }
   0x2   :  { %s5322_s29 = smov 0   ;;  %s5324_s30 = smov 0  }
   0x3 LB: > { %s5339_s9 = sadd.s32 4294967295, %s5261_s30   ;;  %s4846_s10 = sadd.s32 4294967294, %s5261_s30   ;;  %s5261_s30 = sphi %s5324_s30, %s8673_s30   ;;  %s5257_s29 = sphi %s5322_s29, %s8672_s29   ;;  %s5253_s28 = sphi %s5320_s28, %s8671_s28   ;;  %s5249_s27 = sphi %s5318_s27, %s8670_s27  }
   0x4   : > { %s5343_s11 = sadd.s32 1, %s5261_s30   ;;  %s201_s12 = sadd.s32 1, %s5257_s29 }
   0x5   : > { %s198_s13 = ssub.s32 %s5261_s30, %s5343_s11  ;;  %p211_p0 = scmp.ne.s32.totalorder %s5257_s29, %s5253_s28 }
   0x6   : > { %p199_p1 = scmp.eq.s32.totalorder %s198_s13, 0  ;;  %p212_p2 = scmp.eq.s32.totalorder %s5339_s9, 1 }
   0x7   : > { %p217_p3 = scmp.ne.s32.totalorder %s5253_s28, %s5249_s27  ;;  %p218_p4 = scmp.eq.s32.totalorder %s4846_s10, 1 }
   0x8   : > { %s5354_s14 = scalar_select %p199_p1, %s5257_s29, %s201_s12  }
   0x9   : > { %p5356_p5 = por %p212_p2, %p211_p0  ;;  %p5360_p6 = por %p218_p4, %p217_p3 }
   0xa   : > { %p4849_p7 = scmp.ge.s32.totalorder %s5261_s30, 1  ;;  %p266_p8 = scmp.lt.s32.totalorder %s5261_s30, 3 }
   0xc   : > { %p267_p9 = pnand %p4849_p7, %p266_p8 }
   0xe   : > { %270 = sbr.rel (%p267_p9) target bundleno = 1615 (0x64f), region = 52 }
  0x15   : > { %v362_v0 = vld [vmem:[%s8235_s1] sm:$0xff]  ;;  %v8243_v1 = vmov 0   ;;  %v3031_v3 = vld [vmem:[%s8237_s3 + $0x18] sm:$0xff]  ;;  %v3033_v4 = vld [vmem:[%s8237_s3 + $0x28] sm:$0xff]  ;;  %s4851_s20 = sshll.u32 %s5339_s9, 2  ;;  %v316_v25 = vlaneseq  ;;  %v5264_v32 = vmov 1.0  }
  0x16   : > { %5123 = vset.pattern.permute.xlu0 %v8243_v1  ;;  %5124 = vset.pattern.permute.xlu1 %v8243_v1  ;;  %v3028_v2 = vld [vmem:[%s8237_s3] sm:$0xff]  ;;  %v3035_v5 = vld [vmem:[%s8237_s3 + $0x38] sm:$0xff]  ;;  %v3037_v6 = vld [vmem:[%s8237_s3 + $0x48] sm:$0xff]  ;;  %p301_p10 = scmp.lt.s32.totalorder %s4851_s20, 7  ;;  %s5026_s22 = sshll.u32 %s5339_s9, 7 }
  0x17   : > { %365 = vperm.xlu0 %5123, %v362_v0   ;;  %3236 = vmatprep.mubr.bf16.mxu0 %v8243_v1  ;;  %v3039_v7 = vld [vmem:[%s8237_s3 + $0x58] sm:$0xff]  ;;  %v3041_v8 = vld [vmem:[%s8237_s3 + $0x68] sm:$0xff]  ;;  %v5452_v28 = vshrl.u32 %v316_v25, 7  ;;  %s8192_s26 = scalar_lea.hbm %s8242_s8, %s5026_s22  ;;  %s5272_s9 = smov [#allocation2]  }
  0x18   : > { %3349 = vmatprep.mubr.bf16.mxu1 %v8243_v1  ;;  %v3043_v9 = vld [vmem:[%s8237_s3 + $0x78] sm:$0xff]  ;;  %v3543_v10 = vld [vmem:[%s8239_s5 + $0x8] sm:$0xff]  ;;  %s8675_s20 = smov (!%p301_p10, %s4851_s20), 7  ;;  %s5203_s13 = sshll.u32 %s5272_s9, 4  ;;  %s5204_s13 = int_to_ptr.vmem [resolvable:$false] %s5203_s13 }
  0x19   : > { %v3545_v11 = vld [vmem:[%s8239_s5 + $0x18] sm:$0xff]  ;;  %v3547_v12 = vld [vmem:[%s8239_s5 + $0x28] sm:$0xff]  ;;  %s4852_s10 = sshll.u32 %s8675_s20, 2  ;;  %8413 = vst [vmem:[#allocation5_spill] sm:$0xff] %v5452_v28  ;;  %v5456_v30 = vsub.s32 2, %v5452_v28  ;;  %v5459_v31 = vsub.s32 6, %v5452_v28 }
  0x1a   : > { %v3549_v13 = vld [vmem:[%s8239_s5 + $0x38] sm:$0xff]  ;;  %v3551_v14 = vld [vmem:[%s8239_s5 + $0x48] sm:$0xff]  ;;  %s5446_s17 = scalar_lea.vmem %s8234_s0, %s4852_s10  ;;  %v376_v46 = vsub.s32 4, %v5452_v28  ;;  %v416_v47 = vsub.s32 5, %v5452_v28  ;;  %v5491_v52 = vsub.s32 0, %v5452_v28  ;;  %v5494_v53 = vsub.s32 1, %v5452_v28 }
  0x1b   : > { %3046 = vperm.xlu0 %5123, %v3028_v2   ;;  %v3553_v15 = vld [vmem:[%s8239_s5 + $0x58] sm:$0xff]  ;;  %v3555_v16 = vld [vmem:[%s8239_s5 + $0x68] sm:$0xff]  ;;  %v308_v27 = vld [vmem:[%s5446_s17] sm:$0xff]  ;;  %s297_s20 = sand.u32 1, %s5253_s28   ;;  %s5205_s18 = scalar_lea.vmem %s5204_s13, 256 }
  0x1c   : > { %v3557_v17 = vld [vmem:[%s8239_s5 + $0x78] sm:$0xff]  ;;  %v4998_v18 = vld [vmem:[%s8239_s5 + $0x88] sm:$0xff]  ;;  %vm310_vm0 = vcmp.gt.f32.partialorder %v308_v27, 0.0  ;;  %s4850_s21 = sshll.u32 %s297_s20, 3  ;;  %s4773_s10 = scalar_lea.sflag [#allocation3], %s297_s20 }
  0x1d   : > { %v5000_v19 = vld [vmem:[%s8239_s5 + $0x98] sm:$0xff]  ;;  %v5002_v20 = vld [vmem:[%s8239_s5 + $0xa8] sm:$0xff]  ;;  %v312_v33 = vsel %vm310_vm0, -1.0, %v5264_v32  ;;  %s299_s23 = scalar_lea.vmem [#allocation2], %s4850_s21 }
  0x1e   : > { %v5004_v21 = vld [vmem:[%s8239_s5 + $0xb8] sm:$0xff]  ;;  %v5006_v22 = vld [vmem:[%s8239_s5 + $0xc8] sm:$0xff]  ;;  %v5462_v35 = vrot.slane %v312_v33, %v5456_v30  ;;  %v5465_v36 = vrot.slane %v312_v33, %v5459_v31  ;;  %s4787_s24 = sshll.u32 %s299_s23, 4  ;;  %s8194_s24 = int_to_ptr.vmem [resolvable:$true] %s4787_s24 }
  0x1f   : > { %3061 = vperm.xlu0 %5123, %v3031_v3   ;;  %v5008_v23 = vld [vmem:[%s8239_s5 + $0xd8] sm:$0xff]  ;;  %v5010_v24 = vld [vmem:[%s8239_s5 + $0xe8] sm:$0xff]  ;;  %s5199_s12 = scalar_lea.vmem %s8194_s24, 128  ;;  %p5206_p0 = scmp.lt.s32.totalorder %s8194_s24, %s5204_s13 }
  0x20   : > { %v5012_v26 = vld [vmem:[%s8239_s5 + $0xf8] sm:$0xff]  ;;  %v309_v29 = vld [vmem:[%s5446_s17 + $0x8] sm:$0xff]  ;;  %8414 = vst [vmem:[#allocation6_spill] sm:$0xff] %v5462_v35  ;;  %8415 = vst [vmem:[#allocation7_spill] sm:$0xff] %v5465_v36  ;;  %v339_v39 = vrot.slane %v5462_v35, %v5456_v30  ;;  %v343_v40 = vrot.slane %v5465_v36, %v5456_v30  ;;  %p5200_p11 = scmp.ne.s32.totalorder %s8194_s24, %s5199_s12  ;;  %p5207_p1 = scmp.lt.s32.totalorder %s5205_s18, %s5199_s12 }
  0x21   : > { %vm311_vm1 = vcmp.gt.f32.partialorder %v309_v29, 0.0 }
  0x22   : > { %v313_v34 = vsel %vm311_vm1, -1.0, %v5264_v32  ;;  %v356_v43 = vcombine.low %v339_v39, %v343_v40  ;;  %v5267_v40 = vmov 2131351028   ;;  %p5201_p12 = pnand %p5200_p11, %p5356_p5  ;;  %p5208_p2 = por %p5207_p1, %p5206_p0 }
  0x23   : > { %3071 = vperm.xlu0 %5123, %v3033_v4   ;;  %v5468_v37 = vrot.slane %v313_v34, %v5456_v30  ;;  %v5471_v38 = vrot.slane %v313_v34, %v5459_v31  ;;  %v5266_v34 = vmov 2475754826  }
  0x24   : > { %v5481_v45 = vmul.f32 %v356_v43, %v308_v27  ;;  %v5265_v27 = vmov 683565275   ;;  %p5202_p13 = pneg %p5201_p12 }
  0x25   : > { %8416 = vst [vmem:[#allocation8_spill] sm:$0xff] %v5468_v37  ;;  %8417 = vst [vmem:[#allocation9_spill] sm:$0xff] %v5471_v38  ;;  %v347_v41 = vrot.slane %v5468_v37, %v5456_v30  ;;  %v351_v42 = vrot.slane %v5471_v38, %v5456_v30 }
  0x26   : > { %v377_v49 = vrot.slane %v5481_v45, %v376_v46  ;;  %v417_v50 = vrot.slane %v5481_v45, %v416_v47  ;;  %p5209_p3 = pnand %p5208_p2, %p5202_p13 }
  0x27   : > { %3081 = vperm.xlu0 %5123, %v3035_v5   ;;  %v357_v44 = vcombine.low %v347_v41, %v351_v42  ;;  %v5268_v42 = vmov 2102212464  }
  0x28   : > { %v397_v54 = vrot.slane %v377_v49, %v5491_v52  ;;  %v437_v55 = vrot.slane %v417_v50, %v5494_v53 }
  0x29   : > { %v5485_v48 = vmul.f32 %v357_v44, %v309_v29  ;;  %v5269_v44 = vmov 920167782  }
  0x2b   : > { %3091 = vperm.xlu0 %5123, %v3037_v6   ;;  %v385_v51 = vrot.slane %v5485_v48, %v376_v46  ;;  %v425_v3 = vrot.slane %v5485_v48, %v416_v47 }
  0x2d   : > { %v405_v56 = vrot.slane %v385_v51, %v5491_v52 }
  0x2f   : > { %3101 = vperm.xlu0 %5123, %v3039_v7  }
  0x33   : > { %3111 = vperm.xlu0 %5123, %v3041_v8  }
  0x37   : > { %3121 = vperm.xlu0 %5123, %v3043_v9  }
  0x3b   : > { %3565 = vperm.xlu0 %5123, %v3543_v10  }
  0x3f   : > { %3575 = vperm.xlu0 %5123, %v3545_v11  }
  0x43   : > { %3585 = vperm.xlu0 %5123, %v3547_v12   ;;  %v445_v12 = vrot.slane %v425_v3, %v5494_v53 }
  0x47   : > { %3595 = vperm.xlu0 %5123, %v3549_v13  }
  0x4b   : > { %3605 = vperm.xlu0 %5123, %v3551_v14  }
  0x4f   : > { %3615 = vperm.xlu0 %5123, %v3553_v15  }
  0x53   : > { %3625 = vperm.xlu0 %5123, %v3555_v16  }
  0x57   : > { %3635 = vperm.xlu0 %5123, %v3557_v17  }
  0x5b   : > { %4113 = vperm.xlu0 %5123, %v4998_v18  }
  0x5f   : > { %4123 = vperm.xlu0 %5123, %v5000_v19  }
  0x63   : > { %4133 = vperm.xlu0 %5123, %v5002_v20  }
  0x67   : > { %4143 = vperm.xlu0 %5123, %v5004_v21  }
  0x6b   : > { %4153 = vperm.xlu0 %5123, %v5006_v22  }
  0x6f   : > { %4163 = vperm.xlu0 %5123, %v5008_v23  }
  0x73   : > { %4173 = vperm.xlu0 %5123, %v5010_v24  }
  0x77   : > { %4183 = vperm.xlu0 %5123, %v5012_v26  }
  0x96   : > { %v5499_v57 = vpop.permute.xlu0 %365 }
  0x97   : > { %v5502_v58 = vmul.f32 %v397_v54, %v5499_v57  ;;  %v5505_v59 = vmul.f32 %v437_v55, %v5499_v57  ;;  %v5508_v60 = vmul.f32 %v405_v56, %v5499_v57  ;;  %v5522_v21 = vmul.f32 %v445_v12, %v5499_v57 }
  0x98   : > { %v5270_v55 = vmov 1326507024  }
  0x99   : > { %v594_v61 = vand.u32 2147483647, %v5502_v58  ;;  %v597_v62 = vand.u32 2139095040, %v5502_v58  ;;  %v1010_v63 = vand.u32 2147483647, %v5505_v59  ;;  %v1013_v0 = vand.u32 2139095040, %v5505_v59 }
  0x9a   : > { %v805_v7 = vand.u32 2139095040, %v5508_v60  ;;  %v802_v24 = vand.u32 2147483647, %v5508_v60  ;;  %vm596_vm15 = vcmp.lt.s32.totalorder %v5502_v58, 0 }
  0x9b   : > { %v598_v2 = vshrl.u32 %v597_v62, 23  ;;  %v601_v4 = vand.u32 8388607, %v594_v61  ;;  %v1014_v5 = vshrl.u32 %v1013_v0, 23  ;;  %v1017_v6 = vand.u32 8388607, %v1010_v63 }
  0x9c   : > { %v806_v10 = vshrl.u32 %v805_v7, 23  ;;  %vm5639_vm0 = vcmp.le.f32.partialorder %v594_v61, 0.7853982 }
  0x9d   : > { %v4857_v8 = vadd.s32 4294967169, %v598_v2  ;;  %v4873_v9 = vadd.s32 4294967169, %v1014_v5  ;;  %v602_v13 = vor.u32 8388608, %v601_v4  ;;  %v1018_v14 = vor.u32 8388608, %v1017_v6 }
  0x9e   : > { %v4865_v16 = vadd.s32 4294967169, %v806_v10 }
  0x9f   : > { %v604_v11 = vadd.s32 1, %v4857_v8  ;;  %v1020_v15 = vadd.s32 1, %v4873_v9  ;;  %v5524_v22 = vshll.u32 %v602_v13, 8  ;;  %v5526_v23 = vshll.u32 %v1018_v14, 8 }
  0xa0   : > { %v5529_v25 = vadd.s32 1, %v4865_v16 }
  0xa1   : > { %vm605_vm2 = vcmp.gt.s32.totalorder %v604_v11, 0  ;;  %vm1021_vm3 = vcmp.gt.s32.totalorder %v1020_v15, 0 }
  0xa2   : > { %v606_v17 = vsel %vm605_vm2, %v604_v11, 0  ;;  %v1022_v20 = vsel %vm1021_vm3, %v1020_v15, 0  ;;  %vm813_vm8 = vcmp.gt.s32.totalorder %v5529_v25, 0 }
  0xa3   : > { %v607_v18 = vshrl.u32 %v606_v17, 5  ;;  %v608_v19 = vand.u32 31, %v606_v17  ;;  %v5532_v32 = vshrl.u32 %v1022_v20, 5  ;;  %v1024_v33 = vand.u32 31, %v1022_v20 }
  0xa5   : > { %v609_v26 = vsub.s32 32, %v608_v19  ;;  %v611_v29 = vshll.u32 %v5265_v27, %v608_v19  ;;  %v614_v39 = vshll.u32 %v5266_v34, %v608_v19  ;;  %v617_v41 = vshll.u32 %v5267_v40, %v608_v19 }
  0xa6   : > { %v620_v43 = vshll.u32 %v5268_v42, %v608_v19  ;;  %v623_v46 = vshll.u32 %v5269_v44, %v608_v19  ;;  %vm626_vm4 = vcmp.lt.s32.totalorder %v607_v18, 1  ;;  %vm627_vm5 = vcmp.lt.s32.totalorder %v607_v18, 2 }
  0xa7   : > { %v612_v47 = vshrl.u32 %v5266_v34, %v609_v26  ;;  %v615_v49 = vshrl.u32 %v5267_v40, %v609_v26  ;;  %v618_v50 = vshrl.u32 %v5268_v42, %v609_v26  ;;  %v610_v51 = vshrl.u32 %v5265_v27, %v609_v26 }
  0xa8   : > { %v621_v54 = vshrl.u32 %v5269_v44, %v609_v26  ;;  %v624_v56 = vshrl.u32 %v5270_v55, %v609_v26  ;;  %v1025_v3 = vsub.s32 32, %v1024_v33  ;;  %vm628_vm6 = vcmp.lt.s32.totalorder %v607_v18, 3 }
  0xa9   : > { %v613_v62 = vor.u32 %v612_v47, %v611_v29  ;;  %v616_v0 = vor.u32 %v615_v49, %v614_v39  ;;  %v619_v2 = vor.u32 %v618_v50, %v617_v41  ;;  %vm629_vm7 = vcmp.lt.s32.totalorder %v607_v18, 4 }
  0xaa   : > { %v622_v4 = vor.u32 %v621_v54, %v620_v43  ;;  %v625_v5 = vor.u32 %v624_v56, %v623_v46  ;;  %v1027_v13 = vshll.u32 %v5265_v27, %v1024_v33  ;;  %v1028_v16 = vshrl.u32 %v5266_v34, %v1025_v3 }
  0xab   : > { %v630_v6 = vsel %vm626_vm4, %v610_v51, %v613_v62  ;;  %v631_v7 = vsel %vm629_vm7, %v619_v2, 2102212464  ;;  %v634_v8 = vsel %vm626_vm4, %v613_v62, %v616_v0  ;;  %v638_v9 = vsel %vm626_vm4, %v616_v0, %v619_v2 }
  0xac   : > { %v632_v10 = vsel %vm628_vm6, %v616_v0, %v631_v7  ;;  %v635_v11 = vsel %vm629_vm7, %v622_v4, 920167782  ;;  %v639_v12 = vsel %vm629_vm7, %v625_v5, 1326507024  ;;  %v1030_v17 = vshll.u32 %v5266_v34, %v1024_v33 }
  0xad   : > { %v636_v14 = vsel %vm628_vm6, %v619_v2, %v635_v11  ;;  %v640_v15 = vsel %vm628_vm6, %v622_v4, %v639_v12  ;;  %v633_v19 = vsel %vm627_vm5, %v630_v6, %v632_v10  ;;  %v1031_v29 = vshrl.u32 %v5267_v40, %v1025_v3 }
  0xae   : > { %v637_v20 = vsel %vm627_vm5, %v634_v8, %v636_v14  ;;  %v641_v26 = vsel %vm627_vm5, %v638_v9, %v640_v15  ;;  %v1029_v47 = vor.u32 %v1028_v16, %v1027_v13  ;;  %v1033_v50 = vshll.u32 %v5267_v40, %v1024_v33 }
  0xaf   : > { %v5556_v39 = vmul.u32.u64.low %v5524_v22, %v641_v26  ;;  %v5557_v41 = vmul.u32.u64.high %v5524_v22, %v641_v26, %v5556_v39  ;;  %v5560_v43 = vmul.u32.u64.low %v5524_v22, %v637_v20  ;;  %v5561_v46 = vmul.u32.u64.high %v5524_v22, %v637_v20, %v5560_v43 }
  0xb0   : > { %v1032_v49 = vor.u32 %v1031_v29, %v1030_v17  ;;  %v1034_v51 = vshrl.u32 %v5268_v42, %v1025_v3  ;;  %v1026_v18 = vshrl.u32 %v5265_v27, %v1025_v3  ;;  %v1036_v54 = vshll.u32 %v5268_v42, %v1024_v33 }
  0xb1   : > { %v1037_v56 = vshrl.u32 %v5269_v44, %v1025_v3  ;;  %v1040_v62 = vshrl.u32 %v5270_v55, %v1025_v3  ;;  %v649_v0 = vmul.u32 %v5524_v22, %v633_v19  ;;  %v1039_v4 = vshll.u32 %v5269_v44, %v1024_v33 }
  0xb2   : > { %v1035_v2 = vor.u32 %v1034_v51, %v1033_v50  ;;  %vm1042_vm9 = vcmp.lt.s32.totalorder %v5532_v32, 1  ;;  %vm651_vm10 = vc.u32 %v5557_v41, %v5560_v43  ;;  %v652_v5 = vadd.s32 1, %v5561_v46 }
  0xb3   : > { %v1038_v6 = vor.u32 %v1037_v56, %v1036_v54  ;;  %vm1043_vm11 = vcmp.lt.s32.totalorder %v5532_v32, 2  ;;  %v1041_v7 = vor.u32 %v1040_v62, %v1039_v4  ;;  %vm1044_vm12 = vcmp.lt.s32.totalorder %v5532_v32, 3 }
  0xb4   : > { %vm1045_vm13 = vcmp.lt.s32.totalorder %v5532_v32, 4  ;;  %v1050_v3 = vsel %vm1042_vm9, %v1029_v47, %v1032_v49  ;;  %v653_v22 = vsel %vm651_vm10, %v652_v5, %v5561_v46  ;;  %v1054_v9 = vsel %vm1042_vm9, %v1032_v49, %v1035_v2 }
  0xb5   : > { %v1047_v8 = vsel %vm1045_vm13, %v1035_v2, 2102212464  ;;  %v1051_v33 = vsel %vm1045_vm13, %v1038_v6, 920167782  ;;  %v654_v10 = vadd.s32 %v653_v22, %v649_v0  ;;  %v1046_v11 = vsel %vm1042_vm9, %v1026_v18, %v1029_v47 }
  0xb6   : > { %v1052_v12 = vsel %vm1044_vm12, %v1035_v2, %v1051_v33  ;;  %v1055_v13 = vsel %vm1045_vm13, %v1041_v7, 1326507024  ;;  %v1048_v14 = vsel %vm1044_vm12, %v1032_v49, %v1047_v8  ;;  %v814_v17 = vsel %vm813_vm8, %v5529_v25, 0 }
  0xb7   : > { %v1053_v15 = vsel %vm1043_vm11, %v1050_v3, %v1052_v12  ;;  %v1056_v16 = vsel %vm1044_vm12, %v1038_v6, %v1055_v13  ;;  %v655_v19 = vadd.s32 536870912, %v654_v10  ;;  %v373_v47 = vrot.slane %v5481_v45, %v5491_v52 }
  0xb8   : > { %v1057_v20 = vsel %vm1043_vm11, %v1054_v9, %v1056_v16  ;;  %v5588_v26 = vmul.u32.u64.low %v5526_v23, %v1053_v15  ;;  %v5589_v29 = vmul.u32.u64.high %v5526_v23, %v1053_v15, %v5588_v26  ;;  %v1049_v25 = vsel %vm1043_vm11, %v1046_v11, %v1048_v14 }
  0xb9   : > { %v5592_v39 = vmul.u32.u64.low %v5526_v23, %v1057_v20  ;;  %v5593_v46 = vmul.u32.u64.high %v5526_v23, %v1057_v20, %v5592_v39  ;;  %v5597_v49 = vshrl.u32 %v655_v19, 30  ;;  %v809_v50 = vand.u32 8388607, %v802_v24 }
  0xba   : > { %v816_v51 = vand.u32 31, %v814_v17  ;;  %v1221_v18 = vand.u32 2139095040, %v5522_v21  ;;  %v1068_v56 = vadd.s32 1, %v5589_v29  ;;  %v1065_v62 = vmul.u32 %v5526_v23, %v1049_v25 }
  0xbb   : > { %v657_v54 = vshll.u32 %v5597_v49, 30  ;;  %vm1067_vm14 = vc.u32 %v5593_v46, %v5588_v26  ;;  %v393_v0 = vrot.slane %v373_v47, %v5491_v52  ;;  %v413_v32 = vrot.slane %v5481_v45, %v5494_v53 }
  0xbc   : > { %v1069_v4 = vsel %vm1067_vm14, %v1068_v56, %v5589_v29  ;;  %v810_v5 = vor.u32 8388608, %v809_v50  ;;  %v1218_v6 = vand.u32 2147483647, %v5522_v21  ;;  %v817_v3 = vsub.s32 32, %v816_v51 }
  0xbd   : > { %v5611_v2 = vsub.s32 %v654_v10, %v657_v54  ;;  %v1070_v7 = vadd.s32 %v1069_v4, %v1065_v62  ;;  %v1222_v22 = vshrl.u32 %v1221_v18, 23  ;;  %v5616_v23 = vshrl.u32 %v814_v17, 5 }
  0xbe   : > { %v5619_v9 = vmul.f32 %v393_v0, %v5499_v57  ;;  %v5622_v11 = vrot.slane %v413_v32, %v5494_v53  ;;  %v5626_v12 = vshll.u32 %v810_v5, 8  ;;  %v5630_v13 = vand.u32 8388607, %v1218_v6 }
  0xbf   : > { %v660_v8 = vsub.s32 0, %v5611_v2  ;;  %v1071_v33 = vadd.s32 536870912, %v1070_v7  ;;  %v650_v14 = vadd.s32 %v5560_v43, %v5557_v41  ;;  %v826_v16 = vshrl.u32 %v5268_v42, %v817_v3 }
  0xc0   : > { %v4881_v17 = vadd.s32 4294967169, %v1222_v22  ;;  %v820_v29 = vshrl.u32 %v5266_v34, %v817_v3  ;;  %v823_v39 = vshrl.u32 %v5267_v40, %v817_v3  ;;  %vm834_vm1 = vcmp.lt.s32.totalorder %v5616_v23, 1 }
  0xc1   : > { %v4858_v10 = vmin.u32 %v660_v8, %v5611_v2  ;;  %v5634_v15 = vshrl.u32 %v1071_v33, 30  ;;  %v680_v41 = vsub.s32 4, %v5597_v49  ;;  %v825_v47 = vshll.u32 %v5267_v40, %v816_v51 }
  0xc2   : > { %v829_v25 = vshrl.u32 %v5269_v44, %v817_v3  ;;  %vm836_vm2 = vcmp.lt.s32.totalorder %v5616_v23, 3  ;;  %v819_v50 = vshll.u32 %v5265_v27, %v816_v51  ;;  %v822_v18 = vshll.u32 %v5266_v34, %v816_v51 }
  0xc3   : > { %v662_v20 = vclz %v4858_v10  ;;  %v1073_v43 = vshll.u32 %v5634_v15, 30  ;;  %v828_v54 = vshll.u32 %v5268_v42, %v816_v51  ;;  %vm835_vm3 = vcmp.lt.s32.totalorder %v5616_v23, 2 }
  0xc4   : > { %v827_v62 = vor.u32 %v826_v16, %v825_v47  ;;  %v832_v0 = vshrl.u32 %v5270_v55, %v817_v3  ;;  %vm837_vm4 = vcmp.lt.s32.totalorder %v5616_v23, 4  ;;  %v821_v32 = vor.u32 %v820_v29, %v819_v50 }
  0xc5   : > { %v4859_v61 = vadd.s32 4294967294, %v662_v20  ;;  %v5655_v56 = vsub.s32 %v1070_v7, %v1073_v43  ;;  %v824_v4 = vor.u32 %v823_v39, %v822_v18  ;;  %v830_v5 = vor.u32 %v829_v25, %v828_v54 }
  0xc6   : > { %v1066_v8 = vadd.s32 %v5588_v26, %v5593_v46  ;;  %v831_v10 = vshll.u32 %v5269_v44, %v816_v51  ;;  %v681_v7 = vsel %vm596_vm15, %v680_v41, %v5597_v49  ;;  %v818_v16 = vshrl.u32 %v5265_v27, %v817_v3 }
  0xc7   : > { %vm4860_vm5 = vcmp.lt.s32.totalorder %v4859_v61, 0  ;;  %v1076_v33 = vsub.s32 0, %v5655_v56  ;;  %vm1012_vm6 = vcmp.lt.s32.totalorder %v5505_v59, 0  ;;  %v839_v26 = vsel %vm837_vm4, %v827_v62, 2102212464 }
  0xc8   : > { %v665_v22 = vsel %vm4860_vm5, 0, %v4859_v61  ;;  %v833_v39 = vor.u32 %v832_v0, %v831_v10  ;;  %v842_v47 = vsel %vm834_vm1, %v821_v32, %v824_v4  ;;  %v843_v49 = vsel %vm837_vm4, %v830_v5, 920167782 }
  0xc9   : > { %v666_v20 = vsub.s32 32, %v665_v22  ;;  %v670_v1 = vsub.s32 4294967266, %v665_v22  ;;  %v667_v43 = vshll.u32 %v5611_v2, %v665_v22  ;;  %v4874_v29 = vmin.u32 %v1076_v33, %v5655_v56 }
  0xca   : > { %v683_v3 = vsel %vm5639_vm0, 0, %v681_v7  ;;  %v1096_v41 = vsub.s32 4, %v5634_v15  ;;  %v838_v25 = vsel %vm834_vm1, %v818_v16, %v821_v32  ;;  %vm5682_vm7 = vcmp.le.f32.partialorder %v1010_v63, 0.7853982 }
  0xcb   : > { %v668_v46 = vshrl.u32 %v650_v14, %v666_v20  ;;  %v671_v51 = vadd.s32 127, %v670_v1  ;;  %v1078_v2 = vclz %v4874_v29  ;;  %v844_v14 = vsel %vm836_vm2, %v827_v62, %v843_v49 }
  0xcc   : > { %v846_v18 = vsel %vm834_vm1, %v824_v4, %v827_v62  ;;  %v840_v0 = vsel %vm836_vm2, %v824_v4, %v839_v26  ;;  %v845_v32 = vsel %vm835_vm3, %v842_v47, %v844_v14  ;;  %v847_v22 = vsel %vm837_vm4, %v833_v39, 1326507024 }
  0xcd   : > { %v669_v61 = vor.u32 %v668_v46, %v667_v43  ;;  %v672_v50 = vshll.u32 %v671_v51, 23  ;;  %v4875_v54 = vadd.s32 4294967294, %v1078_v2  ;;  %v848_v10 = vsel %vm836_vm2, %v830_v5, %v847_v22 }
  0xce   : > { %v1228_v20 = vadd.s32 1, %v4881_v17  ;;  %v849_v62 = vsel %vm835_vm3, %v846_v18, %v848_v10  ;;  %v5701_v7 = vmul.u32.u64.low %v5626_v12, %v845_v32  ;;  %v5702_v16 = vmul.u32.u64.high %v5626_v12, %v845_v32, %v5701_v7 }
  0xcf   : > { %v673_v63 = vor.u32 4788187, %v672_v50  ;;  %v676_v33 = vcvt.s32.f32 %v669_v61  ;;  %vm4876_vm8 = vcmp.lt.s32.totalorder %v4875_v54, 0  ;;  %v841_v17 = vsel %vm835_vm3, %v838_v25, %v840_v0 }
  0xd0   : > { %v1081_v43 = vsel %vm4876_vm8, 0, %v4875_v54  ;;  %v5706_v29 = vmul.u32.u64.low %v5626_v12, %v849_v62  ;;  %v5707_v39 = vmul.u32.u64.high %v5626_v12, %v849_v62, %v5706_v29  ;;  %vm1229_vm9 = vcmp.gt.s32.totalorder %v1228_v20, 0 }
  0xd1   : > { %v674_v4 = vand.u32 2147483647, %v673_v63  ;;  %v1082_v26 = vsub.s32 32, %v1081_v43  ;;  %v1086_v46 = vsub.s32 4294967266, %v1081_v43  ;;  %v687_v51 = vadd.s32 3, %v683_v3 }
  0xd2   : > { %v1097_v47 = vsel %vm1012_vm6, %v1096_v41, %v5634_v15  ;;  %v1230_v49 = vsel %vm1229_vm9, %v1228_v20, 0  ;;  %v1083_v2 = vshll.u32 %v5655_v56, %v1081_v43  ;;  %v860_v14 = vadd.s32 1, %v5702_v16 }
  0xd3   : > { %v677_v5 = vmul.f32 %v676_v33, %v674_v4  ;;  %v1084_v61 = vshrl.u32 %v1066_v8, %v1082_v26  ;;  %v1087_v50 = vadd.s32 127, %v1086_v46  ;;  %v857_v54 = vmul.u32 %v5626_v12, %v841_v17 }
  0xd4   : > { %vm859_vm10 = vc.u32 %v5707_v39, %v5701_v7  ;;  %v1232_v23 = vand.u32 31, %v1230_v49  ;;  %v1099_v32 = vsel %vm5682_vm7, 0, %v1097_v47  ;;  %v5726_v22 = vmul.f32 %v5622_v11, %v5499_v57 }
  0xd5   : > { %v678_v18 = vxor.u32 2147483648, %v677_v5  ;;  %v1085_v25 = vor.u32 %v1084_v61, %v1083_v2  ;;  %v1088_v0 = vshll.u32 %v1087_v50, 23  ;;  %v861_v15 = vsel %vm859_vm10, %v860_v14, %v5702_v16 }
  0xd6   : > { %v862_v8 = vadd.s32 %v861_v15, %v857_v54  ;;  %v1233_v41 = vsub.s32 32, %v1232_v23  ;;  %v5731_v33 = vand.u32 3, %v683_v3  ;;  %v1226_v10 = vor.u32 8388608, %v5630_v13 }
  0xd7   : > { %v679_v56 = vsel %vm596_vm15, %v678_v18, %v677_v5  ;;  %v1089_v63 = vor.u32 4788187, %v1088_v0  ;;  %v5734_v20 = vand.u32 3, %v687_v51  ;;  %v1103_v62 = vadd.s32 3, %v1099_v32 }
  0xd8   : > { %v682_v12 = vsel %vm5639_vm0, %v5502_v58, %v679_v56  ;;  %v863_v16 = vadd.s32 536870912, %v862_v8  ;;  %v1092_v43 = vcvt.s32.f32 %v1085_v25  ;;  %v5736_v29 = vshrl.u32 %v1230_v49, 5 }
  0xd9   : > { %5149 = vcosq.f32 %v682_v12  ;;  %v1090_v4 = vand.u32 2147483647, %v1089_v63  ;;  %v1236_v19 = vshrl.u32 %v5266_v34, %v1233_v41  ;;  %v1239_v26 = vshrl.u32 %v5267_v40, %v1233_v41 }
  0xda   : > { %5151 = vsinq.f32 %v682_v12  ;;  %v5738_v11 = vshrl.u32 %v863_v16, 30  ;;  %v1242_v3 = vshrl.u32 %v5268_v42, %v1233_v41  ;;  %v1241_v13 = vshll.u32 %v5267_v40, %v1232_v23 }
  0xdb   : > { %v1093_v46 = vmul.f32 %v1092_v43, %v1090_v4  ;;  %v1244_v17 = vshll.u32 %v5268_v42, %v1232_v23  ;;  %v1245_v5 = vshrl.u32 %v5269_v44, %v1233_v41  ;;  %vm1939_vm11 = vcmp.eq.s32.totalorder %v5731_v33, 2 }
  0xdc   : > { %v865_v51 = vshll.u32 %v5738_v11, 30  ;;  %v1235_v47 = vshll.u32 %v5265_v27, %v1232_v23  ;;  %v1238_v49 = vshll.u32 %v5266_v34, %v1232_v23  ;;  %v1248_v2 = vshrl.u32 %v5270_v55, %v1233_v41 }
  0xdd   : > { %vm693_vm12 = vcmp.eq.s32.totalorder %v5734_v20, 2  ;;  %v1094_v61 = vxor.u32 2147483648, %v1093_v46  ;;  %vm1936_vm13 = vcmp.eq.s32.totalorder %v5731_v33, 0  ;;  %v1243_v50 = vor.u32 %v1242_v3, %v1241_v13 }
  0xde   : > { %v1246_v14 = vor.u32 %v1245_v5, %v1244_v17  ;;  %v1247_v18 = vshll.u32 %v5269_v44, %v1232_v23  ;;  %vm690_vm14 = vcmp.eq.s32.totalorder %v5734_v20, 0  ;;  %vm1935_vm15 = vcmp.lt.s32.totalorder %v5731_v33, 2 }
  0xdf   : > { %v5756_v54 = vand.u32 3, %v1099_v32  ;;  %v5758_v25 = vsub.s32 %v862_v8, %v865_v51  ;;  %v1237_v0 = vor.u32 %v1236_v19, %v1235_v47  ;;  %v1240_v15 = vor.u32 %v1239_v26, %v1238_v49 }
  0xe0   : > { %vm686_vm0 = vweird.f32 %v5502_v58  ;;  %v1095_v56 = vsel %vm1012_vm6, %v1094_v61, %v1093_v46  ;;  %v5763_v12 = vand.u32 3, %v1103_v62  ;;  %v1249_v63 = vor.u32 %v1248_v2, %v1247_v18 }
  0xe1   : > { %vm1250_vm1 = vcmp.lt.s32.totalorder %v5736_v29, 1  ;;  %v1098_v23 = vsel %vm5682_vm7, %v5505_v59, %v1095_v56  ;;  %v868_v32 = vsub.s32 0, %v5758_v25  ;;  %v1234_v8 = vshrl.u32 %v5265_v27, %v1233_v41 }
  0xe2   : > { %vm1253_vm2 = vcmp.lt.s32.totalorder %v5736_v29, 4  ;;  %vm689_vm3 = vcmp.lt.s32.totalorder %v5734_v20, 2  ;;  %5153 = vcosq.f32 %v1098_v23  ;;  %vm1252_vm4 = vcmp.lt.s32.totalorder %v5736_v29, 3 }
  0xe3   : > { %v1255_v62 = vsel %vm1253_vm2, %v1243_v50, 2102212464  ;;  %v1259_v16 = vsel %vm1253_vm2, %v1246_v14, 920167782  ;;  %v5150_v4 = vpop.eup %5149  ;;  %5155 = vsinq.f32 %v1098_v23  ;;  %v4866_v43 = vmin.u32 %v868_v32, %v5758_v25 }
  0xe4   : > { %v1258_v1 = vsel %vm1250_vm1, %v1237_v0, %v1240_v15  ;;  %v1260_v19 = vsel %vm1252_vm4, %v1243_v50, %v1259_v16  ;;  %v5152_v41 = vpop.eup %5151  ;;  %v694_v26 = vxor.u32 2147483648, %v5150_v4  ;;  %v1262_v3 = vsel %vm1250_vm1, %v1240_v15, %v1243_v50 }
  0xe5   : > { %v1263_v46 = vsel %vm1253_vm2, %v1249_v63, 1326507024  ;;  %v1266_v13 = vshll.u32 %v1226_v10, 8  ;;  %v691_v17 = vxor.u32 2147483648, %v5152_v41  ;;  %v870_v5 = vclz %v4866_v43 }
  0xe6   : > { %vm1251_vm5 = vcmp.lt.s32.totalorder %v5736_v29, 2  ;;  %v1254_v51 = vsel %vm1250_vm1, %v1234_v8, %v1237_v0  ;;  %v1941_v47 = vsel %vm1939_vm11, %v694_v26, %v5152_v41  ;;  %v1256_v49 = vsel %vm1252_vm4, %v1240_v15, %v1255_v62 }
  0xe7   : > { %v1261_v2 = vsel %vm1251_vm5, %v1258_v1, %v1260_v19  ;;  %v1264_v61 = vsel %vm1252_vm4, %v1246_v14, %v1263_v46  ;;  %v695_v10 = vsel %vm693_vm12, %v694_v26, %v5152_v41  ;;  %v1938_v50 = vsel %vm1936_vm13, %v5150_v4, %v691_v17 }
  0xe8   : > { %vm2348_vm6 = vcmp.eq.s32.totalorder %v5756_v54, 0  ;;  %v4867_v18 = vadd.s32 4294967294, %v870_v5  ;;  %v1265_v0 = vsel %vm1251_vm5, %v1262_v3, %v1264_v61  ;;  %v692_v15 = vsel %vm690_vm14, %v5150_v4, %v691_v17 }
  0xe9   : > { %v1942_v56 = vsel %vm1935_vm15, %v1938_v50, %v1941_v47  ;;  %vm2347_vm7 = vcmp.lt.s32.totalorder %v5756_v54, 2  ;;  %v5804_v14 = vmul.u32.u64.low %v1266_v13, %v1265_v0  ;;  %v5805_v63 = vmul.u32.u64.high %v1266_v13, %v1265_v0, %v5804_v14 }
  0xea   : > { %vm1102_vm8 = vweird.f32 %v5505_v59  ;;  %vm1105_vm9 = vcmp.lt.s32.totalorder %v5763_v12, 2  ;;  %v5811_v23 = vsel %vm686_vm0, nan, %v1942_v56  ;;  %vm2351_vm10 = vcmp.eq.s32.totalorder %v5756_v54, 2 }
  0xeb   : > { %vm4868_vm11 = vcmp.lt.s32.totalorder %v4867_v18, 0  ;;  %v858_v33 = vadd.s32 %v5701_v7, %v5707_v39  ;;  %v5816_v8 = vmul.u32.u64.low %v1266_v13, %v1261_v2  ;;  %v5817_v62 = vmul.u32.u64.high %v1266_v13, %v1261_v2, %v5816_v8 }
  0xec   : > { %v873_v32 = vsel %vm4868_vm11, 0, %v4867_v18  ;;  %v696_v16 = vsel %vm689_vm3, %v692_v15, %v695_v10  ;;  %v1257_v1 = vsel %vm1251_vm5, %v1254_v51, %v1256_v49  ;;  %v5154_v19 = vpop.eup %5153  ;;  %vm1106_vm12 = vcmp.eq.s32.totalorder %v5763_v12, 0 }
  0xed   : > { %v874_v4 = vsub.s32 32, %v873_v32  ;;  %v878_v43 = vsub.s32 4294967266, %v873_v32  ;;  %vm1109_vm13 = vcmp.eq.s32.totalorder %v5763_v12, 2  ;;  %v875_v7 = vshll.u32 %v5758_v25, %v873_v32  ;;  %v5156_v41 = vpop.eup %5155 }
  0xee   : > { %v888_v39 = vsub.s32 4, %v5738_v11  ;;  %v1110_v26 = vxor.u32 2147483648, %v5154_v19  ;;  %vm1275_vm14 = vc.u32 %v5805_v63, %v5816_v8  ;;  %v697_v20 = vsel %vm686_vm0, nan, %v696_v16 }
  0xef   : > { %v876_v3 = vshrl.u32 %v858_v33, %v874_v4  ;;  %v879_v46 = vadd.s32 127, %v878_v43  ;;  %v1107_v29 = vxor.u32 2147483648, %v5156_v41  ;;  %v1273_v17 = vmul.u32 %v1266_v13, %v1257_v1 }
  0xf0   : > { %v1276_v5 = vadd.s32 1, %v5817_v62  ;;  %v1111_v51 = vsel %vm1109_vm13, %v1110_v26, %v5156_v41  ;;  %v2353_v25 = vsel %vm2351_vm10, %v1110_v26, %v5156_v41  ;;  %v493_v58 = vand.u32 2139095040, %v5619_v9 }
  0xf1   : > { %v877_v47 = vor.u32 %v876_v3, %v875_v7  ;;  %v880_v49 = vshll.u32 %v879_v46, 23  ;;  %v1108_v2 = vsel %vm1106_vm12, %v5154_v19, %v1107_v29  ;;  %v2350_v61 = vsel %vm2348_vm6, %v5154_v19, %v1107_v29 }
  0xf2   : > { %v1277_v10 = vsel %vm1275_vm14, %v1276_v5, %v5817_v62  ;;  %v1112_v13 = vsel %vm1105_vm9, %v1108_v2, %v1111_v51  ;;  %v2354_v50 = vsel %vm2347_vm7, %v2350_v61, %v2353_v25  ;;  %vm804_vm15 = vcmp.lt.s32.totalorder %v5508_v60, 0 }
  0xf3   : > { %v881_v18 = vor.u32 4788187, %v880_v49  ;;  %v1113_v0 = vsel %vm1102_vm8, nan, %v1112_v13  ;;  %v5850_v15 = vsel %vm1102_vm8, nan, %v2354_v50  ;;  %v1278_v56 = vadd.s32 %v1277_v10, %v1273_v17 }
  0xf4   : > { %v494_v14 = vshrl.u32 %v493_v58, 23  ;;  %v3013_v33 = vpack.c.bf16 %v1113_v0, %v697_v20  ;;  %v884_v62 = vcvt.s32.f32 %v877_v47  ;;  %v490_v12 = vand.u32 2147483647, %v5619_v9 }
  0xf5   : > { %v882_v32 = vand.u32 2147483647, %v881_v18  ;;  %v889_v54 = vsel %vm804_vm15, %v888_v39, %v5738_v11  ;;  %v1279_v16 = vadd.s32 536870912, %v1278_v56  ;;  %v909_v1 = vand.u32 2139095040, %v5726_v22 }
  0xf6   : > { %v4853_v4 = vadd.s32 4294967169, %v494_v14  ;;  %3204 = vmatprep.subr.bf16.mxu0 %v3013_v33  ;;  %v381_v59 = vrot.slane %v5485_v48, %v5491_v52  ;;  %vm803_vm0 = vcmp.le.f32.partialorder %v802_v24, 0.7853982  ;;  %v497_v3 = vand.u32 8388607, %v490_v12 }
  0xf7   : > { %v885_v43 = vmul.f32 %v884_v62, %v882_v32  ;;  %v1280_v19 = vshrl.u32 %v1279_v16, 30  ;;  %v891_v26 = vsel %vm803_vm0, 0, %v889_v54  ;;  %v910_v39 = vshrl.u32 %v909_v1, 23 }
  0xf8   : > { %v500_v7 = vadd.s32 1, %v4853_v4  ;;  %v421_v46 = vrot.slane %v5485_v48, %v5494_v53  ;;  %v401_v24 = vrot.slane %v381_v59, %v5491_v52  ;;  %v895_v51 = vadd.s32 3, %v891_v26 }
  0xf9   : > { %v886_v41 = vxor.u32 2147483648, %v885_v43  ;;  %v1281_v11 = vshll.u32 %v1280_v19, 30  ;;  %v1304_v29 = vsub.s32 4, %v1280_v19  ;;  %v5871_v47 = vand.u32 3, %v891_v26 }
  0xfa   : > { %vm501_vm1 = vcmp.gt.s32.totalorder %v500_v7, 0  ;;  %v498_v49 = vor.u32 8388608, %v497_v3  ;;  %v906_v61 = vand.u32 2147483647, %v5726_v22  ;;  %vm1220_vm2 = vcmp.lt.s32.totalorder %v5522_v21, 0 }
  0xfb   : > { %v887_v20 = vsel %vm804_vm15, %v886_v41, %v885_v43  ;;  %v502_v17 = vsel %vm501_vm1, %v500_v7, 0  ;;  %v5869_v25 = vsub.s32 %v1278_v56, %v1281_v11  ;;  %v4869_v58 = vadd.s32 4294967169, %v910_v39 }
  0xfc   : > { %v890_v5 = vsel %vm803_vm0, %v5508_v60, %v887_v20  ;;  %v504_v2 = vand.u32 31, %v502_v17  ;;  %v1305_v52 = vsel %vm1220_vm2, %v1304_v29, %v1280_v19  ;;  %v5879_v50 = vmul.f32 %v401_v24, %v5499_v57 }
  0xfd   : > { %5157 = vcosq.f32 %v890_v5  ;;  %v1284_v10 = vsub.s32 0, %v5869_v25  ;;  %v5882_v18 = vrot.slane %v421_v46, %v5494_v53  ;;  %v5884_v0 = vand.u32 3, %v895_v51 }
  0xfe   : > { %5159 = vsinq.f32 %v890_v5  ;;  %v505_v13 = vsub.s32 32, %v504_v2  ;;  %vm5888_vm3 = vcmp.le.f32.partialorder %v1218_v6, 0.7853982  ;;  %v1274_v14 = vadd.s32 %v5816_v8, %v5805_v63 }
  0xff   : > { %v4882_v33 = vmin.u32 %v1284_v10, %v5869_v25  ;;  %vm2145_vm4 = vcmp.eq.s32.totalorder %v5871_v47, 2  ;;  %v5898_v62 = vshll.u32 %v498_v49, 8  ;;  %v5902_v54 = vand.u32 8388607, %v906_v61 }
 0x100   : > { %v508_v32 = vshrl.u32 %v5266_v34, %v505_v13  ;;  %v511_v53 = vshrl.u32 %v5267_v40, %v505_v13  ;;  %v5906_v16 = vsel %vm5888_vm3, 0, %v1305_v52  ;;  %vm2142_vm5 = vcmp.eq.s32.totalorder %v5871_v47, 0 }
 0x101   : > { %v1286_v6 = vclz %v4882_v33  ;;  %v503_v63 = vshrl.u32 %v502_v17, 5  ;;  %v916_v8 = vadd.s32 1, %v4869_v58  ;;  %vm2141_vm6 = vcmp.lt.s32.totalorder %v5871_v47, 2 }
 0x102   : > { %v507_v4 = vshll.u32 %v5265_v27, %v504_v2  ;;  %v510_v43 = vshll.u32 %v5266_v34, %v504_v2  ;;  %v513_v1 = vshll.u32 %v5267_v40, %v504_v2  ;;  %v514_v59 = vshrl.u32 %v5268_v42, %v505_v13 }
 0x103   : > { %vm894_vm7 = vweird.f32 %v5508_v60  ;;  %v4883_v19 = vadd.s32 4294967294, %v1286_v6  ;;  %v506_v7 = vshrl.u32 %v5265_v27, %v505_v13  ;;  %v516_v41 = vshll.u32 %v5268_v42, %v504_v2 }
 0x104   : > { %v517_v26 = vshrl.u32 %v5269_v44, %v505_v13  ;;  %v509_v3 = vor.u32 %v508_v32, %v507_v4  ;;  %v512_v11 = vor.u32 %v511_v53, %v510_v43  ;;  %v515_v39 = vor.u32 %v514_v59, %v513_v1 }
 0x105   : > { %v520_v46 = vshrl.u32 %v5270_v55, %v505_v13  ;;  %vm4884_vm8 = vcmp.lt.s32.totalorder %v4883_v19, 0  ;;  %v519_v29 = vshll.u32 %v5269_v44, %v504_v2  ;;  %vm522_vm9 = vcmp.lt.s32.totalorder %v503_v63, 1 }
 0x106   : > { %v518_v20 = vor.u32 %v517_v26, %v516_v41  ;;  %v1289_v24 = vsel %vm4884_vm8, 0, %v4883_v19  ;;  %vm523_vm10 = vcmp.lt.s32.totalorder %v503_v63, 2  ;;  %vm524_vm11 = vcmp.lt.s32.totalorder %v503_v63, 3 }
 0x107   : > { %v5920_v17 = vpop.eup %5157  ;;  %vm525_vm12 = vcmp.lt.s32.totalorder %v503_v63, 4  ;;  %v1290_v49 = vsub.s32 32, %v1289_v24  ;;  %v1294_v10 = vsub.s32 4294967266, %v1289_v24  ;;  %v521_v13 = vor.u32 %v520_v46, %v519_v29 }
 0x108   : > { %v5922_v5 = vpop.eup %5159  ;;  %v902_v51 = vxor.u32 2147483648, %v5920_v17  ;;  %v527_v58 = vsel %vm525_vm12, %v515_v39, 2102212464  ;;  %v530_v2 = vsel %vm522_vm9, %v509_v3, %v512_v11  ;;  %v531_v33 = vsel %vm525_vm12, %v518_v20, 920167782 }
 0x109   : > { %v899_v52 = vxor.u32 2147483648, %v5922_v5  ;;  %v1291_v32 = vshll.u32 %v5869_v25, %v1289_v24  ;;  %v1292_v53 = vshrl.u32 %v1274_v14, %v1290_v49  ;;  %v1295_v6 = vadd.s32 127, %v1294_v10 }
 0x10a   : > { %v2147_v4 = vsel %vm2145_vm4, %v902_v51, %v5922_v5  ;;  %v526_v1 = vsel %vm522_vm9, %v506_v7, %v509_v3  ;;  %v528_v59 = vsel %vm524_vm11, %v512_v11, %v527_v58  ;;  %v532_v25 = vsel %vm524_vm11, %v515_v39, %v531_v33 }
 0x10b   : > { %v2144_v43 = vsel %vm2142_vm5, %v5920_v17, %v899_v52  ;;  %v1293_v14 = vor.u32 %v1292_v53, %v1291_v32  ;;  %v1296_v19 = vshll.u32 %v1295_v6, 23  ;;  %v534_v26 = vsel %vm522_vm9, %v512_v11, %v515_v39 }
 0x10c   : > { %v2148_v41 = vsel %vm2141_vm6, %v2144_v43, %v2147_v4  ;;  %v1311_v46 = vadd.s32 3, %v5906_v16  ;;  %v533_v24 = vsel %vm523_vm10, %v530_v2, %v532_v25  ;;  %v535_v7 = vsel %vm525_vm12, %v521_v13, 1326507024 }
 0x10d   : > { %v5949_v29 = vsel %vm894_vm7, nan, %v2148_v41  ;;  %v1297_v3 = vor.u32 4788187, %v1296_v19  ;;  %v1300_v49 = vcvt.s32.f32 %v1293_v14  ;;  %v529_v10 = vsel %vm523_vm10, %v526_v1, %v528_v59 }
 0x10e   : > { %v536_v58 = vsel %vm524_vm11, %v518_v20, %v535_v7  ;;  %v5957_v11 = vmul.u32.u64.low %v5898_v62, %v533_v24  ;;  %v5958_v39 = vmul.u32.u64.high %v5898_v62, %v533_v24, %v5957_v11  ;;  %vm917_vm13 = vcmp.gt.s32.totalorder %v916_v8, 0 }
 0x10f   : > { %v537_v47 = vsel %vm523_vm10, %v534_v26, %v536_v58  ;;  %v1298_v33 = vand.u32 2147483647, %v1297_v3  ;;  %v918_v13 = vsel %vm917_vm13, %v916_v8, 0  ;;  %vm898_vm14 = vcmp.eq.s32.totalorder %v5884_v0, 0 }
 0x110   : > { %v5962_v32 = vmul.u32.u64.low %v5898_v62, %v537_v47  ;;  %v5963_v2 = vmul.u32.u64.high %v5898_v62, %v537_v47, %v5962_v32  ;;  %vm901_vm15 = vcmp.eq.s32.totalorder %v5884_v0, 2  ;;  %v920_v53 = vand.u32 31, %v918_v13 }
 0x111   : > { %v5969_v63 = vmul.f32 %v5882_v18, %v5499_v57  ;;  %v1301_v20 = vmul.f32 %v1300_v49, %v1298_v33  ;;  %v5971_v6 = vand.u32 3, %v1311_v46  ;;  %v5974_v4 = vand.u32 3, %v5906_v16 }
 0x112   : > { %v914_v43 = vor.u32 8388608, %v5902_v54  ;;  %v545_v1 = vmul.u32 %v5898_v62, %v529_v10  ;;  %v548_v8 = vadd.s32 1, %v5958_v39  ;;  %v5979_v59 = vshrl.u32 %v918_v13, 5 }
 0x113   : > { %v921_v25 = vsub.s32 32, %v920_v53  ;;  %v1302_v14 = vxor.u32 2147483648, %v1301_v20  ;;  %vm547_vm0 = vc.u32 %v5963_v2, %v5957_v11  ;;  %v923_v18 = vshll.u32 %v5265_v27, %v920_v53 }
 0x114   : > { %v926_v19 = vshll.u32 %v5266_v34, %v920_v53  ;;  %v549_v16 = vsel %vm547_vm0, %v548_v8, %v5958_v39  ;;  %v929_v62 = vshll.u32 %v5267_v40, %v920_v53  ;;  %v932_v7 = vshll.u32 %v5268_v42, %v920_v53 }
 0x115   : > { %v924_v41 = vshrl.u32 %v5266_v34, %v921_v25  ;;  %v927_v54 = vshrl.u32 %v5267_v40, %v921_v25  ;;  %v1303_v26 = vsel %vm1220_vm2, %v1302_v14, %v1301_v20  ;;  %v550_v46 = vadd.s32 %v549_v16, %v545_v1 }
 0x116   : > { %v930_v24 = vshrl.u32 %v5268_v42, %v921_v25  ;;  %v1306_v3 = vsel %vm5888_vm3, %v5522_v21, %v1303_v26  ;;  %v933_v58 = vshrl.u32 %v5269_v44, %v921_v25  ;;  %vm897_vm1 = vcmp.lt.s32.totalorder %v5884_v0, 2 }
 0x117   : > { %v925_v49 = vor.u32 %v924_v41, %v923_v18  ;;  %v928_v10 = vor.u32 %v927_v54, %v926_v19  ;;  %v903_v47 = vsel %vm901_vm15, %v902_v51, %v5922_v5  ;;  %5161 = vcosq.f32 %v1306_v3 }
 0x118   : > { %v551_v39 = vadd.s32 536870912, %v550_v46  ;;  %v931_v33 = vor.u32 %v930_v24, %v929_v62  ;;  %5163 = vsinq.f32 %v1306_v3  ;;  %v934_v32 = vor.u32 %v933_v58, %v932_v7 }
 0x119   : > { %v935_v56 = vshll.u32 %v5269_v44, %v920_v53  ;;  %v936_v13 = vshrl.u32 %v5270_v55, %v921_v25  ;;  %v900_v20 = vsel %vm898_vm14, %v5920_v17, %v899_v52  ;;  %vm938_vm2 = vcmp.lt.s32.totalorder %v5979_v59, 1 }
 0x11a   : > { %v552_v1 = vshrl.u32 %v551_v39, 30  ;;  %v954_v8 = vshll.u32 %v914_v43, 8  ;;  %v922_v51 = vshrl.u32 %v5265_v27, %v921_v25  ;;  %vm941_vm3 = vcmp.lt.s32.totalorder %v5979_v59, 4 }
 0x11b   : > { %v937_v14 = vor.u32 %v936_v13, %v935_v56  ;;  %v946_v53 = vsel %vm938_vm2, %v925_v49, %v928_v10  ;;  %vm940_vm4 = vcmp.lt.s32.totalorder %v5979_v59, 3  ;;  %v943_v5 = vsel %vm941_vm3, %v931_v33, 2102212464 }
 0x11c   : > { %v553_v18 = vshll.u32 %v552_v1, 30  ;;  %v947_v19 = vsel %vm941_vm3, %v934_v32, 920167782  ;;  %vm939_vm5 = vcmp.lt.s32.totalorder %v5979_v59, 2  ;;  %v950_v52 = vsel %vm938_vm2, %v928_v10, %v931_v33 }
 0x11d   : > { %v948_v17 = vsel %vm940_vm4, %v931_v33, %v947_v19  ;;  %v951_v43 = vsel %vm941_vm3, %v937_v14, 1326507024  ;;  %vm492_vm6 = vcmp.lt.s32.totalorder %v5619_v9, 0  ;;  %v942_v16 = vsel %vm938_vm2, %v922_v51, %v925_v49 }
 0x11e   : > { %v6020_v25 = vsub.s32 %v550_v46, %v553_v18  ;;  %v949_v41 = vsel %vm939_vm5, %v946_v53, %v948_v17  ;;  %v952_v54 = vsel %vm940_vm4, %v934_v32, %v951_v43  ;;  %vm1310_vm8 = vweird.f32 %v5522_v21 }
 0x11f   : > { %v944_v62 = vsel %vm940_vm4, %v928_v10, %v943_v5  ;;  %v953_v26 = vsel %vm939_vm5, %v950_v52, %v952_v54  ;;  %v6029_v24 = vmul.u32.u64.low %v954_v8, %v949_v41  ;;  %v6030_v7 = vmul.u32.u64.high %v954_v8, %v949_v41, %v6029_v24 }
 0x120   : > { %v556_v46 = vsub.s32 0, %v6020_v25  ;;  %v6034_v3 = vmul.u32.u64.low %v954_v8, %v953_v26  ;;  %v6035_v58 = vmul.u32.u64.high %v954_v8, %v953_v26, %v6034_v3  ;;  %v698_v49 = vand.u32 2147483647, %v5879_v50 }
 0x121   : > { %v904_v39 = vsel %vm897_vm1, %v900_v20, %v903_v47  ;;  %vm2553_vm9 = vcmp.lt.s32.totalorder %v5974_v4, 2  ;;  %vm2554_vm10 = vcmp.eq.s32.totalorder %v5974_v4, 0  ;;  %v701_v10 = vand.u32 2139095040, %v5879_v50  ;;  %v5162_v33 = vpop.eup %5161 }
 0x122   : > { %vm1313_vm11 = vcmp.lt.s32.totalorder %v5971_v6, 2  ;;  %vm2557_vm12 = vcmp.eq.s32.totalorder %v5974_v4, 2  ;;  %v4854_v32 = vmin.u32 %v556_v46, %v6020_v25  ;;  %v945_v56 = vsel %vm939_vm5, %v942_v16, %v944_v62  ;;  %v5164_v13 = vpop.eup %5163 }
 0x123   : > { %vm1314_vm13 = vcmp.eq.s32.totalorder %v5971_v6, 0  ;;  %v1318_v0 = vxor.u32 2147483648, %v5162_v33  ;;  %v576_v47 = vsub.s32 4, %v552_v1  ;;  %v964_v20 = vadd.s32 1, %v6030_v7 }
 0x124   : > { %v905_v51 = vsel %vm894_vm7, nan, %v904_v39  ;;  %v1315_v14 = vxor.u32 2147483648, %v5164_v13  ;;  %vm1317_vm14 = vcmp.eq.s32.totalorder %v5971_v6, 2  ;;  %v558_v53 = vclz %v4854_v32 }
 0x125   : > { %v1319_v18 = vsel %vm1317_vm14, %v1318_v0, %v5164_v13  ;;  %v2559_v5 = vsel %vm2557_vm12, %v1318_v0, %v5164_v13  ;;  %v961_v19 = vmul.u32 %v954_v8, %v945_v56  ;;  %v702_v17 = vshrl.u32 %v701_v10, 23 }
 0x126   : > { %v1316_v59 = vsel %vm1314_vm13, %v5162_v33, %v1315_v14  ;;  %v2556_v52 = vsel %vm2554_vm10, %v5162_v33, %v1315_v14  ;;  %v4855_v43 = vadd.s32 4294967294, %v558_v53  ;;  %vm963_vm15 = vc.u32 %v6035_v58, %v6029_v24 }
 0x127   : > { %v1320_v60 = vsel %vm1313_vm11, %v1316_v59, %v1319_v18  ;;  %v2560_v16 = vsel %vm2553_vm9, %v2556_v52, %v2559_v5  ;;  %v577_v41 = vsel %vm492_vm6, %v576_v47, %v552_v1  ;;  %v965_v8 = vsel %vm963_vm15, %v964_v20, %v6030_v7 }
 0x128   : > { %v1321_v54 = vsel %vm1310_vm8, nan, %v1320_v60  ;;  %v6068_v62 = vsel %vm1310_vm8, nan, %v2560_v16  ;;  %vm4856_vm7 = vcmp.lt.s32.totalorder %v4855_v43, 0  ;;  %v966_v26 = vadd.s32 %v965_v8, %v961_v19 }
 0x129   : > { %v3015_v46 = vpack.c.bf16 %v1321_v54, %v905_v51  ;;  %vm6072_vm0 = vcmp.le.f32.partialorder %v490_v12, 0.7853982  ;;  %v561_v4 = vsel %vm4856_vm7, 0, %v4855_v43  ;;  %v4861_v1 = vadd.s32 4294967169, %v702_v17 }
 0x12a   : > { %v546_v7 = vadd.s32 %v5957_v11, %v5963_v2  ;;  %v562_v3 = vsub.s32 32, %v561_v4  ;;  %v566_v39 = vsub.s32 4294967266, %v561_v4  ;;  %v967_v10 = vadd.s32 536870912, %v966_v26 }
 0x12b   : > { %3317 = vmatprep.subr.bf16.mxu1 %v3015_v46  ;;  %v579_v21 = vsel %vm6072_vm0, 0, %v577_v41  ;;  %v705_v33 = vand.u32 8388607, %v698_v49  ;;  %v708_v32 = vadd.s32 1, %v4861_v1  ;;  %v563_v12 = vshll.u32 %v6020_v25, %v561_v4 }
 0x12c   : > { %v564_v56 = vshrl.u32 %v546_v7, %v562_v3  ;;  %v567_v13 = vadd.s32 127, %v566_v39  ;;  %v968_v0 = vshrl.u32 %v967_v10, 30  ;;  %v1117_v47 = vand.u32 2139095040, %v5969_v63 }
 0x12d   : > { %vm709_vm1 = vcmp.gt.s32.totalorder %v708_v32, 0  ;;  %v583_v51 = vadd.s32 3, %v579_v21  ;;  %v706_v5 = vor.u32 8388608, %v705_v33  ;;  %vm908_vm2 = vcmp.lt.s32.totalorder %v5726_v22, 0 }
 0x12e   : > { %v565_v11 = vor.u32 %v564_v56, %v563_v12  ;;  %v568_v2 = vshll.u32 %v567_v13, 23  ;;  %v969_v20 = vshll.u32 %v968_v0, 30  ;;  %v710_v14 = vsel %vm709_vm1, %v708_v32, 0 }
 0x12f   : > { %v992_v19 = vsub.s32 4, %v968_v0  ;;  %v712_v17 = vand.u32 31, %v710_v14  ;;  %v1118_v59 = vshrl.u32 %v1117_v47, 23  ;;  %v6088_v60 = vand.u32 3, %v583_v51 }
 0x130   : > { %v569_v53 = vor.u32 4788187, %v568_v2  ;;  %v6084_v18 = vsub.s32 %v966_v26, %v969_v20  ;;  %v572_v25 = vcvt.s32.f32 %v565_v11  ;;  %v6090_v16 = vand.u32 3, %v579_v21 }
 0x131   : > { %v713_v41 = vsub.s32 32, %v712_v17  ;;  %v1114_v8 = vand.u32 2147483647, %v5969_v63  ;;  %v962_v26 = vadd.s32 %v6029_v24, %v6035_v58  ;;  %v6096_v4 = vshll.u32 %v706_v5, 8 }
 0x132   : > { %v570_v52 = vand.u32 2147483647, %v569_v53  ;;  %v972_v43 = vsub.s32 0, %v6084_v18  ;;  %v993_v1 = vsel %vm908_vm2, %v992_v19, %v968_v0  ;;  %v715_v7 = vshll.u32 %v5265_v27, %v712_v17 }
 0x133   : > { %v716_v3 = vshrl.u32 %v5266_v34, %v713_v41  ;;  %v4877_v39 = vadd.s32 4294967169, %v1118_v59  ;;  %v711_v33 = vshrl.u32 %v710_v14, 5  ;;  %v718_v32 = vshll.u32 %v5266_v34, %v712_v17 }
 0x134   : > { %v573_v54 = vmul.f32 %v572_v25, %v570_v52  ;;  %v4870_v46 = vmin.u32 %v972_v43, %v6084_v18  ;;  %v719_v24 = vshrl.u32 %v5267_v40, %v713_v41  ;;  %v721_v58 = vshll.u32 %v5267_v40, %v712_v17 }
 0x135   : > { %v717_v12 = vor.u32 %v716_v3, %v715_v7  ;;  %v722_v56 = vshrl.u32 %v5268_v42, %v713_v41  ;;  %v724_v47 = vshll.u32 %v5268_v42, %v712_v17  ;;  %v725_v11 = vshrl.u32 %v5269_v44, %v713_v41 }
 0x136   : > { %v574_v10 = vxor.u32 2147483648, %v573_v54  ;;  %v974_v21 = vclz %v4870_v46  ;;  %vm6115_vm3 = vcmp.le.f32.partialorder %v906_v61, 0.7853982  ;;  %v720_v51 = vor.u32 %v719_v24, %v718_v32 }
 0x137   : > { %v723_v14 = vor.u32 %v722_v56, %v721_v58  ;;  %v727_v53 = vshll.u32 %v5269_v44, %v712_v17  ;;  %v726_v5 = vor.u32 %v725_v11, %v724_v47  ;;  %v728_v19 = vshrl.u32 %v5270_v55, %v713_v41 }
 0x138   : > { %v575_v13 = vsel %vm492_vm6, %v574_v10, %v573_v54  ;;  %v4871_v0 = vadd.s32 4294967294, %v974_v21  ;;  %v714_v6 = vshrl.u32 %v5265_v27, %v713_v41  ;;  %v1124_v52 = vadd.s32 1, %v4877_v39 }
 0x139   : > { %v578_v2 = vsel %vm6072_vm0, %v5619_v9, %v575_v13  ;;  %v729_v61 = vor.u32 %v728_v19, %v727_v53  ;;  %vm730_vm5 = vcmp.lt.s32.totalorder %v711_v33, 1  ;;  %vm732_vm6 = vcmp.lt.s32.totalorder %v711_v33, 3 }
 0x13a   : > { %5165 = vcosq.f32 %v578_v2  ;;  %vm4872_vm4 = vcmp.lt.s32.totalorder %v4871_v0, 0  ;;  %vm733_vm8 = vcmp.lt.s32.totalorder %v711_v33, 4  ;;  %v738_v17 = vsel %vm730_vm5, %v717_v12, %v720_v51 }
 0x13b   : > { %5167 = vsinq.f32 %v578_v2  ;;  %v977_v59 = vsel %vm4872_vm4, 0, %v4871_v0  ;;  %v735_v3 = vsel %vm733_vm8, %v723_v14, 2102212464  ;;  %v739_v10 = vsel %vm733_vm8, %v726_v5, 920167782 }
 0x13c   : > { %v978_v25 = vsub.s32 32, %v977_v59  ;;  %v982_v43 = vsub.s32 4294967266, %v977_v59  ;;  %v979_v54 = vshll.u32 %v6084_v18, %v977_v59  ;;  %vm731_vm9 = vcmp.lt.s32.totalorder %v711_v33, 2 }
 0x13d   : > { %v740_v21 = vsel %vm732_vm6, %v723_v14, %v739_v10  ;;  %v742_v41 = vsel %vm730_vm5, %v720_v51, %v723_v14  ;;  %v743_v39 = vsel %vm733_vm8, %v729_v61, 1326507024  ;;  %vm1832_vm10 = vcmp.lt.s32.totalorder %v6090_v16, 2 }
 0x13e   : > { %v980_v46 = vshrl.u32 %v962_v26, %v978_v25  ;;  %v983_v7 = vadd.s32 127, %v982_v43  ;;  %v734_v18 = vsel %vm730_vm5, %v714_v6, %v717_v12  ;;  %v741_v58 = vsel %vm731_vm9, %v738_v17, %v740_v21 }
 0x13f   : > { %vm582_vm11 = vweird.f32 %v5619_v9  ;;  %v736_v26 = vsel %vm732_vm6, %v720_v51, %v735_v3  ;;  %v744_v56 = vsel %vm732_vm6, %v726_v5, %v743_v39  ;;  %v995_v11 = vsel %vm6115_vm3, 0, %v993_v1 }
 0x140   : > { %v981_v32 = vor.u32 %v980_v46, %v979_v54  ;;  %v984_v24 = vshll.u32 %v983_v7, 23  ;;  %v6133_v13 = vmul.u32.u64.low %v6096_v4, %v741_v58  ;;  %v6134_v0 = vmul.u32.u64.high %v6096_v4, %v741_v58, %v6133_v13 }
 0x141   : > { %v745_v2 = vsel %vm731_vm9, %v742_v41, %v744_v56  ;;  %vm1125_vm12 = vcmp.gt.s32.totalorder %v1124_v52, 0  ;;  %v1121_v51 = vand.u32 8388607, %v1114_v8  ;;  %v737_v6 = vsel %vm731_vm9, %v734_v18, %v736_v26 }
 0x142   : > { %v985_v47 = vor.u32 4788187, %v984_v24  ;;  %v6141_v12 = vmul.u32.u64.low %v6096_v4, %v745_v2  ;;  %v6142_v14 = vmul.u32.u64.high %v6096_v4, %v745_v2, %v6141_v12  ;;  %v1126_v53 = vsel %vm1125_vm12, %v1124_v52, 0 }
 0x143   : > { %v988_v59 = vcvt.s32.f32 %v981_v32  ;;  %v1128_v25 = vand.u32 31, %v1126_v53  ;;  %v999_v61 = vadd.s32 3, %v995_v11  ;;  %vm1833_vm13 = vcmp.eq.s32.totalorder %v6090_v16, 0 }
 0x144   : > { %v6146_v5 = vpop.eup %5165  ;;  %v986_v19 = vand.u32 2147483647, %v985_v47  ;;  %v756_v54 = vadd.s32 1, %v6134_v0  ;;  %vm1836_vm14 = vcmp.eq.s32.totalorder %v6090_v16, 2  ;;  %v753_v7 = vmul.u32 %v6096_v4, %v737_v6 }
 0x145   : > { %v6149_v43 = vpop.eup %5167  ;;  %v590_v1 = vxor.u32 2147483648, %v6146_v5  ;;  %v6156_v52 = vsub.s32 32, %v1128_v25  ;;  %vm755_vm15 = vc.u32 %v6142_v14, %v6133_v13  ;;  %v1122_v3 = vor.u32 8388608, %v1121_v51 }
 0x146   : > { %v587_v17 = vxor.u32 2147483648, %v6149_v43  ;;  %v989_v46 = vmul.f32 %v988_v59, %v986_v19  ;;  %v757_v41 = vsel %vm755_vm15, %v756_v54, %v6134_v0  ;;  %v457_v39 = vrot.slane %v5481_v45, %v5459_v31 }
 0x147   : > { %v1838_v33 = vsel %vm1836_vm14, %v590_v1, %v6149_v43  ;;  %v6166_v32 = vand.u32 3, %v999_v61  ;;  %v6170_v18 = vand.u32 3, %v995_v11  ;;  %v758_v4 = vadd.s32 %v757_v41, %v753_v7 }
 0x148   : > { %v990_v10 = vxor.u32 2147483648, %v989_v46  ;;  %v1835_v21 = vsel %vm1833_vm13, %v6146_v5, %v587_v17  ;;  %vm586_vm7 = vcmp.eq.s32.totalorder %v6088_v60, 0  ;;  %v1131_v56 = vshll.u32 %v5265_v27, %v1128_v25 }
 0x149   : > { %v1839_v24 = vsel %vm1832_vm10, %v1835_v21, %v1838_v33  ;;  %v1132_v0 = vshrl.u32 %v5266_v34, %v6156_v52  ;;  %v759_v47 = vadd.s32 536870912, %v758_v4  ;;  %v1134_v11 = vshll.u32 %v5266_v34, %v1128_v25 }
 0x14a   : > { %v991_v58 = vsel %vm908_vm2, %v990_v10, %v989_v46  ;;  %v6177_v26 = vsel %vm582_vm11, nan, %v1839_v24  ;;  %v1135_v2 = vshrl.u32 %v5267_v40, %v6156_v52  ;;  %v6188_v12 = vshrl.u32 %v1126_v53, 5 }
 0x14b   : > { %v994_v16 = vsel %vm6115_vm3, %v5726_v22, %v991_v58  ;;  %v1133_v51 = vor.u32 %v1132_v0, %v1131_v56  ;;  %v1138_v19 = vshrl.u32 %v5268_v42, %v6156_v52  ;;  %vm585_vm0 = vcmp.lt.s32.totalorder %v6088_v60, 2 }
 0x14c   : > { %5169 = vcosq.f32 %v994_v16  ;;  %v6193_v59 = vshrl.u32 %v759_v47, 30  ;;  %v1136_v20 = vor.u32 %v1135_v2, %v1134_v11  ;;  %v1137_v6 = vshll.u32 %v5267_v40, %v1128_v25 }
 0x14d   : > { %5171 = vsinq.f32 %v994_v16  ;;  %v1140_v61 = vshll.u32 %v5268_v42, %v1128_v25  ;;  %v1141_v54 = vshrl.u32 %v5269_v44, %v6156_v52  ;;  %v1143_v53 = vshll.u32 %v5269_v44, %v1128_v25 }
 0x14e   : > { %v1144_v46 = vshrl.u32 %v5270_v55, %v6156_v52  ;;  %vm589_vm1 = vcmp.eq.s32.totalorder %v6088_v60, 2  ;;  %v761_v33 = vshll.u32 %v6193_v59, 30  ;;  %v1139_v7 = vor.u32 %v1138_v19, %v1137_v6 }
 0x14f   : > { %v6204_v10 = vshll.u32 %v1122_v3, 8  ;;  %vm2248_vm2 = vcmp.eq.s32.totalorder %v6170_v18, 2  ;;  %v1142_v21 = vor.u32 %v1141_v54, %v1140_v61  ;;  %v477_v24 = vrot.slane %v457_v39, %v5456_v30 }
 0x150   : > { %v1145_v41 = vor.u32 %v1144_v46, %v1143_v53  ;;  %vm1002_vm3 = vcmp.eq.s32.totalorder %v6166_v32, 0  ;;  %vm1005_vm4 = vcmp.eq.s32.totalorder %v6166_v32, 2  ;;  %vm2245_vm5 = vcmp.eq.s32.totalorder %v6170_v18, 0 }
 0x151   : > { %v6211_v25 = vsub.s32 %v758_v4, %v761_v33  ;;  %vm1146_vm6 = vcmp.lt.s32.totalorder %v6188_v12, 1  ;;  %vm1149_vm8 = vcmp.lt.s32.totalorder %v6188_v12, 4  ;;  %v591_v3 = vsel %vm589_vm1, %v590_v1, %v6149_v43 }
 0x152   : > { %vm1001_vm9 = vcmp.lt.s32.totalorder %v6166_v32, 2  ;;  %vm2244_vm10 = vcmp.lt.s32.totalorder %v6170_v18, 2  ;;  %vm1148_vm12 = vcmp.lt.s32.totalorder %v6188_v12, 3  ;;  %v1154_v39 = vsel %vm1146_vm6, %v1133_v51, %v1136_v20 }
 0x153   : > { %v1155_v58 = vsel %vm1149_vm8, %v1142_v21, 920167782  ;;  %v588_v4 = vsel %vm586_vm7, %v6146_v5, %v587_v17  ;;  %vm998_vm13 = vweird.f32 %v5726_v22  ;;  %v764_v56 = vsub.s32 0, %v6211_v25 }
 0x154   : > { %vm1147_vm14 = vcmp.lt.s32.totalorder %v6188_v12, 2  ;;  %v1156_v43 = vsel %vm1148_vm12, %v1139_v7, %v1155_v58  ;;  %v1151_v1 = vsel %vm1149_vm8, %v1139_v7, 2102212464  ;;  %v1158_v16 = vsel %vm1146_vm6, %v1136_v20, %v1139_v7 }
 0x155   : > { %v1157_v0 = vsel %vm1147_vm14, %v1154_v39, %v1156_v43  ;;  %v1159_v47 = vsel %vm1149_vm8, %v1145_v41, 1326507024  ;;  %v4862_v11 = vmin.u32 %v764_v56, %v6211_v25  ;;  %v1130_v5 = vshrl.u32 %v5265_v27, %v6156_v52 }
 0x156   : > { %v1160_v17 = vsel %vm1148_vm12, %v1142_v21, %v1159_v47  ;;  %v6239_v2 = vmul.f32 %v477_v24, %v5499_v57  ;;  %v5170_v19 = vpop.eup %5169  ;;  %v592_v6 = vsel %vm585_vm0, %v588_v4, %v591_v3  ;;  %vm700_vm15 = vcmp.lt.s32.totalorder %v5879_v50, 0 }
 0x157   : > { %v1161_v61 = vsel %vm1147_vm14, %v1158_v16, %v1160_v17  ;;  %v6246_v54 = vmul.u32.u64.low %v6204_v10, %v1157_v0  ;;  %v6247_v53 = vmul.u32.u64.high %v6204_v10, %v1157_v0, %v6246_v54  ;;  %v5172_v46 = vpop.eup %5171  ;;  %v1006_v52 = vxor.u32 2147483648, %v5170_v19 }
 0x158   : > { %v766_v33 = vclz %v4862_v11  ;;  %v1150_v7 = vsel %vm1146_vm6, %v1130_v5, %v1133_v51  ;;  %v1152_v60 = vsel %vm1148_vm12, %v1136_v20, %v1151_v1  ;;  %v1003_v21 = vxor.u32 2147483648, %v5172_v46 }
 0x159   : > { %v6256_v41 = vmul.u32.u64.low %v6204_v10, %v1161_v61  ;;  %v6257_v24 = vmul.u32.u64.high %v6204_v10, %v1161_v61, %v6256_v41  ;;  %v465_v3 = vrot.slane %v5485_v48, %v5459_v31  ;;  %v1007_v39 = vsel %vm1005_vm4, %v1006_v52, %v5172_v46 }
 0x15a   : > { %v2250_v58 = vsel %vm2248_vm2, %v1006_v52, %v5172_v46  ;;  %v4863_v4 = vadd.s32 4294967294, %v766_v33  ;;  %v1426_v51 = vand.u32 2147483647, %v6239_v2  ;;  %v593_v20 = vsel %vm582_vm11, nan, %v592_v6 }
 0x15b   : > { %v1004_v56 = vsel %vm1002_vm3, %v5170_v19, %v1003_v21  ;;  %v2247_v43 = vsel %vm2245_vm5, %v5170_v19, %v1003_v21  ;;  %v1153_v31 = vsel %vm1147_vm14, %v1150_v7, %v1152_v60  ;;  %v1172_v16 = vadd.s32 1, %v6247_v53 }
 0x15c   : > { %v1008_v1 = vsel %vm1001_vm9, %v1004_v56, %v1007_v39  ;;  %v2251_v0 = vsel %vm2244_vm10, %v2247_v43, %v2250_v58  ;;  %vm4864_vm7 = vcmp.lt.s32.totalorder %v4863_v4, 0  ;;  %v784_v12 = vsub.s32 4, %v6193_v59 }
 0x15d   : > { %v1009_v9 = vsel %vm998_vm13, nan, %v1008_v1  ;;  %v6283_v47 = vsel %vm998_vm13, nan, %v2251_v0  ;;  %v769_v11 = vsel %vm4864_vm7, 0, %v4863_v4  ;;  %v754_v32 = vadd.s32 %v6133_v13, %v6142_v14 }
 0x15e   : > { %v3012_v5 = vpack.c.bf16 %v1009_v9, %v593_v20  ;;  %v770_v17 = vsub.s32 32, %v769_v11  ;;  %v774_v18 = vsub.s32 4294967266, %v769_v11  ;;  %v771_v19 = vshll.u32 %v6211_v25, %v769_v11 }
 0x15f   : > { %v1169_v6 = vmul.u32 %v6204_v10, %v1153_v31  ;;  %vm1171_vm11 = vc.u32 %v6257_v24, %v6246_v54  ;;  %v1429_v22 = vand.u32 2139095040, %v6239_v2  ;;  %v485_v33 = vrot.slane %v465_v3, %v5456_v30 }
 0x160   : > { %3205 = vmatpush1.bf16.msra.mxu0 %v3012_v5  ;;  %v772_v61 = vshrl.u32 %v754_v32, %v770_v17  ;;  %v775_v46 = vadd.s32 127, %v774_v18  ;;  %v1173_v52 = vsel %vm1171_vm11, %v1172_v16, %v6247_v53  ;;  %v785_v13 = vsel %vm700_vm15, %v784_v12, %v6193_v59 }
 0x161   : > { %v1174_v14 = vadd.s32 %v1173_v52, %v1169_v6  ;;  %v1430_v25 = vshrl.u32 %v1429_v22, 23  ;;  %v6299_v60 = vmul.f32 %v485_v33, %v5499_v57  ;;  %vm6303_vm0 = vcmp.le.f32.partialorder %v698_v49, 0.7853982 }
 0x162   : > { %v773_v7 = vor.u32 %v772_v61, %v771_v19  ;;  %v776_v10 = vshll.u32 %v775_v46, 23  ;;  %v787_v39 = vsel %vm6303_vm0, 0, %v785_v13  ;;  %v1433_v59 = vand.u32 8388607, %v1426_v51 }
 0x163   : > { %v1175_v53 = vadd.s32 536870912, %v1174_v14  ;;  %v4889_v41 = vadd.s32 4294967169, %v1430_v25  ;;  %v1637_v43 = vand.u32 2139095040, %v6299_v60  ;;  %v791_v31 = vadd.s32 3, %v787_v39 }
 0x164   : > { %v777_v3 = vor.u32 4788187, %v776_v10  ;;  %v780_v56 = vcvt.s32.f32 %v773_v7  ;;  %v1434_v0 = vor.u32 8388608, %v1433_v59  ;;  %v453_v12 = vrot.slane %v5481_v45, %v5456_v30 }
 0x165   : > { %v1176_v58 = vshrl.u32 %v1175_v53, 30  ;;  %v1436_v4 = vadd.s32 1, %v4889_v41  ;;  %v1638_v17 = vshrl.u32 %v1637_v43, 23  ;;  %v6316_v18 = vand.u32 3, %v791_v31 }
 0x166   : > { %v778_v20 = vand.u32 2147483647, %v777_v3  ;;  %vm1116_vm2 = vcmp.lt.s32.totalorder %v5969_v63, 0  ;;  %v6320_v6 = vand.u32 3, %v787_v39  ;;  %v1170_v61 = vadd.s32 %v6246_v54, %v6257_v24 }
 0x167   : > { %v1177_v49 = vshll.u32 %v1176_v58, 30  ;;  %vm1437_vm1 = vcmp.gt.s32.totalorder %v1436_v4, 0  ;;  %v1200_v32 = vsub.s32 4, %v1176_v58  ;;  %v6326_v52 = vshll.u32 %v1434_v0, 8 }
 0x168   : > { %v781_v1 = vmul.f32 %v780_v56, %v778_v20  ;;  %v1438_v16 = vsel %vm1437_vm1, %v1436_v4, 0  ;;  %v1634_v13 = vand.u32 2147483647, %v6299_v60  ;;  %v4897_v24 = vadd.s32 4294967169, %v1638_v17 }
 0x169   : > { %v6312_v9 = vsub.s32 %v1174_v14, %v1177_v49  ;;  %v1440_v11 = vand.u32 31, %v1438_v16  ;;  %v6334_v14 = vrot.slane %v453_v12, %v5456_v30  ;;  %v6338_v25 = vsel %vm1116_vm2, %v1200_v32, %v1176_v58 }
 0x16a   : > { %v782_v5 = vxor.u32 2147483648, %v781_v1  ;;  %v6340_v54 = vshrl.u32 %v1438_v16, 5  ;;  %vm2042_vm3 = vcmp.eq.s32.totalorder %v6320_v6, 2  ;;  %vm6355_vm4 = vcmp.le.f32.partialorder %v1114_v8, 0.7853982 }
 0x16b   : > { %v1180_v19 = vsub.s32 0, %v6312_v9  ;;  %v1441_v46 = vsub.s32 32, %v1440_v11  ;;  %v1443_v10 = vshll.u32 %v5265_v27, %v1440_v11  ;;  %v1446_v21 = vshll.u32 %v5266_v34, %v1440_v11 }
 0x16c   : > { %v783_v22 = vsel %vm700_vm15, %v782_v5, %v781_v1  ;;  %v1449_v3 = vshll.u32 %v5267_v40, %v1440_v11  ;;  %v1452_v58 = vshll.u32 %v5268_v42, %v1440_v11  ;;  %v1455_v20 = vshll.u32 %v5269_v44, %v1440_v11 }
 0x16d   : > { %v786_v45 = vsel %vm6303_vm0, %v5879_v50, %v783_v22  ;;  %v4878_v33 = vmin.u32 %v1180_v19, %v6312_v9  ;;  %v1444_v53 = vshrl.u32 %v5266_v34, %v1441_v46  ;;  %v1447_v41 = vshrl.u32 %v5267_v40, %v1441_v46 }
 0x16e   : > { %5173 = vcosq.f32 %v786_v45  ;;  %v1450_v39 = vshrl.u32 %v5268_v42, %v1441_v46  ;;  %v1453_v4 = vshrl.u32 %v5269_v44, %v1441_v46  ;;  %v1456_v49 = vshrl.u32 %v5270_v55, %v1441_v46 }
 0x16f   : > { %5175 = vsinq.f32 %v786_v45  ;;  %v1182_v7 = vclz %v4878_v33  ;;  %v1445_v56 = vor.u32 %v1444_v53, %v1443_v10  ;;  %v1448_v43 = vor.u32 %v1447_v41, %v1446_v21 }
 0x170   : > { %v1451_v31 = vor.u32 %v1450_v39, %v1449_v3  ;;  %vm2039_vm6 = vcmp.eq.s32.totalorder %v6320_v6, 0  ;;  %v1442_v0 = vshrl.u32 %v5265_v27, %v1441_v46  ;;  %v1454_v16 = vor.u32 %v1453_v4, %v1452_v58 }
 0x171   : > { %v4879_v59 = vadd.s32 4294967294, %v1182_v7  ;;  %vm1458_vm8 = vcmp.lt.s32.totalorder %v6340_v54, 1  ;;  %vm2038_vm9 = vcmp.lt.s32.totalorder %v6320_v6, 2  ;;  %v1457_v12 = vor.u32 %v1456_v49, %v1455_v20 }
 0x172   : > { %vm1459_vm10 = vcmp.lt.s32.totalorder %v6340_v54, 2  ;;  %vm1460_vm12 = vcmp.lt.s32.totalorder %v6340_v54, 3  ;;  %vm790_vm13 = vweird.f32 %v5879_v50  ;;  %vm1461_vm14 = vcmp.lt.s32.totalorder %v6340_v54, 4 }
 0x173   : > { %vm4880_vm5 = vcmp.lt.s32.totalorder %v4879_v59, 0  ;;  %v1462_v17 = vsel %vm1458_vm8, %v1442_v0, %v1445_v56  ;;  %v1463_v19 = vsel %vm1461_vm14, %v1451_v31, 2102212464  ;;  %v1466_v22 = vsel %vm1458_vm8, %v1445_v56, %v1448_v43 }
 0x174   : > { %v1185_v11 = vsel %vm4880_vm5, 0, %v4879_v59  ;;  %v1467_v46 = vsel %vm1461_vm14, %v1454_v16, 920167782  ;;  %v1470_v10 = vsel %vm1458_vm8, %v1448_v43, %v1451_v31  ;;  %vm797_vm15 = vcmp.eq.s32.totalorder %v6316_v18, 2 }
 0x175   : > { %v1186_v8 = vsub.s32 32, %v1185_v11  ;;  %v1187_v5 = vshll.u32 %v6312_v9, %v1185_v11  ;;  %v1190_v32 = vsub.s32 4294967266, %v1185_v11  ;;  %v1468_v7 = vsel %vm1460_vm12, %v1451_v31, %v1467_v46 }
 0x176   : > { %v1464_v21 = vsel %vm1460_vm12, %v1448_v43, %v1463_v19  ;;  %v1469_v53 = vsel %vm1459_vm10, %v1466_v22, %v1468_v7  ;;  %v1471_v41 = vsel %vm1461_vm14, %v1457_v12, 1326507024  ;;  %v1644_v3 = vadd.s32 1, %v4897_v24 }
 0x177   : > { %v1188_v45 = vshrl.u32 %v1170_v61, %v1186_v8  ;;  %v1191_v33 = vadd.s32 127, %v1190_v32  ;;  %vm794_vm7 = vcmp.eq.s32.totalorder %v6316_v18, 0  ;;  %v1472_v4 = vsel %vm1460_vm12, %v1454_v16, %v1471_v41 }
 0x178   : > { %v5174_v9 = vpop.eup %5173  ;;  %v1473_v56 = vsel %vm1459_vm10, %v1470_v10, %v1472_v4  ;;  %v6387_v43 = vmul.u32.u64.low %v6326_v52, %v1469_v53  ;;  %v6388_v31 = vmul.u32.u64.high %v6326_v52, %v1469_v53, %v6387_v43  ;;  %v1641_v0 = vand.u32 8388607, %v1634_v13 }
 0x179   : > { %v5176_v39 = vpop.eup %5175  ;;  %v798_v61 = vxor.u32 2147483648, %v5174_v9  ;;  %v1189_v59 = vor.u32 %v1188_v45, %v1187_v5  ;;  %v1192_v58 = vshll.u32 %v1191_v33, 23  ;;  %v6397_v11 = vmul.f32 %v6334_v14, %v5499_v57 }
 0x17a   : > { %v795_v20 = vxor.u32 2147483648, %v5176_v39  ;;  %v1203_v16 = vsel %vm6355_vm4, 0, %v6338_v25  ;;  %v6405_v8 = vmul.u32.u64.low %v6326_v52, %v1473_v56  ;;  %v6406_v5 = vmul.u32.u64.high %v6326_v52, %v1473_v56, %v6405_v8 }
 0x17b   : > { %v1193_v49 = vor.u32 4788187, %v1192_v58  ;;  %v2044_v24 = vsel %vm2042_vm3, %v798_v61, %v5176_v39  ;;  %v1196_v19 = vcvt.s32.f32 %v1189_v59  ;;  %v1465_v14 = vsel %vm1459_vm10, %v1462_v17, %v1464_v21 }
 0x17c   : > { %v2041_v12 = vsel %vm2039_vm6, %v5174_v9, %v795_v20  ;;  %v1484_v25 = vadd.s32 1, %v6388_v31  ;;  %vm1645_vm11 = vcmp.gt.s32.totalorder %v1644_v3, 0  ;;  %v461_v45 = vrot.slane %v5485_v48, %v5456_v30 }
 0x17d   : > { %v1194_v32 = vand.u32 2147483647, %v1193_v49  ;;  %v2045_v22 = vsel %vm2038_vm9, %v2041_v12, %v2044_v24  ;;  %v1642_v7 = vor.u32 8388608, %v1641_v0  ;;  %v1646_v10 = vsel %vm1645_vm11, %v1644_v3, 0  ;;  %v3029_v3 = vld [vmem:[%s8237_s3 + $0x8] sm:$0xff]  ;;  %v3030_v12 = vld [vmem:[%s8237_s3 + $0x10] sm:$0xff] }
 0x17e   : > { %v6414_v46 = vsel %vm790_vm13, nan, %v2045_v22  ;;  %v1322_v53 = vand.u32 2147483647, %v6397_v11  ;;  %v1207_v6 = vadd.s32 3, %v1203_v16  ;;  %v1481_v41 = vmul.u32 %v6326_v52, %v1465_v14  ;;  %3051 = vperm.xlu1 %5124, %v3029_v3  }
 0x17f   : > { %v1197_v33 = vmul.f32 %v1196_v19, %v1194_v32  ;;  %vm1483_vm0 = vc.u32 %v6406_v5, %v6387_v43  ;;  %v1648_v54 = vand.u32 31, %v1646_v10  ;;  %vm793_vm1 = vcmp.lt.s32.totalorder %v6316_v18, 2 }
 0x180   : > { %v799_v17 = vsel %vm797_vm15, %v798_v61, %v5176_v39  ;;  %v6426_v59 = vand.u32 3, %v1203_v16  ;;  %v1485_v58 = vsel %vm1483_vm0, %v1484_v25, %v6388_v31  ;;  %v796_v52 = vsel %vm794_vm7, %v5174_v9, %v795_v20 }
 0x181   : > { %v1198_v21 = vxor.u32 2147483648, %v1197_v33  ;;  %v1486_v4 = vadd.s32 %v1485_v58, %v1481_v41  ;;  %v6434_v56 = vshrl.u32 %v1646_v10, 5  ;;  %v1649_v49 = vsub.s32 32, %v1648_v54 }
 0x182   : > { %v1651_v61 = vshll.u32 %v5265_v27, %v1648_v54  ;;  %v1654_v24 = vshll.u32 %v5266_v34, %v1648_v54  ;;  %v1657_v31 = vshll.u32 %v5267_v40, %v1648_v54  ;;  %v1660_v20 = vshll.u32 %v5268_v42, %v1648_v54  ;;  %3056 = vperm.xlu1 %5124, %v3030_v12  }
 0x183   : > { %v1199_v39 = vsel %vm1116_vm2, %v1198_v21, %v1197_v33  ;;  %v1487_v16 = vadd.s32 536870912, %v1486_v4  ;;  %v1652_v9 = vshrl.u32 %v5266_v34, %v1649_v49  ;;  %v1655_v8 = vshrl.u32 %v5267_v40, %v1649_v49 }
 0x184   : > { %v1202_v0 = vsel %vm6355_vm4, %v5969_v63, %v1199_v39  ;;  %v1658_v32 = vshrl.u32 %v5268_v42, %v1649_v49  ;;  %v1661_v19 = vshrl.u32 %v5269_v44, %v1649_v49  ;;  %v1664_v14 = vshrl.u32 %v5270_v55, %v1649_v49  ;;  %v3032_v39 = vld [vmem:[%s8237_s3 + $0x20] sm:$0xff] }
 0x185   : > { %5177 = vcosq.f32 %v1202_v0  ;;  %v1488_v22 = vshrl.u32 %v1487_v16, 30  ;;  %v1653_v1 = vor.u32 %v1652_v9, %v1651_v61  ;;  %v1656_v25 = vor.u32 %v1655_v8, %v1654_v24 }
 0x186   : > { %5179 = vsinq.f32 %v1202_v0  ;;  %v1659_v33 = vor.u32 %v1658_v32, %v1657_v31  ;;  %v1662_v10 = vor.u32 %v1661_v19, %v1660_v20  ;;  %v1663_v41 = vshll.u32 %v5269_v44, %v1648_v54  ;;  %3066 = vperm.xlu1 %5124, %v3032_v39  }
 0x187   : > { %v6454_v21 = vand.u32 3, %v1207_v6  ;;  %vm1428_vm2 = vcmp.lt.s32.totalorder %v6239_v2, 0  ;;  %v1489_v58 = vshll.u32 %v1488_v22, 30  ;;  %vm1666_vm3 = vcmp.lt.s32.totalorder %v6434_v56, 1 }
 0x188   : > { %v6458_v3 = vshll.u32 %v1642_v7, 8  ;;  %vm2454_vm4 = vcmp.eq.s32.totalorder %v6426_v59, 2  ;;  %v1665_v61 = vor.u32 %v1664_v14, %v1663_v41  ;;  %vm1669_vm5 = vcmp.lt.s32.totalorder %v6434_v56, 4 }
 0x189   : > { %v1674_v6 = vsel %vm1666_vm3, %v1653_v1, %v1656_v25  ;;  %v800_v54 = vsel %vm793_vm1, %v796_v52, %v799_v17  ;;  %vm2451_vm6 = vcmp.eq.s32.totalorder %v6426_v59, 0  ;;  %v6470_v24 = vsub.s32 %v1486_v4, %v1489_v58  ;;  %v3034_v52 = vld [vmem:[%s8237_s3 + $0x30] sm:$0xff] }
 0x18a   : > { %vm1668_vm8 = vcmp.lt.s32.totalorder %v6434_v56, 3  ;;  %v1675_v7 = vsel %vm1669_vm5, %v1662_v10, 920167782  ;;  %vm2450_vm9 = vcmp.lt.s32.totalorder %v6426_v59, 2  ;;  %v1650_v31 = vshrl.u32 %v5265_v27, %v1649_v49  ;;  %3076 = vperm.xlu1 %5124, %v3034_v52  }
 0x18b   : > { %vm1667_vm10 = vcmp.lt.s32.totalorder %v6434_v56, 2  ;;  %v1676_v18 = vsel %vm1668_vm8, %v1659_v33, %v1675_v7  ;;  %v1325_v17 = vand.u32 2139095040, %v6397_v11  ;;  %vm1206_vm12 = vweird.f32 %v5969_v63 }
 0x18c   : > { %v1492_v4 = vsub.s32 0, %v6470_v24  ;;  %v1671_v0 = vsel %vm1669_vm5, %v1659_v33, 2102212464  ;;  %v1677_v49 = vsel %vm1667_vm10, %v1674_v6, %v1676_v18  ;;  %v1678_v16 = vsel %vm1666_vm3, %v1656_v25, %v1659_v33 }
 0x18d   : > { %vm6494_vm14 = vcmp.le.f32.partialorder %v1426_v51, 0.7853982  ;;  %v1512_v20 = vsub.s32 4, %v1488_v22  ;;  %v1679_v12 = vsel %vm1669_vm5, %v1665_v61, 1326507024  ;;  %vm1209_vm15 = vcmp.lt.s32.totalorder %v6454_v21, 2 }
 0x18e   : > { %v6501_v8 = vmul.u32.u64.low %v6458_v3, %v1677_v49  ;;  %v6502_v32 = vmul.u32.u64.high %v6458_v3, %v1677_v49, %v6501_v8  ;;  %vm1210_vm7 = vcmp.eq.s32.totalorder %v6454_v21, 0  ;;  %v4890_v19 = vmin.u32 %v1492_v4, %v6470_v24  ;;  %v3036_v61 = vld [vmem:[%s8237_s3 + $0x40] sm:$0xff] }
 0x18f   : > { %v1680_v51 = vsel %vm1668_vm8, %v1662_v10, %v1679_v12  ;;  %v5178_v14 = vpop.eup %5177  ;;  %v1670_v33 = vsel %vm1666_vm3, %v1650_v31, %v1653_v1  ;;  %v1672_v41 = vsel %vm1668_vm8, %v1656_v25, %v1671_v0  ;;  %v1326_v39 = vshrl.u32 %v1325_v17, 23  ;;  %3086 = vperm.xlu1 %5124, %v3036_v61  }
 0x190   : > { %v1681_v58 = vsel %vm1667_vm10, %v1678_v16, %v1680_v51  ;;  %v5180_v6 = vpop.eup %5179  ;;  %v801_v10 = vsel %vm790_vm13, nan, %v800_v54  ;;  %vm1213_vm11 = vcmp.eq.s32.totalorder %v6454_v21, 2  ;;  %v1214_v7 = vxor.u32 2147483648, %v5178_v14 }
 0x191   : > { %v1494_v18 = vclz %v4890_v19  ;;  %v1211_v1 = vxor.u32 2147483648, %v5180_v6  ;;  %v1513_v25 = vsel %vm1428_vm2, %v1512_v20, %v1488_v22  ;;  %v1673_v50 = vsel %vm1667_vm10, %v1670_v33, %v1672_v41  ;;  %v3038_v20 = vld [vmem:[%s8237_s3 + $0x50] sm:$0xff] }
 0x192   : > { %v6525_v31 = vmul.u32.u64.low %v6458_v3, %v1681_v58  ;;  %v6526_v52 = vmul.u32.u64.high %v6458_v3, %v1681_v58, %v6525_v31  ;;  %v1215_v17 = vsel %vm1213_vm11, %v1214_v7, %v5180_v6  ;;  %v2456_v4 = vsel %vm2454_vm4, %v1214_v7, %v5180_v6 }
 0x193   : > { %v4891_v0 = vadd.s32 4294967294, %v1494_v18  ;;  %v1212_v54 = vsel %vm1210_vm7, %v5178_v14, %v1211_v1  ;;  %v2453_v49 = vsel %vm2451_vm6, %v5178_v14, %v1211_v1  ;;  %v4885_v22 = vadd.s32 4294967169, %v1326_v39  ;;  %3096 = vperm.xlu1 %5124, %v3038_v20  }
 0x194   : > { %v481_v16 = vrot.slane %v461_v45, %v5456_v30  ;;  %v1216_v56 = vsel %vm1209_vm15, %v1212_v54, %v1215_v17  ;;  %v2457_v12 = vsel %vm2450_vm9, %v2453_v49, %v2456_v4  ;;  %v1692_v19 = vadd.s32 1, %v6502_v32 }
 0x195   : > { %vm4892_vm13 = vcmp.lt.s32.totalorder %v4891_v0, 0  ;;  %v1217_v51 = vsel %vm1206_vm12, nan, %v1216_v56  ;;  %v6552_v48 = vsel %vm1206_vm12, nan, %v2457_v12  ;;  %v1482_v30 = vadd.s32 %v6387_v43, %v6406_v5  ;;  %v3040_v43 = vld [vmem:[%s8237_s3 + $0x60] sm:$0xff] }
 0x196   : > { %v1497_v45 = vsel %vm4892_vm13, 0, %v4891_v0  ;;  %v3014_v14 = vpack.c.bf16 %v1217_v51, %v801_v10  ;;  %v6558_v59 = vsel %vm6494_vm14, 0, %v1513_v25  ;;  %v1689_v41 = vmul.u32 %v6458_v3, %v1673_v50 }
 0x197   : > { %v1498_v21 = vsub.s32 32, %v1497_v45  ;;  %v1502_v33 = vsub.s32 4294967266, %v1497_v45  ;;  %vm1691_vm0 = vc.u32 %v6526_v52, %v6501_v8  ;;  %v1332_v63 = vadd.s32 1, %v4885_v22  ;;  %3106 = vperm.xlu1 %5124, %v3040_v43  }
 0x198   : > { %v6564_v58 = vmul.f32 %v481_v16, %v5499_v57  ;;  %3318 = vmatpush1.bf16.msra.mxu1 %v3014_v14  ;;  %v1499_v5 = vshll.u32 %v6470_v24, %v1497_v45  ;;  %v1693_v6 = vsel %vm1691_vm0, %v1692_v19, %v6502_v32  ;;  %v1329_v3 = vand.u32 8388607, %v1322_v53  ;;  %v3042_v24 = vld [vmem:[%s8237_s3 + $0x70] sm:$0xff]  ;;  %v3542_v19 = vld [vmem:[%s8239_s5] sm:$0xff] }
 0x199   : > { %v1500_v39 = vshrl.u32 %v1482_v30, %v1498_v21  ;;  %v1503_v61 = vadd.s32 127, %v1502_v33  ;;  %v1694_v10 = vadd.s32 %v1693_v6, %v1689_v41  ;;  %vm1333_vm1 = vcmp.gt.s32.totalorder %v1332_v63, 0 }
 0x19a   : > { %v1519_v57 = vadd.s32 3, %v6558_v59  ;;  %v1334_v1 = vsel %vm1333_vm1, %v1332_v63, 0  ;;  %v1533_v17 = vand.u32 2139095040, %v6564_v58  ;;  %v1330_v22 = vor.u32 8388608, %v1329_v3 }
 0x19b   : > { %v1501_v7 = vor.u32 %v1500_v39, %v1499_v5  ;;  %v1504_v18 = vshll.u32 %v1503_v61, 23  ;;  %v1695_v25 = vadd.s32 536870912, %v1694_v10  ;;  %v1336_v31 = vand.u32 31, %v1334_v1  ;;  %3116 = vperm.xlu1 %5124, %v3042_v24  }
 0x19c   : > { %v6580_v49 = vand.u32 3, %v1519_v57  ;;  %v1534_v12 = vshrl.u32 %v1533_v17, 23  ;;  %v1335_v5 = vshrl.u32 %v1334_v1, 5  ;;  %v1690_v1 = vadd.s32 %v6501_v8, %v6526_v52 }
 0x19d   : > { %v1505_v32 = vor.u32 4788187, %v1504_v18  ;;  %v6578_v4 = vshrl.u32 %v1695_v25, 30  ;;  %v1337_v0 = vsub.s32 32, %v1336_v31  ;;  %v1508_v54 = vcvt.s32.f32 %v1501_v7 }
 0x19e   : > { %v1339_v20 = vshll.u32 %v5265_v27, %v1336_v31  ;;  %v1342_v33 = vshll.u32 %v5266_v34, %v1336_v31  ;;  %v1345_v41 = vshll.u32 %v5267_v40, %v1336_v31  ;;  %v1348_v39 = vshll.u32 %v5268_v42, %v1336_v31 }
 0x19f   : > { %v1506_v50 = vand.u32 2147483647, %v1505_v32  ;;  %v1697_v16 = vshll.u32 %v6578_v4, 30  ;;  %v1340_v56 = vshrl.u32 %v5266_v34, %v1337_v0  ;;  %v1343_v30 = vshrl.u32 %v5267_v40, %v1337_v0  ;;  %3560 = vperm.xlu1 %5124, %v3542_v19  }
 0x1a0   : > { %v1346_v45 = vshrl.u32 %v5268_v42, %v1337_v0  ;;  %v1349_v14 = vshrl.u32 %v5269_v44, %v1337_v0  ;;  %v1352_v63 = vshrl.u32 %v5270_v55, %v1337_v0  ;;  %v1351_v61 = vshll.u32 %v5269_v44, %v1336_v31 }
 0x1a1   : > { %v1509_v51 = vmul.f32 %v1508_v54, %v1506_v50  ;;  %v6591_v21 = vsub.s32 %v1694_v10, %v1697_v16  ;;  %v1341_v3 = vor.u32 %v1340_v56, %v1339_v20  ;;  %v1344_v7 = vor.u32 %v1343_v30, %v1342_v33  ;;  %v3544_v10 = vld [vmem:[%s8239_s5 + $0x10] sm:$0xff] }
 0x1a2   : > { %v1347_v18 = vor.u32 %v1346_v45, %v1345_v41  ;;  %v1350_v25 = vor.u32 %v1349_v14, %v1348_v39  ;;  %v6606_v17 = vshll.u32 %v1330_v22, 8  ;;  %v1353_v32 = vor.u32 %v1352_v63, %v1351_v61  ;;  %v3546_v22 = vld [vmem:[%s8239_s5 + $0x20] sm:$0xff] }
 0x1a3   : > { %v1510_v43 = vxor.u32 2147483648, %v1509_v51  ;;  %v1700_v6 = vsub.s32 0, %v6591_v21  ;;  %v4893_v50 = vadd.s32 4294967169, %v1534_v12  ;;  %v1338_v54 = vshrl.u32 %v5265_v27, %v1337_v0  ;;  %3570 = vperm.xlu1 %5124, %v3544_v10  }
 0x1a4   : > { %vm1354_vm3 = vcmp.lt.s32.totalorder %v1335_v5, 1  ;;  %vm1357_vm4 = vcmp.lt.s32.totalorder %v1335_v5, 4  ;;  %vm1356_vm5 = vcmp.lt.s32.totalorder %v1335_v5, 3  ;;  %vm1518_vm9 = vweird.f32 %v6239_v2 }
 0x1a5   : > { %v1511_v57 = vsel %vm1428_vm2, %v1510_v43, %v1509_v51  ;;  %v4898_v24 = vmin.u32 %v1700_v6, %v6591_v21  ;;  %v1359_v8 = vsel %vm1357_vm4, %v1347_v18, 2102212464  ;;  %v1362_v52 = vsel %vm1354_vm3, %v1341_v3, %v1344_v7  ;;  %v3548_v43 = vld [vmem:[%s8239_s5 + $0x30] sm:$0xff] }
 0x1a6   : > { %v1514_v31 = vsel %vm6494_vm14, %v6239_v2, %v1511_v57  ;;  %vm1355_vm2 = vcmp.lt.s32.totalorder %v1335_v5, 2  ;;  %v1363_v9 = vsel %vm1357_vm4, %v1350_v25, 920167782  ;;  %v1366_v20 = vsel %vm1354_vm3, %v1344_v7, %v1347_v18 }
 0x1a7   : > { %5181 = vcosq.f32 %v1514_v31  ;;  %v1702_v16 = vclz %v4898_v24  ;;  %v1358_v12 = vsel %vm1354_vm3, %v1338_v54, %v1341_v3  ;;  %v1364_v19 = vsel %vm1356_vm5, %v1347_v18, %v1363_v9  ;;  %3580 = vperm.xlu1 %5124, %v3546_v22   ;;  %v3550_v54 = vld [vmem:[%s8239_s5 + $0x40] sm:$0xff] }
 0x1a8   : > { %5183 = vsinq.f32 %v1514_v31  ;;  %v1367_v51 = vsel %vm1357_vm4, %v1353_v32, 1326507024  ;;  %v1360_v0 = vsel %vm1356_vm5, %v1344_v7, %v1359_v8  ;;  %v1365_v30 = vsel %vm1355_vm2, %v1362_v52, %v1364_v19 }
 0x1a9   : > { %v4899_v56 = vadd.s32 4294967294, %v1702_v16  ;;  %v1368_v45 = vsel %vm1356_vm5, %v1350_v25, %v1367_v51  ;;  %v1540_v14 = vadd.s32 1, %v4893_v50  ;;  %v1361_v18 = vsel %vm1355_vm2, %v1358_v12, %v1360_v0  ;;  %v3552_v0 = vld [vmem:[%s8239_s5 + $0x50] sm:$0xff] }
 0x1aa   : > { %v1369_v33 = vsel %vm1355_vm2, %v1366_v20, %v1368_v45  ;;  %v6619_v41 = vmul.u32.u64.low %v6606_v17, %v1365_v30  ;;  %v6620_v63 = vmul.u32.u64.high %v6606_v17, %v1365_v30, %v6619_v41  ;;  %v1530_v57 = vand.u32 2147483647, %v6564_v58 }
 0x1ab   : > { %vm4900_vm6 = vcmp.lt.s32.totalorder %v4899_v56, 0  ;;  %v6627_v61 = vmul.u32.u64.low %v6606_v17, %v1369_v33  ;;  %v6628_v6 = vmul.u32.u64.high %v6606_v17, %v1369_v33, %v6627_v61  ;;  %vm1541_vm8 = vcmp.gt.s32.totalorder %v1540_v14, 0  ;;  %3590 = vperm.xlu1 %5124, %v3548_v43  }
 0x1ac   : > { %v1705_v39 = vsel %vm4900_vm6, 0, %v4899_v56  ;;  %v1542_v10 = vsel %vm1541_vm8, %v1540_v14, 0  ;;  %v1380_v50 = vadd.s32 1, %v6620_v63  ;;  %vm1521_vm10 = vcmp.lt.s32.totalorder %v6580_v49, 2 }
 0x1ad   : > { %v1706_v3 = vsub.s32 32, %v1705_v39  ;;  %v1710_v7 = vsub.s32 4294967266, %v1705_v39  ;;  %v1544_v25 = vand.u32 31, %v1542_v10  ;;  %v1707_v31 = vshll.u32 %v6591_v21, %v1705_v39 }
 0x1ae   : > { %vm1636_vm12 = vcmp.lt.s32.totalorder %v6299_v60, 0  ;;  %v1377_v5 = vmul.u32 %v6606_v17, %v1361_v18  ;;  %vm1379_vm14 = vc.u32 %v6628_v6, %v6619_v41  ;;  %vm1522_vm15 = vcmp.eq.s32.totalorder %v6580_v49, 0 }
 0x1af   : > { %v1708_v24 = vshrl.u32 %v1690_v1, %v1706_v3  ;;  %v1711_v32 = vadd.s32 127, %v1710_v7  ;;  %v6645_v21 = vsub.s32 32, %v1544_v25  ;;  %v1381_v9 = vsel %vm1379_vm14, %v1380_v50, %v6620_v63  ;;  %3600 = vperm.xlu1 %5124, %v3550_v54   ;;  %v3554_v50 = vld [vmem:[%s8239_s5 + $0x60] sm:$0xff] }
 0x1b0   : > { %vm1525_vm7 = vcmp.eq.s32.totalorder %v6580_v49, 2  ;;  %v1382_v17 = vadd.s32 %v1381_v9, %v1377_v5  ;;  %v1720_v19 = vsub.s32 4, %v6578_v4  ;;  %v1537_v51 = vand.u32 8388607, %v1530_v57 }
 0x1b1   : > { %v6638_v16 = vpop.eup %5181  ;;  %v1709_v52 = vor.u32 %v1708_v24, %v1707_v31  ;;  %v1712_v22 = vshll.u32 %v1711_v32, 23  ;;  %v6666_v14 = vshrl.u32 %v1542_v10, 5  ;;  %v1547_v33 = vshll.u32 %v5265_v27, %v1544_v25 }
 0x1b2   : > { %v6647_v1 = vpop.eup %5183  ;;  %v1526_v8 = vxor.u32 2147483648, %v6638_v16  ;;  %v1383_v45 = vadd.s32 536870912, %v1382_v17  ;;  %v1548_v61 = vshrl.u32 %v5266_v34, %v6645_v21  ;;  %v1551_v18 = vshrl.u32 %v5267_v40, %v6645_v21 }
 0x1b3   : > { %v1523_v20 = vxor.u32 2147483648, %v6647_v1  ;;  %v1713_v12 = vor.u32 4788187, %v1712_v22  ;;  %v1716_v39 = vcvt.s32.f32 %v1709_v52  ;;  %v1554_v10 = vshrl.u32 %v5268_v42, %v6645_v21  ;;  %3610 = vperm.xlu1 %5124, %v3552_v0  }
 0x1b4   : > { %v1527_v56 = vsel %vm1525_vm7, %v1526_v8, %v6647_v1  ;;  %v6675_v7 = vshrl.u32 %v1383_v45, 30  ;;  %v1556_v24 = vshll.u32 %v5268_v42, %v1544_v25  ;;  %v1557_v32 = vshrl.u32 %v5269_v44, %v6645_v21 }
 0x1b5   : > { %v1524_v30 = vsel %vm1522_vm15, %v6638_v16, %v1523_v20  ;;  %v1714_v43 = vand.u32 2147483647, %v1713_v12  ;;  %v1550_v5 = vshll.u32 %v5266_v34, %v1544_v25  ;;  %v1553_v52 = vshll.u32 %v5267_v40, %v1544_v25 }
 0x1b6   : > { %v1528_v63 = vsel %vm1521_vm10, %v1524_v30, %v1527_v56  ;;  %v1385_v54 = vshll.u32 %v6675_v7, 30  ;;  %v1560_v22 = vshrl.u32 %v5270_v55, %v6645_v21  ;;  %v1721_v42 = vsel %vm1636_vm12, %v1720_v19, %v6578_v4  ;;  %v3556_v4 = vld [vmem:[%s8239_s5 + $0x70] sm:$0xff] }
 0x1b7   : > { %v1529_v3 = vsel %vm1518_vm9, nan, %v1528_v63  ;;  %v1717_v31 = vmul.f32 %v1716_v39, %v1714_v43  ;;  %v1558_v9 = vor.u32 %v1557_v32, %v1556_v24  ;;  %v1559_v56 = vshll.u32 %v5269_v44, %v1544_v25  ;;  %3620 = vperm.xlu1 %5124, %v3554_v50  }
 0x1b8   : > { %v3017_v49 = vpack.c.bf16 %v5811_v23, %v1529_v3  ;;  %v6697_v12 = vsub.s32 %v1382_v17, %v1385_v54  ;;  %v1549_v0 = vor.u32 %v1548_v61, %v1547_v33  ;;  %v1552_v30 = vor.u32 %v1551_v18, %v1550_v5  ;;  %v4997_v3 = vld [vmem:[%s8239_s5 + $0x80] sm:$0xff] }
 0x1b9   : > { %v1718_v23 = vxor.u32 2147483648, %v1717_v31  ;;  %v1555_v45 = vor.u32 %v1554_v10, %v1553_v52  ;;  %vm1635_vm11 = vcmp.le.f32.partialorder %v1634_v13, 0.7853982  ;;  %v1538_v40 = vor.u32 8388608, %v1537_v51 }
 0x1ba   : > { %3206 = vmatprep.subr.bf16.mxu0 %v3017_v49  ;;  %v1561_v55 = vor.u32 %v1560_v22, %v1559_v56  ;;  %v6707_v25 = vsel %vm1635_vm11, 0, %v1721_v42  ;;  %v1388_v17 = vsub.s32 0, %v6697_v12  ;;  %vm1565_vm13 = vcmp.lt.s32.totalorder %v6666_v14, 4 }
 0x1bb   : > { %v1719_v34 = vsel %vm1636_vm12, %v1718_v23, %v1717_v31  ;;  %vm1562_vm0 = vcmp.lt.s32.totalorder %v6666_v14, 1  ;;  %vm1564_vm1 = vcmp.lt.s32.totalorder %v6666_v14, 3  ;;  %v1571_v13 = vsel %vm1565_vm13, %v1558_v9, 920167782  ;;  %3630 = vperm.xlu1 %5124, %v3556_v4   ;;  %v4999_v23 = vld [vmem:[%s8239_s5 + $0x90] sm:$0xff]  ;;  %v5001_v4 = vld [vmem:[%s8239_s5 + $0xa0] sm:$0xff] }
 0x1bc   : > { %v1722_v44 = vsel %vm1635_vm11, %v6299_v60, %v1719_v34  ;;  %v4886_v19 = vmin.u32 %v1388_v17, %v6697_v12  ;;  %v1567_v51 = vsel %vm1565_vm13, %v1555_v45, 2102212464  ;;  %v1570_v33 = vsel %vm1562_vm0, %v1549_v0, %v1552_v30 }
 0x1bd   : > { %5185 = vcosq.f32 %v1722_v44  ;;  %v1546_v63 = vshrl.u32 %v5265_v27, %v6645_v21  ;;  %v1572_v43 = vsel %vm1564_vm1, %v1555_v45, %v1571_v13  ;;  %v1574_v39 = vsel %vm1562_vm0, %v1552_v30, %v1555_v45 }
 0x1be   : > { %5187 = vsinq.f32 %v1722_v44  ;;  %v1575_v61 = vsel %vm1565_vm13, %v1561_v55, 1326507024  ;;  %v1727_v18 = vadd.s32 3, %v6707_v25  ;;  %v1390_v10 = vclz %v4886_v19 }
 0x1bf   : > { %vm1563_vm3 = vcmp.lt.s32.totalorder %v6666_v14, 2  ;;  %v1578_v49 = vshll.u32 %v1538_v40, 8  ;;  %v1566_v27 = vsel %vm1562_vm0, %v1546_v63, %v1549_v0  ;;  %v1568_v21 = vsel %vm1564_vm1, %v1552_v30, %v1567_v51  ;;  %4108 = vperm.xlu1 %5124, %v4997_v3  }
 0x1c0   : > { %v1573_v31 = vsel %vm1563_vm3, %v1570_v33, %v1572_v43  ;;  %v1576_v24 = vsel %vm1564_vm1, %v1558_v9, %v1575_v61  ;;  %v4887_v32 = vadd.s32 4294967294, %v1390_v10  ;;  %v1569_v42 = vsel %vm1563_vm3, %v1566_v27, %v1568_v21  ;;  %v5003_v61 = vld [vmem:[%s8239_s5 + $0xb0] sm:$0xff] }
 0x1c1   : > { %v1577_v50 = vsel %vm1563_vm3, %v1574_v39, %v1576_v24  ;;  %v6733_v54 = vmul.u32.u64.low %v1578_v49, %v1573_v31  ;;  %v6734_v5 = vmul.u32.u64.high %v1578_v49, %v1573_v31, %v6733_v54  ;;  %v1728_v56 = vand.u32 3, %v1727_v18 }
 0x1c2   : > { %v6737_v52 = vmul.u32.u64.low %v1578_v49, %v1577_v50  ;;  %v6738_v22 = vmul.u32.u64.high %v1578_v49, %v1577_v50, %v6737_v52  ;;  %vm4888_vm4 = vcmp.lt.s32.totalorder %v4887_v32, 0  ;;  %v1378_v14 = vadd.s32 %v6619_v41, %v6628_v6  ;;  %v5005_v50 = vld [vmem:[%s8239_s5 + $0xc0] sm:$0xff] }
 0x1c3   : > { %v1393_v0 = vsel %vm4888_vm4, 0, %v4887_v32  ;;  %v1588_v45 = vadd.s32 1, %v6734_v5  ;;  %4118 = vperm.xlu1 %5124, %v4999_v23   ;;  %v1585_v55 = vmul.u32 %v1578_v49, %v1569_v42  ;;  %vm1733_vm5 = vcmp.eq.s32.totalorder %v1728_v56, 2 }
 0x1c4   : > { %v1394_v9 = vsub.s32 32, %v1393_v0  ;;  %v1398_v30 = vsub.s32 4294967266, %v1393_v0  ;;  %v1395_v40 = vshll.u32 %v6697_v12, %v1393_v0  ;;  %vm1587_vm2 = vc.u32 %v6738_v22, %v6733_v54 }
 0x1c5   : > { %v1589_v13 = vsel %vm1587_vm2, %v1588_v45, %v6734_v5  ;;  %vm1730_vm6 = vcmp.eq.s32.totalorder %v1728_v56, 0  ;;  %vm1729_vm8 = vcmp.lt.s32.totalorder %v1728_v56, 2  ;;  %vm1726_vm10 = vweird.f32 %v6299_v60  ;;  %v5007_v56 = vld [vmem:[%s8239_s5 + $0xd0] sm:$0xff] }
 0x1c6   : > { %v1396_v6 = vshrl.u32 %v1378_v14, %v1394_v9  ;;  %v1399_v17 = vadd.s32 127, %v1398_v30  ;;  %v1590_v12 = vadd.s32 %v1589_v13, %v1585_v55  ;;  %v1408_v24 = vsub.s32 4, %v6675_v7 }
 0x1c7   : > { %v6746_v34 = vpop.eup %5185  ;;  %4128 = vperm.xlu1 %5124, %v5001_v4   ;;  %vm1324_vm12 = vcmp.lt.s32.totalorder %v6397_v11, 0  ;;  %vm1323_vm14 = vcmp.le.f32.partialorder %v1322_v53, 0.7853982  ;;  %v2758_v45 = vand.u32 3, %v6558_v59  ;;  %vm1414_vm0 = vweird.f32 %v6397_v11 }
 0x1c8   : > { %v6754_v44 = vpop.eup %5187  ;;  %v1734_v41 = vxor.u32 2147483648, %v6746_v34  ;;  %v1397_v33 = vor.u32 %v1396_v6, %v1395_v40  ;;  %v1400_v63 = vshll.u32 %v1399_v17, 23  ;;  %v1591_v39 = vadd.s32 536870912, %v1590_v12  ;;  %v5009_v40 = vld [vmem:[%s8239_s5 + $0xe0] sm:$0xff]  ;;  %v5011_v6 = vld [vmem:[%s8239_s5 + $0xf0] sm:$0xff] }
 0x1c9   : > { %v1731_v19 = vxor.u32 2147483648, %v6754_v44  ;;  %v1409_v42 = vsel %vm1324_vm12, %v1408_v24, %v6675_v7  ;;  %vm2760_vm15 = vcmp.eq.s32.totalorder %v2758_v45, 0  ;;  %vm2763_vm7 = vcmp.eq.s32.totalorder %v2758_v45, 2 }
 0x1ca   : > { %v1735_v51 = vsel %vm1733_vm5, %v1734_v41, %v6754_v44  ;;  %v1401_v18 = vor.u32 4788187, %v1400_v63  ;;  %v6771_v49 = vshrl.u32 %v1591_v39, 30  ;;  %v1404_v31 = vcvt.s32.f32 %v1397_v33  ;;  %v4621_v39 = vld [vmem:[%s8241_s7] sm:$0x3] }
 0x1cb   : > { %v1732_v43 = vsel %vm1730_vm6, %v6746_v34, %v1731_v19  ;;  %4138 = vperm.xlu1 %5124, %v5003_v61   ;;  %v1411_v9 = vsel %vm1323_vm14, 0, %v1409_v42  ;;  %v2762_v53 = vsel %vm2760_vm15, %v6638_v16, %v1523_v20  ;;  %v2765_v59 = vsel %vm2763_vm7, %v1526_v8, %v6647_v1 }
 0x1cc   : > { %v1736_v3 = vsel %vm1729_vm8, %v1732_v43, %v1735_v51  ;;  %v1402_v21 = vand.u32 2147483647, %v1401_v18  ;;  %v1593_v32 = vshll.u32 %v6771_v49, 30  ;;  %v1415_v55 = vadd.s32 3, %v1411_v9 }
 0x1cd   : > { %v1737_v10 = vsel %vm1726_vm10, nan, %v1736_v3  ;;  %vm2759_vm13 = vcmp.lt.s32.totalorder %v2758_v45, 2  ;;  %v2655_v43 = vand.u32 3, %v1411_v9  ;;  %v2982_v20 = vsub.s32 7, %v5452_v28 }
 0x1ce   : > { %v3019_v27 = vpack.c.bf16 %v5949_v29, %v1737_v10  ;;  %v1405_v5 = vmul.f32 %v1404_v31, %v1402_v21  ;;  %v1594_v52 = vsub.s32 %v1590_v12, %v1593_v32  ;;  %v1416_v17 = vand.u32 3, %v1415_v55  ;;  %v5197_v31 = vld [vmem:[%s5446_s17] sm:$0xff] }
 0x1cf   : > { %4148 = vperm.xlu1 %5124, %v5005_v50   ;;  %v1586_v12 = vadd.s32 %v6733_v54, %v6738_v22  ;;  %v2766_v63 = vsel %vm2759_vm13, %v2762_v53, %v2765_v59  ;;  %v2978_v54 = vsub.s32 3, %v5452_v28  ;;  %vm2656_vm2 = vcmp.lt.s32.totalorder %v2655_v43, 2 }
 0x1d0   : > { %3319 = vmatprep.subr.bf16.mxu1 %v3019_v27  ;;  %v1406_v23 = vxor.u32 2147483648, %v1405_v5  ;;  %v1596_v29 = vsub.s32 0, %v1594_v52  ;;  %vm1417_vm1 = vcmp.lt.s32.totalorder %v1416_v17, 2  ;;  %vm1418_vm3 = vcmp.eq.s32.totalorder %v1416_v17, 0 }
 0x1d1   : > { %vm1421_vm4 = vcmp.eq.s32.totalorder %v1416_v17, 2  ;;  %v2767_v27 = vsel %vm1518_vm9, nan, %v2766_v63  ;;  %vm2660_vm5 = vcmp.eq.s32.totalorder %v2655_v43, 2  ;;  %v2983_v24 = vrot.slane %v5197_v31, %v2982_v20 }
 0x1d2   : > { %v1407_v0 = vsel %vm1324_vm12, %v1406_v23, %v1405_v5  ;;  %v4894_v30 = vmin.u32 %v1596_v29, %v1594_v52  ;;  %vm2657_vm6 = vcmp.eq.s32.totalorder %v2655_v43, 0  ;;  %vm3189_vm8 = vcmask 1040384  }
 0x1d3   : > { %v1410_v14 = vsel %vm1323_vm14, %v6397_v11, %v1407_v0  ;;  %4158 = vperm.xlu1 %5124, %v5007_v56   ;;  %v2979_v2 = vrot.slane %v5197_v31, %v2978_v54  ;;  %v3025_v9 = vpack.c.bf16 %v2983_v24, %v2983_v24  ;;  %vm1532_vm9 = vcmp.lt.s32.totalorder %v6564_v58, 0 }
 0x1d4   : > { %5189 = vcosq.f32 %v1410_v14  ;;  %v1598_v7 = vclz %v4894_v30  ;;  %vm1531_vm12 = vcmp.le.f32.partialorder %v1530_v57, 0.7853982  ;;  %v5125_v57 = vld [vmem:[%s8236_s2] sm:$0xff]   ;;  %vm3164_vm14 = vcmask 400384  }
 0x1d5   : > { %5191 = vsinq.f32 %v1410_v14  ;;  %vm1622_vm13 = vweird.f32 %v6564_v58 }
 0x1d6   : > { %v4895_v4 = vadd.s32 4294967294, %v1598_v7  ;;  %v1616_v7 = vsub.s32 4, %v6771_v49 }
 0x1d7   : > { %4168 = vperm.xlu1 %5124, %v5009_v40   ;;  %v8434_v40 = vmov 0  }
 0x1d8   : > { %vm4896_vm11 = vcmp.lt.s32.totalorder %v4895_v4, 0  ;;  %v6824_v55 = vsel %vm3189_vm8, 65535, %v8434_v40 }
 0x1d9   : > { %v1601_v13 = vsel %vm4896_vm11, 0, %v4895_v4  ;;  %v3021_v4 = vpack.c.bf16 %v2767_v27, %v5850_v15 }
 0x1da   : > { %v1602_v51 = vsub.s32 32, %v1601_v13  ;;  %v1606_v33 = vsub.s32 4294967266, %v1601_v13  ;;  %v1603_v16 = vshll.u32 %v1594_v52, %v1601_v13  ;;  %v1617_v13 = vsel %vm1532_vm9, %v1616_v7, %v6771_v49 }
 0x1db   : > { %4178 = vperm.xlu1 %5124, %v5011_v6   ;;  %v3024_v6 = vpack.c.bf16 %v2979_v2, %v2979_v2 }
 0x1dc   : > { %v1604_v1 = vshrl.u32 %v1586_v12, %v1602_v51  ;;  %v1607_v8 = vadd.s32 127, %v1606_v33  ;;  %v1619_v51 = vsel %vm1531_vm12, 0, %v1617_v13  ;;  %v2964_v33 = vand.u32 3, %v6707_v25 }
 0x1dd   : > { %v3193_v11 = vand.u32 %v6824_v55, %v3024_v6  ;;  %v1623_v63 = vadd.s32 3, %v1619_v51  ;;  %v2861_v43 = vand.u32 3, %v1619_v51 }
 0x1de   : > { %v5190_v61 = vpop.eup %5189  ;;  %v1605_v18 = vor.u32 %v1604_v1, %v1603_v16  ;;  %v1608_v10 = vshll.u32 %v1607_v8, 23  ;;  %vm2966_vm15 = vcmp.eq.s32.totalorder %v2964_v33, 0  ;;  %vm2969_vm7 = vcmp.eq.s32.totalorder %v2964_v33, 2 }
 0x1df   : > { %v5192_v22 = vpop.eup %5191  ;;  %v1422_v3 = vxor.u32 2147483648, %v5190_v61  ;;  %4624 = vperm.xlu1 %5124, %v4621_v39   ;;  %v2968_v49 = vsel %vm2966_vm15, %v6746_v34, %v1731_v19  ;;  %v2971_v25 = vsel %vm2969_vm7, %v1734_v41, %v6754_v44  ;;  %vm2965_vm11 = vcmp.lt.s32.totalorder %v2964_v33, 2  ;;  %v5198_v19 = vld [vmem:[%s5446_s17 + $0x8] sm:$0xff] }
 0x1e0   : > { %v1419_v21 = vxor.u32 2147483648, %v5192_v22  ;;  %v1609_v50 = vor.u32 4788187, %v1608_v10  ;;  %v1612_v56 = vcvt.s32.f32 %v1605_v18  ;;  %v2972_v39 = vsel %vm2965_vm11, %v2968_v49, %v2971_v25 }
 0x1e1   : > { %v1423_v32 = vsel %vm1421_vm4, %v1422_v3, %v5192_v22  ;;  %v2662_v5 = vsel %vm2660_vm5, %v1422_v3, %v5192_v22  ;;  %v2991_v34 = vrot.slane %v5198_v19, %v2982_v20  ;;  %vm2863_vm4 = vcmp.eq.s32.totalorder %v2861_v43, 0 }
 0x1e2   : > { %v1420_v52 = vsel %vm1418_vm3, %v5190_v61, %v1419_v21  ;;  %v2659_v23 = vsel %vm2657_vm6, %v5190_v61, %v1419_v21  ;;  %v1610_v29 = vand.u32 2147483647, %v1609_v50  ;;  %v5126_v61 = vld [vmem:[%s8236_s2 + $0x8] sm:$0xff]   ;;  %vm2862_vm5 = vcmp.lt.s32.totalorder %v2861_v43, 2 }
 0x1e3   : > { %v1424_v42 = vsel %vm1417_vm1, %v1420_v52, %v1423_v32  ;;  %v2663_v0 = vsel %vm2656_vm2, %v2659_v23, %v2662_v5  ;;  %vm2866_vm1 = vcmp.eq.s32.totalorder %v2861_v43, 2  ;;  %v2973_v27 = vsel %vm1726_vm10, nan, %v2972_v39 }
 0x1e4   : > { %v1425_v14 = vsel %vm1414_vm0, nan, %v1424_v42  ;;  %v1613_v45 = vmul.f32 %v1612_v56, %v1610_v29  ;;  %v2664_v53 = vsel %vm1414_vm0, nan, %v2663_v0  ;;  %v2987_v31 = vrot.slane %v5198_v19, %v2978_v54  ;;  %v5127_v54 = vld [vmem:[%s8236_s2 + $0x10] sm:$0xff]   ;;  %v5132_v42 = vld [vmem:[%s8236_s2 + $0x38] sm:$0xff]   ;;  %v3047_v56 = vpop.permute.xlu0 %3046 }
 0x1e5   : > { %v3016_v30 = vpack.c.bf16 %v6177_v26, %v1425_v14  ;;  %v3196_v26 = vand.u32 %v6824_v55, %v3025_v9  ;;  %v3020_v12 = vpack.c.bf16 %v2664_v53, %v6283_v47  ;;  %v1624_v47 = vand.u32 3, %v1623_v63 }
 0x1e6   : > { %v1614_v59 = vxor.u32 2147483648, %v1613_v45  ;;  %v3027_v24 = vpack.c.bf16 %v2991_v34, %v2991_v34  ;;  %v3023_v50 = vpack.c.bf16 %v2973_v27, %v6068_v62  ;;  %v3026_v5 = vpack.c.bf16 %v2987_v31, %v2987_v31  ;;  %v5128_v62 = vld [vmem:[%s8236_s2 + $0x18] sm:$0xff]  }
 0x1e7   : > { %3207 = vmatpush1.bf16.msra.mxu0 %v3016_v30  ;;  %vm1629_vm0 = vcmp.eq.s32.totalorder %v1624_v47, 2  ;;  %vm1626_vm3 = vcmp.eq.s32.totalorder %v1624_v47, 0  ;;  %vm1625_vm2 = vcmp.lt.s32.totalorder %v1624_v47, 2 }
 0x1e8   : > { %3208 = vmatprep.subr.bf16.mxu0 %v3021_v4  ;;  %v1615_v17 = vsel %vm1532_vm9, %v1614_v59, %v1613_v45  ;;  %v3202_v52 = vand.u32 %v6824_v55, %v3027_v24  ;;  %v3199_v2 = vand.u32 %v6824_v55, %v3026_v5  ;;  %v6943_v51 = vpop.permute.xlu0 %3061 }
 0x1e9   : > { %v1618_v15 = vsel %vm1531_vm12, %v6564_v58, %v1615_v17  ;;  %v5131_v58 = vld [vmem:[%s8236_s2 + $0x30] sm:$0xff]  }
 0x1ea   : > { %5193 = vcosq.f32 %v1618_v15 }
 0x1eb   : > { %3209 = vmatpush1.bf16.msra.mxu0 %v3020_v12  ;;  %5195 = vsinq.f32 %v1618_v15 }
 0x1ec   : > { %3210 = vmatprep.subr.bf16.mxu0 %v3196_v26  ;;  %v6961_v39 = vpop.permute.xlu0 %3071 }
 0x1ef   : > { %3211 = vmatpush1.bf16.msra.mxu0 %v3193_v11 }
 0x1f2   : > { %4957 = vmatmul.mubr.msk.bf16.vlgmr.msra.gmra.mrb[0].mxu0 %vm3164_vm14, %v5125_v57 }
 0x1f3   : > { %3246 = vmatprep.mubr.bf16.mxu0 %v8434_v40 }
 0x1f4   : > { %v5194_v16 = vpop.eup %5193 }
 0x1f5   : > { %v5196_v1 = vpop.eup %5195  ;;  %v1630_v8 = vxor.u32 2147483648, %v5194_v16 }
 0x1f6   : > { %v1627_v22 = vxor.u32 2147483648, %v5196_v1 }
 0x1f7   : > { %v1631_v44 = vsel %vm1629_vm0, %v1630_v8, %v5196_v1  ;;  %v2868_v41 = vsel %vm2866_vm1, %v1630_v8, %v5196_v1 }
 0x1f8   : > { %v1628_v3 = vsel %vm1626_vm3, %v5194_v16, %v1627_v22  ;;  %v2865_v18 = vsel %vm2863_vm4, %v5194_v16, %v1627_v22 }
 0x1f9   : > { %v1632_v10 = vsel %vm1625_vm2, %v1628_v3, %v1631_v44  ;;  %v2869_v21 = vsel %vm2862_vm5, %v2865_v18, %v2868_v41 }
 0x1fa   : > { %4958 = vmatmul.mubr.msk.bf16.gmra.mrb[4].mxu0 %vm3164_vm14, %v5126_v61  ;;  %v1633_v20 = vsel %vm1622_vm13, nan, %v1632_v10  ;;  %v2870_v60 = vsel %vm1622_vm13, nan, %v2869_v21 }
 0x1fb   : > { %3256 = vmatprep.mubr.bf16.mxu0 %v8434_v40  ;;  %v3018_v32 = vpack.c.bf16 %v6414_v46, %v1633_v20  ;;  %v3022_v23 = vpack.c.bf16 %v2870_v60, %v6552_v48  ;;  %v5129_v46 = vld [vmem:[%s8236_s2 + $0x20] sm:$0xff]   ;;  %v5130_v48 = vld [vmem:[%s8236_s2 + $0x28] sm:$0xff]   ;;  %v6986_v20 = vpop.permute.xlu0 %3081 }
 0x1fd   : > { %3320 = vmatpush1.bf16.msra.mxu1 %v3018_v32  ;;  %v6917_v14 = vpop.permute.xlu1 %3051 }
 0x1fe   : > { %3321 = vmatprep.subr.bf16.mxu1 %v3023_v50 }
 0x201   : > { %3322 = vmatpush1.bf16.msra.mxu1 %v3022_v23  ;;  %v6937_v12 = vpop.permute.xlu1 %3056 }
 0x202   : > { %4959 = vmatmul.mubr.msk.bf16.gmra.mrb[8].mxu0 %vm3164_vm14, %v5127_v54  ;;  %3323 = vmatprep.subr.bf16.mxu1 %v3202_v52 }
 0x203   : > { %3266 = vmatprep.mubr.bf16.mxu0 %v8434_v40 }
 0x205   : > { %3324 = vmatpush1.bf16.msra.mxu1 %v3199_v2  ;;  %v6967_v19 = vpop.permute.xlu1 %3066 }
 0x208   : > { %4965 = vmatmul.mubr.msk.bf16.vlgmr.msra.gmra.mrb[0].mxu1 %vm3164_vm14, %v5125_v57 }
 0x209   : > { %3359 = vmatprep.mubr.bf16.mxu1 %v8434_v40  ;;  %v6990_v50 = vpop.permute.xlu1 %3076 }
 0x20a   : > { %4960 = vmatmul.mubr.msk.bf16.gmra.mrb[12].mxu0 %vm3164_vm14, %v5128_v62 }
 0x20b   : > { %3276 = vmatprep.mubr.bf16.mxu0 %v8434_v40 }
 0x210   : > { %4966 = vmatmul.mubr.msk.bf16.gmra.mrb[4].mxu1 %vm3164_vm14, %v5126_v61 }
 0x211   : > { %3369 = vmatprep.mubr.bf16.mxu1 %v8434_v40 }
 0x212   : > { %4961 = vmatmul.mubr.msk.bf16.gmra.mrb[16].mxu0 %vm3164_vm14, %v5129_v46 }
 0x213   : > { %3286 = vmatprep.mubr.bf16.mxu0 %v8434_v40 }
 0x218   : > { %4967 = vmatmul.mubr.msk.bf16.gmra.mrb[8].mxu1 %vm3164_vm14, %v5127_v54 }
 0x219   : > { %3379 = vmatprep.mubr.bf16.mxu1 %v8434_v40 }
 0x21a   : > { %4962 = vmatmul.mubr.msk.bf16.gmra.mrb[20].mxu0 %vm3164_vm14, %v5130_v48 }
 0x21b   : > { %3296 = vmatprep.mubr.bf16.mxu0 %v8434_v40 }
 0x220   : > { %4968 = vmatmul.mubr.msk.bf16.gmra.mrb[12].mxu1 %vm3164_vm14, %v5128_v62 }
 0x221   : > { %3389 = vmatprep.mubr.bf16.mxu1 %v8434_v40 }
 0x222   : > { %4963 = vmatmul.mubr.msk.bf16.gmra.mrb[24].mxu0 %vm3164_vm14, %v5131_v58 }
 0x223   : > { %3306 = vmatprep.mubr.bf16.mxu0 %v8434_v40 }
 0x228   : > { %4969 = vmatmul.mubr.msk.bf16.gmra.mrb[16].mxu1 %vm3164_vm14, %v5129_v46 }
 0x229   : > { %3399 = vmatprep.mubr.bf16.mxu1 %v8434_v40 }
 0x22a   : > { %4964 = vmatmul.mubr.msk.bf16.gmra.mrb[28].mxu0 %vm3164_vm14, %v5132_v42 }
 0x22b   : > { %3718 = vmatprep.mubr.bf16.mxu0 %v8434_v40 }
 0x230   : > { %4970 = vmatmul.mubr.msk.bf16.gmra.mrb[20].mxu1 %vm3164_vm14, %v5130_v48 }
 0x231   : > { %3409 = vmatprep.mubr.bf16.mxu1 %v8434_v40 }
 0x238   : > { %4971 = vmatmul.mubr.msk.bf16.gmra.mrb[24].mxu1 %vm3164_vm14, %v5131_v58 }
 0x239   : > { %3419 = vmatprep.mubr.bf16.mxu1 %v8434_v40 }
 0x240   : > { %4972 = vmatmul.mubr.msk.bf16.gmra.mrb[28].mxu1 %vm3164_vm14, %v5132_v42 }
 0x241   : > { %3831 = vmatprep.mubr.bf16.mxu1 %v8434_v40 }
 0x2c5   : > { %v3238_v29 = vpop.f32.mrb[0].mxu0 }
 0x2c6   : > { %v3240_v0 = vpop.f32.mrb[1].mxu0  ;;  %v6921_v45 = vadd.f32 %v3238_v29, %v3047_v56 }
 0x2c7   : > { %v6919_v9 = vadd.f32 %v3240_v0, %v3047_v56  ;;  %v3242_v30 = vpop.f32.mrb[2].mxu0 }
 0x2c8   : > { %v6924_v7 = vadd.f32 %v3242_v30, %v6917_v14  ;;  %v3244_v55 = vpop.f32.mrb[3].mxu0  ;;  %v8271_v26 = vmax.f32 %v6921_v45, 0.0 }
 0x2c9   : > { %v6927_v4 = vadd.f32 %v3244_v55, %v6917_v14  ;;  %v8272_v59 = vmax.f32 %v6919_v9, 0.0 }
 0x2ca   : > { %v8270_v53 = vmax.f32 %v6924_v7, 0.0 }
 0x2cb   : > { %v8269_v6 = vmax.f32 %v6927_v4, 0.0 }
 0x2cc   : > { %v3510_v15 = vpack.c.bf16 %v8270_v53, %v8271_v26 }
 0x2cd   : > { %v3511_v17 = vpack.c.bf16 %v8269_v6, %v8272_v59  ;;  %v3248_v13 = vpop.f32.mrb[4].mxu0 }
 0x2ce   : > { %v3250_v11 = vpop.f32.mrb[5].mxu0  ;;  %v6949_v63 = vadd.f32 %v3248_v13, %v6937_v12 }
 0x2cf   : > { %v6946_v33 = vadd.f32 %v3250_v11, %v6937_v12  ;;  %v3252_v57 = vpop.f32.mrb[6].mxu0  ;;  %3686 = vmatprep.subr.bf16.mxu0 %v3511_v17 }
 0x2d0   : > { %v6952_v47 = vadd.f32 %v3252_v57, %v6943_v51  ;;  %v3254_v49 = vpop.f32.mrb[7].mxu0  ;;  %3687 = vmatpush1.bf16.msra.mxu0 %v3510_v15  ;;  %v8263_v8 = vmax.f32 %v6949_v63, 0.0 }
 0x2d1   : > { %v6955_v25 = vadd.f32 %v3254_v49, %v6943_v51  ;;  %v8268_v16 = vmax.f32 %v6946_v33, 0.0 }
 0x2d2   : > { %v8258_v43 = vmax.f32 %v6952_v47, 0.0 }
 0x2d3   : > { %v8257_v1 = vmax.f32 %v6955_v25, 0.0 }
 0x2d4   : > { %v3514_v34 = vpack.c.bf16 %v8258_v43, %v8263_v8 }
 0x2d5   : > { %v3515_v61 = vpack.c.bf16 %v8257_v1, %v8268_v16  ;;  %v3258_v22 = vpop.f32.mrb[8].mxu0 }
 0x2d6   : > { %v3260_v44 = vpop.f32.mrb[9].mxu0  ;;  %v6977_v18 = vadd.f32 %v3258_v22, %v6967_v19 }
 0x2d7   : > { %v6974_v41 = vadd.f32 %v3260_v44, %v6967_v19  ;;  %v3262_v3 = vpop.f32.mrb[10].mxu0  ;;  %3688 = vmatprep.subr.bf16.mxu0 %v3515_v61  ;;  %v7027_v61 = vpop.permute.xlu0 %3091 }
 0x2d8   : > { %v6980_v10 = vadd.f32 %v3262_v3, %v6961_v39  ;;  %v3264_v27 = vpop.f32.mrb[11].mxu0  ;;  %3689 = vmatpush1.bf16.msra.mxu0 %v3514_v34  ;;  %v8256_v5 = vmax.f32 %v6977_v18, 0.0  ;;  %v7032_v3 = vpop.permute.xlu1 %3086 }
 0x2d9   : > { %v6983_v21 = vadd.f32 %v3264_v27, %v6961_v39  ;;  %v8255_v24 = vmax.f32 %v6974_v41, 0.0 }
 0x2da   : > { %v8254_v31 = vmax.f32 %v6980_v10, 0.0 }
 0x2db   : > { %v8253_v32 = vmax.f32 %v6983_v21, 0.0  ;;  %v3351_v60 = vpop.f32.mrb[0].mxu1 }
 0x2dc   : > { %v3353_v54 = vpop.f32.mrb[1].mxu1  ;;  %v3518_v46 = vpack.c.bf16 %v8254_v31, %v8256_v5  ;;  %v7003_v58 = vadd.f32 %v3351_v60, %v3047_v56 }
 0x2dd   : > { %v3519_v52 = vpack.c.bf16 %v8253_v32, %v8255_v24  ;;  %v3268_v23 = vpop.f32.mrb[12].mxu0  ;;  %v6997_v2 = vadd.f32 %v3353_v54, %v3047_v56  ;;  %v3355_v62 = vpop.f32.mrb[2].mxu1 }
 0x2de   : > { %v3270_v48 = vpop.f32.mrb[13].mxu0  ;;  %v7006_v42 = vadd.f32 %v3355_v62, %v6917_v14  ;;  %v3357_v29 = vpop.f32.mrb[3].mxu1  ;;  %v7015_v17 = vadd.f32 %v3268_v23, %v6990_v50  ;;  %v8252_v22 = vmax.f32 %v7003_v58, 0.0 }
 0x2df   : > { %v7009_v0 = vadd.f32 %v3270_v48, %v6990_v50  ;;  %v3272_v30 = vpop.f32.mrb[14].mxu0  ;;  %3690 = vmatprep.subr.bf16.mxu0 %v3519_v52  ;;  %v7012_v55 = vadd.f32 %v3357_v29, %v6917_v14  ;;  %v8247_v57 = vmax.f32 %v6997_v2, 0.0 }
 0x2e0   : > { %v7018_v13 = vadd.f32 %v3272_v30, %v6986_v20  ;;  %v3274_v56 = vpop.f32.mrb[15].mxu0  ;;  %3691 = vmatpush1.bf16.msra.mxu0 %v3518_v46  ;;  %v8246_v15 = vmax.f32 %v7006_v42, 0.0  ;;  %v8251_v54 = vmax.f32 %v7015_v17, 0.0 }
 0x2e1   : > { %v7022_v11 = vadd.f32 %v3274_v56, %v6986_v20  ;;  %v8245_v49 = vmax.f32 %v7012_v55, 0.0  ;;  %v8249_v34 = vmax.f32 %v7009_v0, 0.0 }
 0x2e2   : > { %v8250_v14 = vmax.f32 %v7018_v13, 0.0  ;;  %v3512_v52 = vpack.c.bf16 %v8246_v15, %v8252_v22 }
 0x2e3   : > { %v8248_v44 = vmax.f32 %v7022_v11, 0.0  ;;  %v3513_v27 = vpack.c.bf16 %v8245_v49, %v8247_v57  ;;  %v3361_v60 = vpop.f32.mrb[4].mxu1 }
 0x2e4   : > { %v3363_v23 = vpop.f32.mrb[5].mxu1  ;;  %v3522_v30 = vpack.c.bf16 %v8250_v14, %v8251_v54  ;;  %v7055_v49 = vadd.f32 %v3361_v60, %v6937_v12 }
 0x2e5   : > { %v3523_v62 = vpack.c.bf16 %v8248_v44, %v8249_v34  ;;  %v3278_v46 = vpop.f32.mrb[16].mxu0  ;;  %v7048_v48 = vadd.f32 %v3363_v23, %v6937_v12  ;;  %v3365_v29 = vpop.f32.mrb[6].mxu1  ;;  %3799 = vmatprep.subr.bf16.mxu1 %v3513_v27 }
 0x2e6   : > { %v3280_v56 = vpop.f32.mrb[17].mxu0  ;;  %v7058_v15 = vadd.f32 %v3365_v29, %v6943_v51  ;;  %v3367_v57 = vpop.f32.mrb[7].mxu1  ;;  %3800 = vmatpush1.bf16.msra.mxu1 %v3512_v52  ;;  %v7067_v34 = vadd.f32 %v3278_v46, %v7032_v3  ;;  %v8262_v46 = vmax.f32 %v7055_v49, 0.0 }
 0x2e7   : > { %v7061_v44 = vadd.f32 %v3280_v56, %v7032_v3  ;;  %v3282_v23 = vpop.f32.mrb[18].mxu0  ;;  %3692 = vmatprep.subr.bf16.mxu0 %v3523_v62  ;;  %v7064_v27 = vadd.f32 %v3367_v57, %v6943_v51  ;;  %v8260_v29 = vmax.f32 %v7048_v48, 0.0  ;;  %v7079_v57 = vpop.permute.xlu0 %3101 }
 0x2e8   : > { %v7070_v14 = vadd.f32 %v3282_v23, %v7027_v61  ;;  %v3284_v12 = vpop.f32.mrb[19].mxu0  ;;  %3693 = vmatpush1.bf16.msra.mxu0 %v3522_v30  ;;  %v8261_v60 = vmax.f32 %v7058_v15, 0.0  ;;  %v7084_v30 = vpop.permute.xlu1 %3096  ;;  %v8267_v22 = vmax.f32 %v7067_v34, 0.0 }
 0x2e9   : > { %v7074_v52 = vadd.f32 %v3284_v12, %v7027_v61  ;;  %v8259_v62 = vmax.f32 %v7064_v27, 0.0  ;;  %v8265_v56 = vmax.f32 %v7061_v44, 0.0 }
 0x2ea   : > { %v8266_v51 = vmax.f32 %v7070_v14, 0.0  ;;  %v3516_v32 = vpack.c.bf16 %v8261_v60, %v8262_v46 }
 0x2eb   : > { %v8264_v23 = vmax.f32 %v7074_v52, 0.0  ;;  %v3517_v12 = vpack.c.bf16 %v8259_v62, %v8260_v29  ;;  %v3371_v54 = vpop.f32.mrb[8].mxu1 }
 0x2ec   : > { %v3373_v31 = vpop.f32.mrb[9].mxu1  ;;  %v3526_v62 = vpack.c.bf16 %v8266_v51, %v8267_v22  ;;  %v7107_v60 = vadd.f32 %v3371_v54, %v6967_v19 }
 0x2ed   : > { %v3527_v24 = vpack.c.bf16 %v8264_v23, %v8265_v56  ;;  %v3288_v5 = vpop.f32.mrb[20].mxu0  ;;  %v7100_v1 = vadd.f32 %v3373_v31, %v6967_v19  ;;  %v3375_v43 = vpop.f32.mrb[10].mxu1  ;;  %3801 = vmatprep.subr.bf16.mxu1 %v3517_v12 }
 0x2ee   : > { %v3290_v29 = vpop.f32.mrb[21].mxu0  ;;  %v7110_v46 = vadd.f32 %v3375_v43, %v6961_v39  ;;  %v3377_v8 = vpop.f32.mrb[11].mxu1  ;;  %3802 = vmatpush1.bf16.msra.mxu1 %v3516_v32  ;;  %v7119_v56 = vadd.f32 %v3288_v5, %v7084_v30  ;;  %v8278_v5 = vmax.f32 %v7107_v60, 0.0 }
 0x2ef   : > { %v7113_v23 = vadd.f32 %v3290_v29, %v7084_v30  ;;  %v3292_v31 = vpop.f32.mrb[22].mxu0  ;;  %3694 = vmatprep.subr.bf16.mxu0 %v3527_v24  ;;  %v7116_v12 = vadd.f32 %v3377_v8, %v6961_v39  ;;  %v8275_v54 = vmax.f32 %v7100_v1, 0.0  ;;  %v7131_v39 = vpop.permute.xlu0 %3111 }
 0x2f0   : > { %v7122_v51 = vadd.f32 %v3292_v31, %v7079_v57  ;;  %v3294_v19 = vpop.f32.mrb[23].mxu0  ;;  %3695 = vmatpush1.bf16.msra.mxu0 %v3526_v62  ;;  %v8277_v43 = vmax.f32 %v7110_v46, 0.0  ;;  %v7136_v62 = vpop.permute.xlu1 %3106  ;;  %v8282_v16 = vmax.f32 %v7119_v56, 0.0 }
 0x2f1   : > { %v7126_v32 = vadd.f32 %v3294_v19, %v7079_v57  ;;  %v8274_v24 = vmax.f32 %v7116_v12, 0.0  ;;  %v8281_v29 = vmax.f32 %v7113_v23, 0.0 }
 0x2f2   : > { %8435 = vst [vmem:[#allocation10_spill] sm:$0xff] %v7122_v51  ;;  %v3520_v6 = vpack.c.bf16 %v8277_v43, %v8278_v5 }
 0x2f3   : > { %8436 = vst [vmem:[#allocation11_spill] sm:$0xff] %v7126_v32  ;;  %v8280_v31 = vmax.f32 %v7126_v32, 0.0  ;;  %v3521_v19 = vpack.c.bf16 %v8274_v24, %v8275_v54  ;;  %v3381_v22 = vpop.f32.mrb[12].mxu1  ;;  %v8438_v24 = vmax.f32 %v7122_v51, 0.0 }
 0x2f4   : > { %v3383_v53 = vpop.f32.mrb[13].mxu1  ;;  %v7159_v43 = vadd.f32 %v3381_v22, %v6990_v50 }
 0x2f5   : > { %v3531_v26 = vpack.c.bf16 %v8280_v31, %v8281_v29  ;;  %v3298_v59 = vpop.f32.mrb[24].mxu0  ;;  %v7152_v8 = vadd.f32 %v3383_v53, %v6990_v50  ;;  %v3385_v28 = vpop.f32.mrb[14].mxu1  ;;  %3803 = vmatprep.subr.bf16.mxu1 %v3521_v19  ;;  %v3530_v54 = vpack.c.bf16 %v8438_v24, %v8282_v16 }
 0x2f6   : > { %v3300_v38 = vpop.f32.mrb[25].mxu0  ;;  %8439 = vst [vmem:[#allocation13_spill] sm:$0xff] %v7159_v43  ;;  %v7162_v5 = vadd.f32 %v3385_v28, %v6986_v20  ;;  %v3387_v37 = vpop.f32.mrb[15].mxu1  ;;  %3804 = vmatpush1.bf16.msra.mxu1 %v3520_v6  ;;  %v7171_v29 = vadd.f32 %v3298_v59, %v7136_v62  ;;  %v8292_v59 = vmax.f32 %v7159_v43, 0.0 }
 0x2f7   : > { %8437 = vst [vmem:[#allocation12_spill] sm:$0xff] %v7152_v8  ;;  %v7165_v31 = vadd.f32 %v3300_v38, %v7136_v62  ;;  %v3302_v53 = vpop.f32.mrb[26].mxu0  ;;  %3696 = vmatprep.subr.bf16.mxu0 %v3531_v26  ;;  %v7168_v19 = vadd.f32 %v3387_v37, %v6986_v20  ;;  %v8290_v38 = vmax.f32 %v7152_v8, 0.0  ;;  %v7183_v20 = vpop.permute.xlu0 %3121 }
 0x2f8   : > { %v7174_v24 = vadd.f32 %v3302_v53, %v7131_v39  ;;  %v3304_v50 = vpop.f32.mrb[27].mxu0  ;;  %3697 = vmatpush1.bf16.msra.mxu0 %v3530_v54  ;;  %v7188_v54 = vpop.permute.xlu1 %3116  ;;  %v8296_v28 = vmax.f32 %v7171_v29, 0.0  ;;  %v8444_v37 = vmax.f32 %v7162_v5, 0.0 }
 0x2f9   : > { %8440 = vst [vmem:[#allocation14_spill] sm:$0xff] %v7165_v31  ;;  %8441 = vst [vmem:[#allocation15_spill] sm:$0xff] %v7168_v19  ;;  %v7178_v6 = vadd.f32 %v3304_v50, %v7131_v39  ;;  %v8289_v26 = vmax.f32 %v7168_v19, 0.0  ;;  %v8295_v22 = vmax.f32 %v7165_v31, 0.0 }
 0x2fa   : > { %8442 = vst [vmem:[#allocation16_spill] sm:$0xff] %v7174_v24  ;;  %v3524_v36 = vpack.c.bf16 %v8444_v37, %v8292_v59 }
 0x2fb   : > { %8443 = vst [vmem:[#allocation17_spill] sm:$0xff] %v7178_v6  ;;  %v8294_v53 = vmax.f32 %v7178_v6, 0.0  ;;  %v3525_v50 = vpack.c.bf16 %v8289_v26, %v8290_v38  ;;  %v3391_v16 = vpop.f32.mrb[16].mxu1  ;;  %v8446_v26 = vmax.f32 %v7174_v24, 0.0 }
 0x2fc   : > { %v3393_v35 = vpop.f32.mrb[17].mxu1  ;;  %v7211_v37 = vadd.f32 %v3391_v16, %v7032_v3 }
 0x2fd   : > { %v3535_v32 = vpack.c.bf16 %v8294_v53, %v8295_v22  ;;  %v3308_v51 = vpop.f32.mrb[28].mxu0  ;;  %v7204_v8 = vadd.f32 %v3393_v35, %v7032_v3  ;;  %v3395_v19 = vpop.f32.mrb[18].mxu1  ;;  %3805 = vmatprep.subr.bf16.mxu1 %v3525_v50  ;;  %v3534_v38 = vpack.c.bf16 %v8446_v26, %v8296_v28 }
 0x2fe   : > { %v3310_v43 = vpop.f32.mrb[29].mxu0  ;;  %v7214_v59 = vadd.f32 %v3395_v19, %v7027_v61  ;;  %v3397_v6 = vpop.f32.mrb[19].mxu1  ;;  %3806 = vmatpush1.bf16.msra.mxu1 %v3524_v36  ;;  %v7223_v22 = vadd.f32 %v3308_v51, %v7188_v54  ;;  %v8304_v19 = vmax.f32 %v7211_v37, 0.0 }
 0x2ff   : > { %8445 = vst [vmem:[#allocation18_spill] sm:$0xff] %v7204_v8  ;;  %v7217_v53 = vadd.f32 %v3310_v43, %v7188_v54  ;;  %v3312_v35 = vpop.f32.mrb[30].mxu0  ;;  %3698 = vmatprep.subr.bf16.mxu0 %v3535_v32  ;;  %v7220_v50 = vadd.f32 %v3397_v6, %v7027_v61  ;;  %v8301_v43 = vmax.f32 %v7204_v8, 0.0 }
 0x300   : > { %v7226_v26 = vadd.f32 %v3312_v35, %v7183_v20  ;;  %v3314_v16 = vpop.f32.mrb[31].mxu0  ;;  %3699 = vmatpush1.bf16.msra.mxu0 %v3534_v38  ;;  %v8303_v3 = vmax.f32 %v7214_v59, 0.0 }
 0x301   : > { %8447 = vst [vmem:[#allocation19_spill] sm:$0xff] %v7220_v50  ;;  %v7230_v36 = vadd.f32 %v3314_v16, %v7183_v20  ;;  %v8300_v32 = vmax.f32 %v7220_v50, 0.0  ;;  %v8307_v51 = vmax.f32 %v7217_v53, 0.0  ;;  %v8306_v16 = vmax.f32 %v7223_v22, 0.0 }
 0x302   : > { %v3528_v28 = vpack.c.bf16 %v8303_v3, %v8304_v19 }
 0x303   : > { %v8305_v6 = vmax.f32 %v7230_v36, 0.0  ;;  %v3529_v38 = vpack.c.bf16 %v8300_v32, %v8301_v43  ;;  %v3401_v35 = vpop.f32.mrb[20].mxu1  ;;  %v8448_v32 = vmax.f32 %v7226_v26, 0.0 }
 0x304   : > { %v3403_v61 = vpop.f32.mrb[21].mxu1  ;;  %v7259_v50 = vadd.f32 %v3401_v35, %v7084_v30 }
 0x305   : > { %v3539_v24 = vpack.c.bf16 %v8305_v6, %v8307_v51  ;;  %v7252_v31 = vadd.f32 %v3403_v61, %v7084_v30  ;;  %v3405_v8 = vpop.f32.mrb[22].mxu1  ;;  %3807 = vmatprep.subr.bf16.mxu1 %v3529_v38  ;;  %v3538_v43 = vpack.c.bf16 %v8448_v32, %v8306_v16  ;;  %v5133_v61 = vld [vmem:[%s8238_s4] sm:$0xff]  }
 0x306   : > { %v7262_v3 = vadd.f32 %v3405_v8, %v7079_v57  ;;  %v3407_v19 = vpop.f32.mrb[23].mxu1  ;;  %3808 = vmatpush1.bf16.msra.mxu1 %v3528_v28  ;;  %v8311_v8 = vmax.f32 %v7259_v50, 0.0 }
 0x307   : > { %3700 = vmatprep.subr.bf16.mxu0 %v3539_v24  ;;  %v7268_v38 = vadd.f32 %v3407_v19, %v7079_v57  ;;  %v8309_v32 = vmax.f32 %v7252_v31, 0.0 }
 0x308   : > { %8449 = vst [vmem:[#allocation20_spill] sm:$0xff] %v7262_v3  ;;  %3701 = vmatpush1.bf16.msra.mxu0 %v3538_v43  ;;  %v8310_v6 = vmax.f32 %v7262_v3, 0.0 }
 0x309   : > { %8450 = vst [vmem:[#allocation21_spill] sm:$0xff] %v7268_v38  ;;  %v8308_v30 = vmax.f32 %v7268_v38, 0.0 }
 0x30a   : > { %v3532_v57 = vpack.c.bf16 %v8310_v6, %v8311_v8 }
 0x30b   : > { %3719 = vmatmul.mubr.bf16.vlgmr.msra.gmra.mrb[32].mxu0 %v5133_v61  ;;  %v3533_v24 = vpack.c.bf16 %v8308_v30, %v8309_v32  ;;  %v3411_v28 = vpop.f32.mrb[24].mxu1  ;;  %v5134_v32 = vld [vmem:[%s8238_s4 + $0x8] sm:$0xff]  }
 0x30c   : > { %3728 = vmatprep.mubr.bf16.mxu0 %v8434_v40  ;;  %v3413_v43 = vpop.f32.mrb[25].mxu1  ;;  %v7287_v16 = vadd.f32 %v3411_v28, %v7136_v62 }
 0x30d   : > { %v7284_v19 = vadd.f32 %v3413_v43, %v7136_v62  ;;  %v3415_v35 = vpop.f32.mrb[26].mxu1  ;;  %3809 = vmatprep.subr.bf16.mxu1 %v3533_v24 }
 0x30e   : > { %8452 = vst [vmem:[#allocation23_spill] sm:$0xff] %v7287_v16  ;;  %v7290_v51 = vadd.f32 %v3415_v35, %v7131_v39  ;;  %v3417_v30 = vpop.f32.mrb[27].mxu1  ;;  %3810 = vmatpush1.bf16.msra.mxu1 %v3532_v57  ;;  %v8318_v62 = vmax.f32 %v7287_v16, 0.0  ;;  %v8465_v16 = vmax.f32 %v6946_v33, 0.0 }
 0x30f   : > { %8451 = vst [vmem:[#allocation22_spill] sm:$0xff] %v7284_v19  ;;  %v7296_v6 = vadd.f32 %v3417_v30, %v7131_v39  ;;  %v8316_v8 = vmax.f32 %v7284_v19, 0.0 }
 0x310   : > { %8453 = vst [vmem:[#allocation24_spill] sm:$0xff] %v7290_v51  ;;  %v8317_v43 = vmax.f32 %v7290_v51, 0.0 }
 0x311   : > { %8454 = vst [vmem:[#allocation25_spill] sm:$0xff] %v7296_v6  ;;  %v8315_v24 = vmax.f32 %v7296_v6, 0.0 }
 0x312   : > { %v3536_v39 = vpack.c.bf16 %v8317_v43, %v8318_v62 }
 0x313   : > { %3729 = vmatmul.mubr.bf16.gmra.mrb[36].mxu0 %v5134_v32  ;;  %v3537_v28 = vpack.c.bf16 %v8315_v24, %v8316_v8  ;;  %v3421_v57 = vpop.f32.mrb[28].mxu1  ;;  %v5135_v8 = vld [vmem:[%s8238_s4 + $0x10] sm:$0xff]  }
 0x314   : > { %3738 = vmatprep.mubr.bf16.mxu0 %v8434_v40  ;;  %v3423_v30 = vpop.f32.mrb[29].mxu1  ;;  %v7315_v3 = vadd.f32 %v3421_v57, %v7188_v54  ;;  %v5137_v57 = vld [vmem:[%s8238_s4 + $0x20] sm:$0xff]  }
 0x315   : > { %v7312_v35 = vadd.f32 %v3423_v30, %v7188_v54  ;;  %v3425_v38 = vpop.f32.mrb[30].mxu1  ;;  %3811 = vmatprep.subr.bf16.mxu1 %v3537_v28 }
 0x316   : > { %8456 = vst [vmem:[#allocation27_spill] sm:$0xff] %v7315_v3  ;;  %v7318_v6 = vadd.f32 %v3425_v38, %v7183_v20  ;;  %v3427_v24 = vpop.f32.mrb[31].mxu1  ;;  %3812 = vmatpush1.bf16.msra.mxu1 %v3536_v39  ;;  %v8321_v54 = vmax.f32 %v7315_v3, 0.0  ;;  %v5138_v39 = vld [vmem:[%s8238_s4 + $0x28] sm:$0xff]  }
 0x317   : > { %8455 = vst [vmem:[#allocation26_spill] sm:$0xff] %v7312_v35  ;;  %v7324_v43 = vadd.f32 %v3427_v24, %v7183_v20  ;;  %v8322_v62 = vmax.f32 %v7312_v35, 0.0  ;;  %v5136_v24 = vld [vmem:[%s8238_s4 + $0x18] sm:$0xff]  }
 0x318   : > { %8457 = vst [vmem:[#allocation28_spill] sm:$0xff] %v7318_v6  ;;  %v8320_v30 = vmax.f32 %v7318_v6, 0.0 }
 0x319   : > { %8458 = vst [vmem:[#allocation29_spill] sm:$0xff] %v7324_v43  ;;  %v8319_v28 = vmax.f32 %v7324_v43, 0.0  ;;  %v8461_v43 = vmax.f32 %v6921_v45, 0.0 }
 0x31a   : > { %v3540_v20 = vpack.c.bf16 %v8320_v30, %v8321_v54 }
 0x31b   : > { %3739 = vmatmul.mubr.bf16.gmra.mrb[40].mxu0 %v5135_v8  ;;  %v3541_v38 = vpack.c.bf16 %v8319_v28, %v8322_v62 }
 0x31c   : > { %3748 = vmatprep.mubr.bf16.mxu0 %v8434_v40 }
 0x31d   : > { %3813 = vmatprep.subr.bf16.mxu1 %v3541_v38 }
 0x31e   : > { %3814 = vmatpush1.bf16.msra.mxu1 %v3540_v20 }
 0x321   : > { %3832 = vmatmul.mubr.bf16.vlgmr.msra.gmra.mrb[32].mxu1 %v5133_v61  ;;  %v5139_v61 = vld [vmem:[%s8238_s4 + $0x30] sm:$0xff]  }
 0x322   : > { %3841 = vmatprep.mubr.bf16.mxu1 %v8434_v40 }
 0x323   : > { %3749 = vmatmul.mubr.bf16.gmra.mrb[44].mxu0 %v5136_v24 }
 0x324   : > { %3758 = vmatprep.mubr.bf16.mxu0 %v8434_v40 }
 0x329   : > { %3842 = vmatmul.mubr.bf16.gmra.mrb[36].mxu1 %v5134_v32  ;;  %v5140_v32 = vld [vmem:[%s8238_s4 + $0x38] sm:$0xff]  }
 0x32a   : > { %3851 = vmatprep.mubr.bf16.mxu1 %v8434_v40 }
 0x32b   : > { %3759 = vmatmul.mubr.bf16.gmra.mrb[48].mxu0 %v5137_v57 }
 0x32c   : > { %3768 = vmatprep.mubr.bf16.mxu0 %v8434_v40 }
 0x331   : > { %3852 = vmatmul.mubr.bf16.gmra.mrb[40].mxu1 %v5135_v8  ;;  %v7367_v8 = vpop.permute.xlu1 %3560 }
 0x332   : > { %3861 = vmatprep.mubr.bf16.mxu1 %v8434_v40 }
 0x333   : > { %3769 = vmatmul.mubr.bf16.gmra.mrb[52].mxu0 %v5138_v39 }
 0x334   : > { %3778 = vmatprep.mubr.bf16.mxu0 %v8434_v40 }
 0x335   : > { %v7392_v51 = vpop.permute.xlu1 %3570 }
 0x339   : > { %3862 = vmatmul.mubr.bf16.gmra.mrb[44].mxu1 %v5136_v24 }
 0x33a   : > { %3871 = vmatprep.mubr.bf16.mxu1 %v8434_v40 }
 0x33b   : > { %3779 = vmatmul.mubr.bf16.gmra.mrb[56].mxu0 %v5139_v61 }
 0x33c   : > { %3788 = vmatprep.mubr.bf16.mxu0 %v8434_v40 }
 0x341   : > { %3872 = vmatmul.mubr.bf16.gmra.mrb[48].mxu1 %v5137_v57  ;;  %v7370_v57 = vpop.permute.xlu0 %3565 }
 0x342   : > { %3881 = vmatprep.mubr.bf16.mxu1 %v8434_v40 }
 0x343   : > { %3789 = vmatmul.mubr.bf16.gmra.mrb[60].mxu0 %v5140_v32 }
 0x344   : > { %4266 = vmatprep.mubr.bf16.mxu0 %v8434_v40 }
 0x345   : > { %v7396_v45 = vpop.permute.xlu0 %3575 }
 0x349   : > { %3882 = vmatmul.mubr.bf16.gmra.mrb[52].mxu1 %v5138_v39 }
 0x34a   : > { %3891 = vmatprep.mubr.bf16.mxu1 %v8434_v40 }
 0x351   : > { %3892 = vmatmul.mubr.bf16.gmra.mrb[56].mxu1 %v5139_v61  ;;  %v8459_v61 = vmax.f32 %v6919_v9, 0.0 }
 0x352   : > { %3901 = vmatprep.mubr.bf16.mxu1 %v8434_v40 }
 0x359   : > { %3902 = vmatmul.mubr.bf16.gmra.mrb[60].mxu1 %v5140_v32 }
 0x35a   : > { %4379 = vmatprep.mubr.bf16.mxu1 %v8434_v40 }
 0x3de   : > { %v3720_v38 = vpop.f32.mrb[32].mxu0 }
 0x3df   : > { %v3721_v20 = vadd.f32 %v3720_v38, %v7367_v8  ;;  %v3722_v24 = vpop.f32.mrb[33].mxu0  ;;  %v8462_v38 = vmax.f32 %v6924_v7, 0.0 }
 0x3e0   : > { %v3723_v28 = vadd.f32 %v3722_v24, %v7367_v8  ;;  %v3724_v30 = vpop.f32.mrb[34].mxu0  ;;  %v8463_v24 = vmax.f32 %v6927_v4, 0.0 }
 0x3e1   : > { %v3725_v39 = vadd.f32 %v3724_v30, %v7370_v57  ;;  %v3726_v54 = vpop.f32.mrb[35].mxu0  ;;  %v7381_v6 = vadd.f32 %v3721_v20, %v8461_v43 }
 0x3e2   : > { %v7376_v62 = vadd.f32 %v3723_v28, %v8459_v61  ;;  %v3727_v32 = vadd.f32 %v3726_v54, %v7370_v57 }
 0x3e3   : > { %v7385_v3 = vadd.f32 %v3725_v39, %v8462_v38  ;;  %v8334_v43 = vmax.f32 %v7381_v6, 0.0 }
 0x3e4   : > { %8460 = vst [vmem:[#allocation30_spill] sm:$0xff] %v7376_v62  ;;  %v7389_v35 = vadd.f32 %v3727_v32, %v8463_v24  ;;  %v8332_v9 = vmax.f32 %v7376_v62, 0.0  ;;  %v8467_v62 = vmax.f32 %v6949_v63, 0.0 }
 0x3e5   : > { %v8333_v30 = vmax.f32 %v7385_v3, 0.0 }
 0x3e6   : > { %8464 = vst [vmem:[#allocation31_spill] sm:$0xff] %v7389_v35  ;;  %v8331_v28 = vmax.f32 %v7389_v35, 0.0  ;;  %v3730_v54 = vpop.f32.mrb[36].mxu0 }
 0x3e7   : > { %v3731_v7 = vadd.f32 %v3730_v54, %v7392_v51  ;;  %v3732_v20 = vpop.f32.mrb[37].mxu0  ;;  %v4057_v32 = vpack.c.bf16 %v8333_v30, %v8334_v43  ;;  %v8470_v30 = vmax.f32 %v6955_v25, 0.0  ;;  %v7427_v43 = vpop.permute.xlu0 %3585 }
 0x3e8   : > { %v3733_v4 = vadd.f32 %v3732_v20, %v7392_v51  ;;  %v3734_v39 = vpop.f32.mrb[38].mxu0  ;;  %v4058_v61 = vpack.c.bf16 %v8331_v28, %v8332_v9  ;;  %v8468_v28 = vmax.f32 %v6952_v47, 0.0 }
 0x3e9   : > { %v3735_v38 = vadd.f32 %v3734_v39, %v7396_v45  ;;  %v3736_v24 = vpop.f32.mrb[39].mxu0  ;;  %v7417_v19 = vadd.f32 %v3731_v7, %v8467_v62 }
 0x3ea   : > { %v7412_v54 = vadd.f32 %v3733_v4, %v8465_v16  ;;  %v3737_v20 = vadd.f32 %v3736_v24, %v7396_v45  ;;  %4234 = vmatprep.subr.bf16.mxu0 %v4058_v61  ;;  %v7430_v16 = vpop.permute.xlu1 %3580 }
 0x3eb   : > { %v7421_v9 = vadd.f32 %v3735_v38, %v8468_v28  ;;  %4235 = vmatpush1.bf16.msra.mxu0 %v4057_v32  ;;  %v8340_v47 = vmax.f32 %v7417_v19, 0.0  ;;  %v8472_v38 = vmax.f32 %v6977_v18, 0.0  ;;  %v8477_v18 = vmax.f32 %v6983_v21, 0.0 }
 0x3ec   : > { %8466 = vst [vmem:[#allocation32_spill] sm:$0xff] %v7412_v54  ;;  %v7425_v39 = vadd.f32 %v3737_v20, %v8470_v30  ;;  %v8338_v4 = vmax.f32 %v7412_v54, 0.0 }
 0x3ed   : > { %8469 = vst [vmem:[#allocation33_spill] sm:$0xff] %v7421_v9  ;;  %v8339_v33 = vmax.f32 %v7421_v9, 0.0 }
 0x3ee   : > { %8471 = vst [vmem:[#allocation34_spill] sm:$0xff] %v7425_v39  ;;  %v8337_v63 = vmax.f32 %v7425_v39, 0.0  ;;  %v3740_v62 = vpop.f32.mrb[40].mxu0 }
 0x3ef   : > { %v3741_v28 = vadd.f32 %v3740_v62, %v7430_v16  ;;  %v3742_v7 = vpop.f32.mrb[41].mxu0  ;;  %v4061_v32 = vpack.c.bf16 %v8339_v33, %v8340_v47  ;;  %v7459_v33 = vpop.permute.xlu0 %3595  ;;  %v8479_v47 = vmax.f32 %v7003_v58, 0.0  ;;  %v8483_v58 = vmax.f32 %v7015_v17, 0.0 }
 0x3f0   : > { %v3743_v25 = vadd.f32 %v3742_v7, %v7430_v16  ;;  %v3744_v30 = vpop.f32.mrb[42].mxu0  ;;  %v4062_v61 = vpack.c.bf16 %v8337_v63, %v8338_v4  ;;  %v8474_v7 = vmax.f32 %v6974_v41, 0.0  ;;  %v8475_v63 = vmax.f32 %v6980_v10, 0.0 }
 0x3f1   : > { %v7447_v24 = vadd.f32 %v3741_v28, %v8472_v38  ;;  %v3745_v20 = vadd.f32 %v3744_v30, %v7427_v43  ;;  %v3746_v62 = vpop.f32.mrb[43].mxu0  ;;  %v7465_v30 = vpop.permute.xlu1 %3590  ;;  %v8487_v17 = vmax.f32 %v7018_v13, 0.0 }
 0x3f2   : > { %v7452_v35 = vadd.f32 %v3743_v25, %v8474_v7  ;;  %v3747_v54 = vadd.f32 %v3746_v62, %v7427_v43  ;;  %4236 = vmatprep.subr.bf16.mxu0 %v4062_v61 }
 0x3f3   : > { %8473 = vst [vmem:[#allocation35_spill] sm:$0xff] %v7447_v24  ;;  %v7457_v4 = vadd.f32 %v3745_v20, %v8475_v63  ;;  %4237 = vmatpush1.bf16.msra.mxu0 %v4061_v32  ;;  %v8345_v41 = vmax.f32 %v7447_v24, 0.0 }
 0x3f4   : > { %v7463_v28 = vadd.f32 %v3747_v54, %v8477_v18  ;;  %v3833_v38 = vpop.f32.mrb[32].mxu1 }
 0x3f5   : > { %8476 = vst [vmem:[#allocation36_spill] sm:$0xff] %v7457_v4  ;;  %v8344_v25 = vmax.f32 %v7457_v4, 0.0  ;;  %v3834_v61 = vadd.f32 %v3833_v38, %v7367_v8  ;;  %v3835_v62 = vpop.f32.mrb[33].mxu1 }
 0x3f6   : > { %8478 = vst [vmem:[#allocation37_spill] sm:$0xff] %v7463_v28  ;;  %v3750_v32 = vpop.f32.mrb[44].mxu0  ;;  %v3836_v20 = vadd.f32 %v3835_v62, %v7367_v8  ;;  %v3837_v21 = vpop.f32.mrb[34].mxu1  ;;  %v8480_v8 = vmax.f32 %v7452_v35, 0.0  ;;  %v8481_v62 = vmax.f32 %v7463_v28, 0.0  ;;  %v8485_v28 = vmax.f32 %v7009_v0, 0.0 }
 0x3f7   : > { %v4065_v54 = vpack.c.bf16 %v8344_v25, %v8345_v41  ;;  %v3751_v7 = vadd.f32 %v3750_v32, %v7465_v30  ;;  %v3752_v18 = vpop.f32.mrb[45].mxu0  ;;  %v7480_v38 = vadd.f32 %v3834_v61, %v8479_v47  ;;  %v3838_v10 = vadd.f32 %v3837_v21, %v7370_v57  ;;  %v3839_v39 = vpop.f32.mrb[35].mxu1 }
 0x3f8   : > { %v3753_v63 = vadd.f32 %v3752_v18, %v7465_v30  ;;  %v3754_v9 = vpop.f32.mrb[46].mxu0  ;;  %v4066_v24 = vpack.c.bf16 %v8481_v62, %v8480_v8  ;;  %v8482_v25 = vmax.f32 %v6997_v2, 0.0  ;;  %v3840_v32 = vadd.f32 %v3839_v39, %v7370_v57 }
 0x3f9   : > { %v7495_v47 = vadd.f32 %v3751_v7, %v8483_v58  ;;  %v3755_v61 = vadd.f32 %v3754_v9, %v7459_v33  ;;  %v3756_v21 = vpop.f32.mrb[47].mxu0  ;;  %v8484_v18 = vmax.f32 %v7006_v42, 0.0  ;;  %v8486_v57 = vmax.f32 %v7012_v55, 0.0  ;;  %v7515_v9 = vpop.permute.xlu0 %3605 }
 0x3fa   : > { %v7490_v41 = vadd.f32 %v3836_v20, %v8482_v25  ;;  %v7504_v8 = vadd.f32 %v3753_v63, %v8485_v28  ;;  %v3757_v2 = vadd.f32 %v3756_v21, %v7459_v33  ;;  %4238 = vmatprep.subr.bf16.mxu0 %v4066_v24  ;;  %v8349_v42 = vmax.f32 %v7480_v38, 0.0  ;;  %v7523_v24 = vpop.permute.xlu1 %3600 }
 0x3fb   : > { %v7500_v4 = vadd.f32 %v3838_v10, %v8484_v18  ;;  %v7509_v39 = vadd.f32 %v3840_v32, %v8486_v57  ;;  %v7513_v25 = vadd.f32 %v3755_v61, %v8487_v17  ;;  %4239 = vmatpush1.bf16.msra.mxu0 %v4065_v54  ;;  %v8489_v28 = vmax.f32 %v7022_v11, 0.0 }
 0x3fc   : > { %v8351_v55 = vmax.f32 %v7490_v41, 0.0  ;;  %v3843_v13 = vpop.f32.mrb[36].mxu1  ;;  %v8353_v20 = vmax.f32 %v7495_v47, 0.0  ;;  %v8357_v32 = vmax.f32 %v7504_v8, 0.0 }
 0x3fd   : > { %8488 = vst [vmem:[#allocation38_spill] sm:$0xff] %v7513_v25  ;;  %v8348_v0 = vmax.f32 %v7500_v4, 0.0  ;;  %v7521_v10 = vadd.f32 %v3757_v2, %v8489_v28  ;;  %v8350_v63 = vmax.f32 %v7509_v39, 0.0  ;;  %v8352_v54 = vmax.f32 %v7513_v25, 0.0  ;;  %v3845_v62 = vpop.f32.mrb[37].mxu1 }
 0x3fe   : > { %v3844_v11 = vadd.f32 %v3843_v13, %v7392_v51  ;;  %v3760_v61 = vpop.f32.mrb[48].mxu0  ;;  %v3846_v21 = vadd.f32 %v3845_v62, %v7392_v51  ;;  %v3847_v18 = vpop.f32.mrb[38].mxu1  ;;  %v8490_v13 = vmax.f32 %v7055_v49, 0.0  ;;  %v8493_v49 = vmax.f32 %v7067_v34, 0.0 }
 0x3ff   : > { %v4059_v7 = vpack.c.bf16 %v8348_v0, %v8349_v42  ;;  %v4060_v2 = vpack.c.bf16 %v8350_v63, %v8351_v55  ;;  %v4069_v57 = vpack.c.bf16 %v8352_v54, %v8353_v20  ;;  %v3761_v17 = vadd.f32 %v3760_v61, %v7523_v24  ;;  %v3762_v28 = vpop.f32.mrb[49].mxu0  ;;  %v3849_v62 = vpop.f32.mrb[39].mxu1 }
 0x400   : > { %v7548_v0 = vadd.f32 %v3844_v11, %v8490_v13  ;;  %v3848_v51 = vadd.f32 %v3847_v18, %v7396_v45  ;;  %v3763_v42 = vadd.f32 %v3762_v28, %v7523_v24  ;;  %v3764_v58 = vpop.f32.mrb[50].mxu0  ;;  %v8491_v63 = vmax.f32 %v7521_v10, 0.0 }
 0x401   : > { %v8492_v54 = vmax.f32 %v7048_v48, 0.0  ;;  %v3850_v61 = vadd.f32 %v3849_v62, %v7396_v45  ;;  %4347 = vmatprep.subr.bf16.mxu1 %v4060_v2  ;;  %v7563_v11 = vadd.f32 %v3761_v17, %v8493_v49  ;;  %v3765_v18 = vadd.f32 %v3764_v58, %v7515_v9  ;;  %v3766_v28 = vpop.f32.mrb[51].mxu0 }
 0x402   : > { %v4070_v55 = vpack.c.bf16 %v8491_v63, %v8357_v32  ;;  %v8494_v13 = vmax.f32 %v7058_v15, 0.0  ;;  %4348 = vmatpush1.bf16.msra.mxu1 %v4059_v7  ;;  %v8495_v63 = vmax.f32 %v7061_v44, 0.0  ;;  %v8496_v45 = vmax.f32 %v7064_v27, 0.0  ;;  %v7583_v15 = vpop.permute.xlu0 %3615 }
 0x403   : > { %v7558_v20 = vadd.f32 %v3846_v21, %v8492_v54  ;;  %v3767_v54 = vadd.f32 %v3766_v28, %v7515_v9  ;;  %v8497_v21 = vmax.f32 %v7070_v14, 0.0  ;;  %v8356_v7 = vmax.f32 %v7548_v0, 0.0 }
 0x404   : > { %v7568_v25 = vadd.f32 %v3848_v51, %v8494_v13  ;;  %v7572_v48 = vadd.f32 %v3763_v42, %v8495_v63  ;;  %4240 = vmatprep.subr.bf16.mxu0 %v4070_v55  ;;  %v7577_v34 = vadd.f32 %v3850_v61, %v8496_v45  ;;  %v8498_v42 = vmax.f32 %v7074_v52, 0.0  ;;  %v7591_v55 = vpop.permute.xlu1 %3610  ;;  %v3853_v14 = vpop.f32.mrb[40].mxu1 }
 0x405   : > { %v7581_v58 = vadd.f32 %v3765_v18, %v8497_v21  ;;  %4241 = vmatpush1.bf16.msra.mxu0 %v4069_v57  ;;  %v8361_v27 = vmax.f32 %v7558_v20, 0.0  ;;  %v8360_v51 = vmax.f32 %v7563_v11, 0.0  ;;  %v3854_v52 = vadd.f32 %v3853_v14, %v7430_v16  ;;  %v3855_v61 = vpop.f32.mrb[41].mxu1 }
 0x406   : > { %v8355_v44 = vmax.f32 %v7568_v25, 0.0  ;;  %v7589_v2 = vadd.f32 %v3767_v54, %v8498_v42  ;;  %v8358_v17 = vmax.f32 %v7577_v34, 0.0  ;;  %v8365_v49 = vmax.f32 %v7572_v48, 0.0  ;;  %v3770_v28 = vpop.f32.mrb[52].mxu0  ;;  %v3857_v63 = vpop.f32.mrb[42].mxu1 }
 0x407   : > { %v8359_v57 = vmax.f32 %v7581_v58, 0.0  ;;  %v3856_v13 = vadd.f32 %v3855_v61, %v7430_v16  ;;  %v3771_v21 = vadd.f32 %v3770_v28, %v7591_v55  ;;  %v3772_v42 = vpop.f32.mrb[53].mxu0  ;;  %v8499_v14 = vmax.f32 %v7107_v60, 0.0  ;;  %v3859_v61 = vpop.f32.mrb[43].mxu1 }
 0x408   : > { %v4063_v62 = vpack.c.bf16 %v8355_v44, %v8356_v7  ;;  %v8362_v18 = vmax.f32 %v7589_v2, 0.0  ;;  %v4064_v54 = vpack.c.bf16 %v8358_v17, %v8361_v27  ;;  %v3858_v16 = vadd.f32 %v3857_v63, %v7427_v43  ;;  %v3774_v32 = vpop.f32.mrb[54].mxu0 }
 0x409   : > { %v4073_v45 = vpack.c.bf16 %v8359_v57, %v8360_v51  ;;  %v7616_v44 = vadd.f32 %v3854_v52, %v8499_v14  ;;  %v3773_v7 = vadd.f32 %v3772_v42, %v7591_v55  ;;  %v8500_v57 = vmax.f32 %v7100_v1, 0.0  ;;  %v3776_v42 = vpop.f32.mrb[55].mxu0 }
 0x40a   : > { %v4074_v17 = vpack.c.bf16 %v8362_v18, %v8365_v49  ;;  %v3860_v28 = vadd.f32 %v3859_v61, %v7427_v43  ;;  %4349 = vmatprep.subr.bf16.mxu1 %v4064_v54  ;;  %v8501_v60 = vmax.f32 %v7119_v56, 0.0  ;;  %v3775_v63 = vadd.f32 %v3774_v32, %v7583_v15 }
 0x40b   : > { %v7626_v51 = vadd.f32 %v3856_v13, %v8500_v57  ;;  %v8502_v14 = vmax.f32 %v7110_v46, 0.0  ;;  %4350 = vmatpush1.bf16.msra.mxu1 %v4063_v62  ;;  %v8504_v18 = vmax.f32 %v7113_v23, 0.0  ;;  %v3777_v57 = vadd.f32 %v3776_v42, %v7583_v15  ;;  %v8508_v13 = vld [vmem:[#allocation10_spill] sm:$0xff]  ;;  %v7651_v46 = vpop.permute.xlu0 %3625 }
 0x40c   : > { %v7631_v52 = vadd.f32 %v3771_v21, %v8501_v60  ;;  %4242 = vmatprep.subr.bf16.mxu0 %v4074_v17  ;;  %v8506_v43 = vmax.f32 %v7116_v12, 0.0  ;;  %v8509_v54 = vmax.f32 %v8508_v13, 0.0  ;;  %v8364_v62 = vmax.f32 %v7616_v44, 0.0  ;;  %v7659_v17 = vpop.permute.xlu1 %3620  ;;  %v3863_v61 = vpop.f32.mrb[44].mxu1 }
 0x40d   : > { %v7636_v27 = vadd.f32 %v3858_v16, %v8502_v14  ;;  %v7640_v1 = vadd.f32 %v3773_v7, %v8504_v18  ;;  %4243 = vmatpush1.bf16.msra.mxu0 %v4073_v45  ;;  %v8511_v7 = vld [vmem:[#allocation11_spill] sm:$0xff]  ;;  %v8368_v12 = vmax.f32 %v7626_v51, 0.0  ;;  %v3865_v42 = vpop.f32.mrb[45].mxu1 }
 0x40e   : > { %v7645_v56 = vadd.f32 %v3860_v28, %v8506_v43  ;;  %v7649_v32 = vadd.f32 %v3775_v63, %v8509_v54  ;;  %v8512_v18 = vmax.f32 %v8511_v7, 0.0  ;;  %v8372_v28 = vmax.f32 %v7631_v52, 0.0  ;;  %v3780_v43 = vpop.f32.mrb[56].mxu0  ;;  %v3867_v54 = vpop.f32.mrb[46].mxu1 }
 0x40f   : > { %8503 = vst [vmem:[#allocation39_spill] sm:$0xff] %v7636_v27  ;;  %8505 = vst [vmem:[#allocation40_spill] sm:$0xff] %v7640_v1  ;;  %v8363_v23 = vmax.f32 %v7636_v27, 0.0  ;;  %v3864_v63 = vadd.f32 %v3863_v61, %v7465_v30  ;;  %v3866_v13 = vadd.f32 %v3865_v42, %v7465_v30  ;;  %v3781_v61 = vadd.f32 %v3780_v43, %v7659_v17  ;;  %v3869_v42 = vpop.f32.mrb[47].mxu1 }
 0x410   : > { %8507 = vst [vmem:[#allocation41_spill] sm:$0xff] %v7645_v56  ;;  %8510 = vst [vmem:[#allocation10_spill] sm:$0xff] %v7649_v32  ;;  %v7657_v21 = vadd.f32 %v3777_v57, %v8512_v18  ;;  %v8367_v16 = vmax.f32 %v7645_v56, 0.0  ;;  %v8371_v45 = vmax.f32 %v7649_v32, 0.0  ;;  %v3868_v30 = vadd.f32 %v3867_v54, %v7459_v33  ;;  %v8518_v32 = vld [vmem:[#allocation12_spill] sm:$0xff] }
 0x411   : > { %v4067_v60 = vpack.c.bf16 %v8363_v23, %v8364_v62  ;;  %v3782_v23 = vpop.f32.mrb[57].mxu0  ;;  %v8513_v62 = vld [vmem:[#allocation13_spill] sm:$0xff]  ;;  %v3870_v43 = vadd.f32 %v3869_v42, %v7459_v33  ;;  %v8523_v54 = vmax.f32 %v7162_v5, 0.0  ;;  %v8527_v33 = vld [vmem:[#allocation15_spill] sm:$0xff]  ;;  %v7719_v5 = vpop.permute.xlu0 %3635 }
 0x412   : > { %v4068_v7 = vpack.c.bf16 %v8367_v16, %v8368_v12  ;;  %v4077_v18 = vpack.c.bf16 %v8371_v45, %v8372_v28  ;;  %v8514_v49 = vmax.f32 %v8513_v62, 0.0  ;;  %v3783_v14 = vadd.f32 %v3782_v23, %v7659_v17  ;;  %v3784_v27 = vpop.f32.mrb[58].mxu0 }
 0x413   : > { %v8516_v16 = vmax.f32 %v7640_v1, 0.0  ;;  %v8517_v12 = vmax.f32 %v7657_v21, 0.0  ;;  %v8519_v45 = vmax.f32 %v8518_v32, 0.0  ;;  %v3786_v23 = vpop.f32.mrb[59].mxu0  ;;  %v7704_v1 = vadd.f32 %v3868_v30, %v8523_v54  ;;  %v8533_v30 = vld [vmem:[#allocation17_spill] sm:$0xff] }
 0x414   : > { %v7684_v57 = vadd.f32 %v3864_v63, %v8514_v49  ;;  %4351 = vmatprep.subr.bf16.mxu1 %v4068_v7  ;;  %v8521_v49 = vmax.f32 %v7171_v29, 0.0  ;;  %v3785_v63 = vadd.f32 %v3784_v27, %v7651_v46  ;;  %v8530_v7 = vld [vmem:[#allocation16_spill] sm:$0xff]  ;;  %v8534_v42 = vmax.f32 %v8533_v30, 0.0  ;;  %v3873_v54 = vpop.f32.mrb[48].mxu1 }
 0x415   : > { %v4078_v56 = vpack.c.bf16 %v8517_v12, %v8516_v16  ;;  %v7694_v28 = vadd.f32 %v3866_v13, %v8519_v45  ;;  %8524 = vst [vmem:[#allocation42_spill] sm:$0xff] %v7704_v1  ;;  %4352 = vmatpush1.bf16.msra.mxu1 %v4067_v60  ;;  %v8525_v12 = vld [vmem:[#allocation14_spill] sm:$0xff]  ;;  %v3787_v45 = vadd.f32 %v3786_v23, %v7651_v46  ;;  %v8528_v13 = vmax.f32 %v8527_v33, 0.0 }
 0x416   : > { %8515 = vst [vmem:[#allocation11_spill] sm:$0xff] %v7684_v57  ;;  %v7699_v62 = vadd.f32 %v3781_v61, %v8521_v49  ;;  %v8526_v16 = vmax.f32 %v8525_v12, 0.0  ;;  %v8531_v61 = vmax.f32 %v8530_v7, 0.0  ;;  %v8376_v60 = vmax.f32 %v7704_v1, 0.0  ;;  %v7726_v49 = vpop.permute.xlu1 %3630  ;;  %v3875_v12 = vpop.f32.mrb[49].mxu1 }
 0x417   : > { %8520 = vst [vmem:[#allocation13_spill] sm:$0xff] %v7694_v28  ;;  %4244 = vmatprep.subr.bf16.mxu0 %v4078_v56  ;;  %v7713_v29 = vadd.f32 %v3870_v43, %v8528_v13  ;;  %v8377_v56 = vmax.f32 %v7684_v57, 0.0  ;;  %v8380_v43 = vmax.f32 %v7694_v28, 0.0  ;;  %v3790_v13 = vpop.f32.mrb[60].mxu0  ;;  %v3877_v30 = vpop.f32.mrb[50].mxu1 }
 0x418   : > { %8522 = vst [vmem:[#allocation12_spill] sm:$0xff] %v7699_v62  ;;  %v7708_v32 = vadd.f32 %v3783_v14, %v8526_v16  ;;  %v7717_v27 = vadd.f32 %v3785_v63, %v8531_v61  ;;  %4245 = vmatpush1.bf16.msra.mxu0 %v4077_v18  ;;  %v7724_v14 = vadd.f32 %v3787_v45, %v8534_v42  ;;  %v8383_v16 = vmax.f32 %v7699_v62, 0.0  ;;  %v3792_v63 = vpop.f32.mrb[61].mxu0  ;;  %v3879_v45 = vpop.f32.mrb[51].mxu1 }
 0x419   : > { %8529 = vst [vmem:[#allocation14_spill] sm:$0xff] %v7713_v29  ;;  %v8379_v23 = vmax.f32 %v7713_v29, 0.0  ;;  %v3874_v18 = vadd.f32 %v3873_v54, %v7523_v24  ;;  %v4071_v7 = vpack.c.bf16 %v8376_v60, %v8377_v56  ;;  %v3876_v61 = vadd.f32 %v3875_v12, %v7523_v24  ;;  %v3794_v24 = vpop.f32.mrb[62].mxu0 }
 0x41a   : > { %8532 = vst [vmem:[#allocation15_spill] sm:$0xff] %v7717_v27  ;;  %v3791_v54 = vadd.f32 %v3790_v13, %v7726_v49  ;;  %v3878_v33 = vadd.f32 %v3877_v30, %v7515_v9  ;;  %v8535_v57 = vmax.f32 %v7717_v27, 0.0  ;;  %v3793_v60 = vadd.f32 %v3792_v63, %v7726_v49  ;;  %v3796_v63 = vpop.f32.mrb[63].mxu0 }
 0x41b   : > { %v4072_v42 = vpack.c.bf16 %v8379_v23, %v8380_v43  ;;  %v8536_v12 = vmax.f32 %v7708_v32, 0.0  ;;  %v8537_v56 = vmax.f32 %v7724_v14, 0.0  ;;  %v8538_v23 = vmax.f32 %v7211_v37, 0.0  ;;  %v8539_v43 = vld [vmem:[#allocation18_spill] sm:$0xff] }
 0x41c   : > { %v4081_v1 = vpack.c.bf16 %v8535_v57, %v8383_v16  ;;  %v8540_v30 = vmax.f32 %v8539_v43, 0.0  ;;  %v3880_v62 = vadd.f32 %v3879_v45, %v7515_v9  ;;  %v3795_v57 = vadd.f32 %v3794_v24, %v7719_v5  ;;  %v8543_v43 = vld [vmem:[#allocation19_spill] sm:$0xff] }
 0x41d   : > { %v4082_v29 = vpack.c.bf16 %v8537_v56, %v8536_v12  ;;  %v7758_v13 = vadd.f32 %v3874_v18, %v8538_v23  ;;  %4353 = vmatprep.subr.bf16.mxu1 %v4072_v42  ;;  %v8541_v16 = vmax.f32 %v7214_v59, 0.0  ;;  %v8542_v56 = vmax.f32 %v7217_v53, 0.0 }
 0x41e   : > { %v7762_v28 = vadd.f32 %v3876_v61, %v8540_v30  ;;  %4354 = vmatpush1.bf16.msra.mxu1 %v4071_v7  ;;  %v3797_v23 = vadd.f32 %v3796_v63, %v7719_v5  ;;  %v8544_v18 = vmax.f32 %v8543_v43, 0.0  ;;  %v8545_v9 = vmax.f32 %v7223_v22, 0.0  ;;  %v3883_v7 = vpop.f32.mrb[52].mxu1 }
 0x41f   : > { %v7768_v27 = vadd.f32 %v3878_v33, %v8541_v16  ;;  %v7772_v37 = vadd.f32 %v3793_v60, %v8542_v56  ;;  %4246 = vmatprep.subr.bf16.mxu0 %v4082_v29  ;;  %v8546_v59 = vmax.f32 %v7226_v26, 0.0  ;;  %v8547_v60 = vmax.f32 %v7230_v36, 0.0 }
 0x420   : > { %v7777_v61 = vadd.f32 %v3880_v62, %v8544_v18  ;;  %v7781_v45 = vadd.f32 %v3791_v54, %v8545_v9  ;;  %4247 = vmatpush1.bf16.msra.mxu0 %v4081_v1  ;;  %v8397_v29 = vmax.f32 %v7762_v28, 0.0  ;;  %v8398_v42 = vmax.f32 %v7758_v13, 0.0  ;;  %v3885_v54 = vpop.f32.mrb[53].mxu1 }
 0x421   : > { %v7785_v16 = vadd.f32 %v3795_v57, %v8546_v59  ;;  %v8391_v53 = vmax.f32 %v7768_v27, 0.0  ;;  %v7790_v33 = vadd.f32 %v3797_v23, %v8547_v60  ;;  %v3884_v26 = vadd.f32 %v3883_v7, %v7591_v55  ;;  %v3887_v12 = vpop.f32.mrb[54].mxu1 }
 0x422   : > { %v8385_v62 = vmax.f32 %v7777_v61, 0.0  ;;  %v8390_v1 = vmax.f32 %v7772_v37, 0.0  ;;  %v3886_v36 = vadd.f32 %v3885_v54, %v7591_v55  ;;  %v8394_v57 = vmax.f32 %v7781_v45, 0.0  ;;  %v3889_v23 = vpop.f32.mrb[55].mxu1  ;;  %v8550_v54 = vld [vmem:[#allocation20_spill] sm:$0xff] }
 0x423   : > { %v8387_v22 = vmax.f32 %v7785_v16, 0.0  ;;  %v8386_v24 = vmax.f32 %v7790_v33, 0.0  ;;  %v4075_v63 = vpack.c.bf16 %v8391_v53, %v8398_v42  ;;  %v3888_v56 = vadd.f32 %v3887_v12, %v7583_v15 }
 0x424   : > { %v4076_v30 = vpack.c.bf16 %v8385_v62, %v8397_v29  ;;  %v8548_v43 = vmax.f32 %v7252_v31, 0.0  ;;  %v3890_v9 = vadd.f32 %v3889_v23, %v7583_v15  ;;  %v8549_v60 = vmax.f32 %v7259_v50, 0.0  ;;  %v5141_v31 = vld [vmem:[%s8238_s4 + $0x40] sm:$0xff]   ;;  %v8552_v15 = vld [vmem:[#allocation21_spill] sm:$0xff] }
 0x425   : > { %v4086_v55 = vpack.c.bf16 %v8386_v24, %v8390_v1  ;;  %v4085_v59 = vpack.c.bf16 %v8387_v22, %v8394_v57  ;;  %v8551_v12 = vmax.f32 %v8550_v54, 0.0 }
 0x426   : > { %v7816_v18 = vadd.f32 %v3886_v36, %v8548_v43  ;;  %4355 = vmatprep.subr.bf16.mxu1 %v4076_v30  ;;  %v7825_v7 = vadd.f32 %v3884_v26, %v8549_v60  ;;  %v8553_v36 = vmax.f32 %v8552_v15, 0.0  ;;  %v3893_v43 = vpop.f32.mrb[56].mxu1 }
 0x427   : > { %v7829_v62 = vadd.f32 %v3888_v56, %v8551_v12  ;;  %4356 = vmatpush1.bf16.msra.mxu1 %v4075_v63  ;;  %4248 = vmatprep.subr.bf16.mxu0 %v4086_v55  ;;  %v3894_v63 = vadd.f32 %v3893_v43, %v7659_v17  ;;  %v3895_v55 = vpop.f32.mrb[57].mxu1 }
 0x428   : > { %v7836_v30 = vadd.f32 %v3890_v9, %v8553_v36  ;;  %4249 = vmatpush1.bf16.msra.mxu0 %v4085_v59  ;;  %v8389_v50 = vmax.f32 %v7816_v18, 0.0  ;;  %v8393_v56 = vmax.f32 %v7825_v7, 0.0  ;;  %v3896_v60 = vadd.f32 %v3895_v55, %v7659_v17  ;;  %v3897_v54 = vpop.f32.mrb[58].mxu1  ;;  %v8554_v36 = vld [vmem:[#allocation22_spill] sm:$0xff]  ;;  %v8556_v55 = vld [vmem:[#allocation23_spill] sm:$0xff] }
 0x429   : > { %v8392_v23 = vmax.f32 %v7829_v62, 0.0  ;;  %v3898_v12 = vadd.f32 %v3897_v54, %v7651_v46  ;;  %v3899_v15 = vpop.f32.mrb[59].mxu1  ;;  %v8555_v43 = vmax.f32 %v8554_v36, 0.0  ;;  %v8557_v22 = vmax.f32 %v8556_v55, 0.0  ;;  %v5142_v54 = vld [vmem:[%s8238_s4 + $0x48] sm:$0xff]  }
 0x42a   : > { %v8388_v26 = vmax.f32 %v7836_v30, 0.0  ;;  %v3900_v17 = vadd.f32 %v3899_v15, %v7651_v46 }
 0x42b   : > { %4267 = vmatmul.mubr.bf16.vlgmr.msra.gmra.mrb[64].mxu0 %v5141_v31  ;;  %v4079_v59 = vpack.c.bf16 %v8392_v23, %v8393_v56  ;;  %v7856_v24 = vadd.f32 %v3896_v60, %v8555_v43  ;;  %v8561_v23 = vld [vmem:[#allocation25_spill] sm:$0xff] }
 0x42c   : > { %v4080_v9 = vpack.c.bf16 %v8388_v26, %v8389_v50  ;;  %4276 = vmatprep.mubr.bf16.mxu0 %v8434_v40  ;;  %v7861_v26 = vadd.f32 %v3894_v63, %v8557_v22  ;;  %v8558_v50 = vld [vmem:[#allocation24_spill] sm:$0xff]  ;;  %v8562_v36 = vmax.f32 %v8561_v23, 0.0  ;;  %v3903_v63 = vpop.f32.mrb[60].mxu1 }
 0x42d   : > { %v8559_v1 = vmax.f32 %v8558_v50, 0.0 }
 0x42e   : > { %4357 = vmatprep.subr.bf16.mxu1 %v4080_v9  ;;  %v7872_v60 = vadd.f32 %v3900_v17, %v8562_v36  ;;  %v8396_v9 = vmax.f32 %v7856_v24, 0.0  ;;  %v8404_v50 = vmax.f32 %v7861_v26, 0.0  ;;  %v8564_v36 = vld [vmem:[#allocation26_spill] sm:$0xff] }
 0x42f   : > { %v7865_v53 = vadd.f32 %v3898_v12, %v8559_v1  ;;  %4358 = vmatpush1.bf16.msra.mxu1 %v4079_v59  ;;  %v3904_v1 = vadd.f32 %v3903_v63, %v7726_v49  ;;  %v3905_v59 = vpop.f32.mrb[61].mxu1  ;;  %v8565_v63 = vmax.f32 %v8564_v36, 0.0 }
 0x430   : > { %8563 = vst [vmem:[#allocation17_spill] sm:$0xff] %v7872_v60  ;;  %v8395_v22 = vmax.f32 %v7872_v60, 0.0  ;;  %v3906_v12 = vadd.f32 %v3905_v59, %v7726_v49  ;;  %v3907_v15 = vpop.f32.mrb[62].mxu1  ;;  %v8567_v59 = vld [vmem:[#allocation27_spill] sm:$0xff] }
 0x431   : > { %8560 = vst [vmem:[#allocation16_spill] sm:$0xff] %v7865_v53  ;;  %v8399_v46 = vmax.f32 %v7865_v53, 0.0  ;;  %v3908_v17 = vadd.f32 %v3907_v15, %v7719_v5  ;;  %v3909_v55 = vpop.f32.mrb[63].mxu1  ;;  %v8568_v57 = vmax.f32 %v8567_v59, 0.0  ;;  %v5143_v15 = vld [vmem:[%s8238_s4 + $0x50] sm:$0xff]  }
 0x432   : > { %v4084_v23 = vpack.c.bf16 %v8395_v22, %v8396_v9  ;;  %v7892_v56 = vadd.f32 %v3906_v12, %v8565_v63  ;;  %v3910_v49 = vadd.f32 %v3909_v55, %v7719_v5  ;;  %v8570_v9 = vld [vmem:[#allocation28_spill] sm:$0xff]  ;;  %v7951_v55 = vpop.permute.xlu1 %4108 }
 0x433   : > { %4277 = vmatmul.mubr.bf16.gmra.mrb[68].mxu0 %v5142_v54  ;;  %v4083_v43 = vpack.c.bf16 %v8399_v46, %v8404_v50  ;;  %v7897_v22 = vadd.f32 %v3904_v1, %v8568_v57  ;;  %v8571_v29 = vmax.f32 %v8570_v9, 0.0  ;;  %v8573_v46 = vld [vmem:[#allocation29_spill] sm:$0xff]  ;;  %v5144_v9 = vld [vmem:[%s8238_s4 + $0x58] sm:$0xff]  }
 0x434   : > { %4286 = vmatprep.mubr.bf16.mxu0 %v8434_v40  ;;  %8566 = vst [vmem:[#allocation18_spill] sm:$0xff] %v7892_v56  ;;  %4359 = vmatprep.subr.bf16.mxu1 %v4084_v23  ;;  %v8574_v36 = vmax.f32 %v8573_v46, 0.0  ;;  %v8402_v23 = vmax.f32 %v7892_v56, 0.0 }
 0x435   : > { %8569 = vst [vmem:[#allocation19_spill] sm:$0xff] %v7897_v22  ;;  %v7901_v42 = vadd.f32 %v3908_v17, %v8571_v29  ;;  %4360 = vmatpush1.bf16.msra.mxu1 %v4083_v43  ;;  %v8403_v1 = vmax.f32 %v7897_v22, 0.0  ;;  %v5145_v43 = vld [vmem:[%s8238_s4 + $0x60] sm:$0xff]   ;;  %v5146_v17 = vld [vmem:[%s8238_s4 + $0x68] sm:$0xff]  }
 0x436   : > { %v7908_v12 = vadd.f32 %v3910_v49, %v8574_v36 }
 0x437   : > { %8572 = vst [vmem:[#allocation20_spill] sm:$0xff] %v7901_v42  ;;  %v8401_v5 = vmax.f32 %v7901_v42, 0.0  ;;  %v7967_v42 = vpop.permute.xlu1 %4118 }
 0x438   : > { %8575 = vst [vmem:[#allocation21_spill] sm:$0xff] %v7908_v12  ;;  %v8400_v57 = vmax.f32 %v7908_v12, 0.0 }
 0x439   : > { %v4087_v46 = vpack.c.bf16 %v8401_v5, %v8403_v1  ;;  %v8579_v5 = vmax.f32 %v7385_v3, 0.0 }
 0x43a   : > { %v4088_v29 = vpack.c.bf16 %v8400_v57, %v8402_v23  ;;  %v8580_v23 = vld [vmem:[#allocation31_spill] sm:$0xff] }
 0x43b   : > { %4287 = vmatmul.mubr.bf16.gmra.mrb[72].mxu0 %v5143_v15  ;;  %v8581_v1 = vmax.f32 %v8580_v23, 0.0  ;;  %v8582_v23 = vmax.f32 %v7417_v19, 0.0 }
 0x43c   : > { %4296 = vmatprep.mubr.bf16.mxu0 %v8434_v40  ;;  %4361 = vmatprep.subr.bf16.mxu1 %v4088_v29 }
 0x43d   : > { %4362 = vmatpush1.bf16.msra.mxu1 %v4087_v46  ;;  %v8576_v46 = vmax.f32 %v7381_v6, 0.0 }
 0x440   : > { %4380 = vmatmul.mubr.bf16.vlgmr.msra.gmra.mrb[64].mxu1 %v5141_v31  ;;  %v5147_v31 = vld [vmem:[%s8238_s4 + $0x70] sm:$0xff]  }
 0x441   : > { %4389 = vmatprep.mubr.bf16.mxu1 %v8434_v40 }
 0x443   : > { %4297 = vmatmul.mubr.bf16.gmra.mrb[76].mxu0 %v5144_v9 }
 0x444   : > { %4306 = vmatprep.mubr.bf16.mxu0 %v8434_v40 }
 0x448   : > { %4390 = vmatmul.mubr.bf16.gmra.mrb[68].mxu1 %v5142_v54  ;;  %v5148_v54 = vld [vmem:[%s8238_s4 + $0x78] sm:$0xff]  }
 0x449   : > { %4399 = vmatprep.mubr.bf16.mxu1 %v8434_v40 }
 0x44b   : > { %4307 = vmatmul.mubr.bf16.gmra.mrb[80].mxu0 %v5145_v43 }
 0x44c   : > { %4316 = vmatprep.mubr.bf16.mxu0 %v8434_v40 }
 0x450   : > { %4400 = vmatmul.mubr.bf16.gmra.mrb[72].mxu1 %v5143_v15  ;;  %v7954_v15 = vpop.permute.xlu0 %4113 }
 0x451   : > { %4409 = vmatprep.mubr.bf16.mxu1 %v8434_v40 }
 0x453   : > { %4317 = vmatmul.mubr.bf16.gmra.mrb[84].mxu0 %v5146_v17 }
 0x454   : > { %4326 = vmatprep.mubr.bf16.mxu0 %v8434_v40 }
 0x458   : > { %4410 = vmatmul.mubr.bf16.gmra.mrb[76].mxu1 %v5144_v9 }
 0x459   : > { %4419 = vmatprep.mubr.bf16.mxu1 %v8434_v40 }
 0x45b   : > { %4327 = vmatmul.mubr.bf16.gmra.mrb[88].mxu0 %v5147_v31 }
 0x45c   : > { %4336 = vmatprep.mubr.bf16.mxu0 %v8434_v40 }
 0x460   : > { %4420 = vmatmul.mubr.bf16.gmra.mrb[80].mxu1 %v5145_v43 }
 0x461   : > { %4429 = vmatprep.mubr.bf16.mxu1 %v8434_v40 }
 0x463   : > { %4337 = vmatmul.mubr.bf16.gmra.mrb[92].mxu0 %v5148_v54 }
 0x464   : > { %4659 = vmatprep.mubr.bf16.mxu0 %v8434_v40 }
 0x468   : > { %4430 = vmatmul.mubr.bf16.gmra.mrb[84].mxu1 %v5146_v17 }
 0x469   : > { %4439 = vmatprep.mubr.bf16.mxu1 %v8434_v40 }
 0x470   : > { %4440 = vmatmul.mubr.bf16.gmra.mrb[88].mxu1 %v5147_v31  ;;  %v8577_v31 = vld [vmem:[#allocation30_spill] sm:$0xff] }
 0x471   : > { %4449 = vmatprep.mubr.bf16.mxu1 %v8434_v40 }
 0x478   : > { %4450 = vmatmul.mubr.bf16.gmra.mrb[92].mxu1 %v5148_v54  ;;  %v8578_v54 = vmax.f32 %v8577_v31, 0.0 }
 0x479   : > { %4700 = vmatprep.mubr.bf16.mxu1 %v8434_v40 }
 0x4fe   : > { %v4268_v63 = vpop.f32.mrb[64].mxu0 }
 0x4ff   : > { %v4269_v49 = vadd.f32 %v4268_v63, %v7951_v55  ;;  %v4270_v59 = vpop.f32.mrb[65].mxu0 }
 0x500   : > { %v4271_v36 = vadd.f32 %v4270_v59, %v7951_v55  ;;  %v4272_v29 = vpop.f32.mrb[66].mxu0 }
 0x501   : > { %v4460_v9 = vadd.f32 %v4269_v49, %v8576_v46  ;;  %v4273_v43 = vadd.f32 %v4272_v29, %v7954_v15  ;;  %v4274_v17 = vpop.f32.mrb[67].mxu0  ;;  %v7969_v29 = vpop.permute.xlu0 %4123 }
 0x502   : > { %v4461_v40 = vadd.f32 %v4271_v36, %v8578_v54  ;;  %v4275_v57 = vadd.f32 %v4274_v17, %v7954_v15 }
 0x503   : > { %v4464_v63 = vadd.f32 %v4273_v43, %v8579_v5  ;;  %v4524_v12 = vmax.f32 %v4460_v9, 0.0  ;;  %v8583_v43 = vld [vmem:[#allocation32_spill] sm:$0xff] }
 0x504   : > { %v4465_v50 = vadd.f32 %v4275_v57, %v8581_v1  ;;  %v4525_v6 = vmax.f32 %v4461_v40, 0.0  ;;  %v8584_v54 = vmax.f32 %v8583_v43, 0.0 }
 0x505   : > { %v4528_v59 = vmax.f32 %v4464_v63, 0.0 }
 0x506   : > { %v4529_v49 = vmax.f32 %v4465_v50, 0.0  ;;  %v4278_v46 = vpop.f32.mrb[68].mxu0 }
 0x507   : > { %v4589_v56 = vpack.c.bf16 %v4528_v59, %v4524_v12  ;;  %v4279_v36 = vadd.f32 %v4278_v46, %v7967_v42  ;;  %v4280_v31 = vpop.f32.mrb[69].mxu0  ;;  %v8585_v12 = vld [vmem:[#allocation33_spill] sm:$0xff]  ;;  %v8587_v46 = vld [vmem:[#allocation34_spill] sm:$0xff] }
 0x508   : > { %v4281_v17 = vadd.f32 %v4280_v31, %v7967_v42  ;;  %v4282_v3 = vpop.f32.mrb[70].mxu0  ;;  %v4590_v5 = vpack.c.bf16 %v4529_v49, %v4525_v6  ;;  %v8586_v63 = vmax.f32 %v8585_v12, 0.0  ;;  %v8588_v31 = vmax.f32 %v8587_v46, 0.0  ;;  %v7983_v6 = vpop.permute.xlu0 %4133  ;;  %v8589_v12 = vld [vmem:[#allocation35_spill] sm:$0xff] }
 0x509   : > { %v4468_v57 = vadd.f32 %v4279_v36, %v8582_v23  ;;  %v4283_v1 = vadd.f32 %v4282_v3, %v7969_v29  ;;  %v4284_v9 = vpop.f32.mrb[71].mxu0  ;;  %v7985_v36 = vpop.permute.xlu1 %4128 }
 0x50a   : > { %v4469_v50 = vadd.f32 %v4281_v17, %v8584_v54  ;;  %v4285_v40 = vadd.f32 %v4284_v9, %v7969_v29  ;;  %4627 = vmatprep.subr.bf16.mxu0 %v4590_v5 }
 0x50b   : > { %v4472_v59 = vadd.f32 %v4283_v1, %v8586_v63  ;;  %4628 = vmatpush1.bf16.msra.mxu0 %v4589_v56  ;;  %v4532_v19 = vmax.f32 %v4468_v57, 0.0  ;;  %v8590_v63 = vmax.f32 %v8589_v12, 0.0 }
 0x50c   : > { %v4473_v22 = vadd.f32 %v4285_v40, %v8588_v31  ;;  %v4533_v3 = vmax.f32 %v4469_v50, 0.0  ;;  %v8592_v50 = vld [vmem:[#allocation36_spill] sm:$0xff] }
 0x50d   : > { %v4536_v49 = vmax.f32 %v4472_v59, 0.0  ;;  %v8591_v59 = vmax.f32 %v7452_v35, 0.0  ;;  %v8001_v12 = vpop.permute.xlu1 %4138 }
 0x50e   : > { %v4537_v23 = vmax.f32 %v4473_v22, 0.0  ;;  %v4288_v43 = vpop.f32.mrb[72].mxu0 }
 0x50f   : > { %v4593_v17 = vpack.c.bf16 %v4536_v49, %v4532_v19  ;;  %v4289_v9 = vadd.f32 %v4288_v43, %v7985_v36  ;;  %v4290_v5 = vpop.f32.mrb[73].mxu0  ;;  %v8593_v19 = vmax.f32 %v8592_v50, 0.0  ;;  %v7997_v43 = vpop.permute.xlu0 %4143 }
 0x510   : > { %v4291_v54 = vadd.f32 %v4290_v5, %v7985_v36  ;;  %v4292_v1 = vpop.f32.mrb[74].mxu0  ;;  %v4594_v56 = vpack.c.bf16 %v4537_v23, %v4533_v3  ;;  %v8594_v5 = vld [vmem:[#allocation37_spill] sm:$0xff] }
 0x511   : > { %v4476_v40 = vadd.f32 %v4289_v9, %v8590_v63  ;;  %v4293_v46 = vadd.f32 %v4292_v1, %v7983_v6  ;;  %v4294_v57 = vpop.f32.mrb[75].mxu0  ;;  %v8595_v3 = vmax.f32 %v8594_v5, 0.0 }
 0x512   : > { %v4477_v31 = vadd.f32 %v4291_v54, %v8591_v59  ;;  %v4295_v22 = vadd.f32 %v4294_v57, %v7983_v6  ;;  %4629 = vmatprep.subr.bf16.mxu0 %v4594_v56 }
 0x513   : > { %v4480_v49 = vadd.f32 %v4293_v46, %v8593_v19  ;;  %4630 = vmatpush1.bf16.msra.mxu0 %v4593_v17  ;;  %v4381_v9 = vpop.f32.mrb[64].mxu1  ;;  %v4540_v1 = vmax.f32 %v4476_v40, 0.0 }
 0x514   : > { %v4481_v23 = vadd.f32 %v4295_v22, %v8595_v3  ;;  %v4382_v35 = vadd.f32 %v4381_v9, %v7951_v55  ;;  %v4383_v54 = vpop.f32.mrb[65].mxu1  ;;  %v4541_v59 = vmax.f32 %v4477_v31, 0.0  ;;  %v8596_v22 = vmax.f32 %v7480_v38, 0.0 }
 0x515   : > { %v4544_v63 = vmax.f32 %v4480_v49, 0.0  ;;  %v4384_v50 = vadd.f32 %v4383_v54, %v7951_v55  ;;  %v4385_v46 = vpop.f32.mrb[66].mxu1  ;;  %v8597_v31 = vmax.f32 %v7490_v41, 0.0  ;;  %v8599_v38 = vmax.f32 %v7500_v4, 0.0 }
 0x516   : > { %v4545_v57 = vmax.f32 %v4481_v23, 0.0  ;;  %v4298_v56 = vpop.f32.mrb[76].mxu0  ;;  %v4462_v5 = vadd.f32 %v4382_v35, %v8596_v22  ;;  %v4386_v3 = vadd.f32 %v4385_v46, %v7954_v15  ;;  %v4387_v40 = vpop.f32.mrb[67].mxu1  ;;  %v8600_v46 = vmax.f32 %v7504_v8, 0.0 }
 0x517   : > { %v4597_v17 = vpack.c.bf16 %v4544_v63, %v4540_v1  ;;  %v4299_v19 = vadd.f32 %v4298_v56, %v8001_v12  ;;  %v4300_v60 = vpop.f32.mrb[77].mxu0  ;;  %v4463_v23 = vadd.f32 %v4384_v50, %v8597_v31  ;;  %v4388_v55 = vadd.f32 %v4387_v40, %v7954_v15 }
 0x518   : > { %v4301_v49 = vadd.f32 %v4300_v60, %v8001_v12  ;;  %v4302_v9 = vpop.f32.mrb[78].mxu0  ;;  %v4598_v53 = vpack.c.bf16 %v4545_v57, %v4541_v59  ;;  %v8598_v1 = vmax.f32 %v7495_v47, 0.0  ;;  %v4466_v35 = vadd.f32 %v4386_v3, %v8599_v38  ;;  %v8602_v57 = vld [vmem:[#allocation38_spill] sm:$0xff]  ;;  %v8025_v47 = vpop.permute.xlu0 %4153 }
 0x519   : > { %v4303_v54 = vadd.f32 %v4302_v9, %v7997_v43  ;;  %v4304_v56 = vpop.f32.mrb[79].mxu0  ;;  %v8601_v41 = vmax.f32 %v7509_v39, 0.0  ;;  %v8603_v15 = vmax.f32 %v8602_v57, 0.0  ;;  %v8604_v4 = vmax.f32 %v7521_v10, 0.0  ;;  %v8029_v9 = vpop.permute.xlu1 %4148 }
 0x51a   : > { %v4484_v63 = vadd.f32 %v4299_v19, %v8598_v1  ;;  %v4485_v22 = vadd.f32 %v4301_v49, %v8600_v46  ;;  %v4305_v60 = vadd.f32 %v4304_v56, %v7997_v43  ;;  %4631 = vmatprep.subr.bf16.mxu0 %v4598_v53  ;;  %v4526_v19 = vmax.f32 %v4462_v5, 0.0 }
 0x51b   : > { %v4467_v59 = vadd.f32 %v4388_v55, %v8601_v41  ;;  %v4488_v50 = vadd.f32 %v4303_v54, %v8603_v15  ;;  %4632 = vmatpush1.bf16.msra.mxu0 %v4597_v17  ;;  %v4530_v40 = vmax.f32 %v4466_v35, 0.0  ;;  %v4527_v8 = vmax.f32 %v4463_v23, 0.0  ;;  %v4391_v31 = vpop.f32.mrb[68].mxu1 }
 0x51c   : > { %v4489_v3 = vadd.f32 %v4305_v60, %v8604_v4  ;;  %v4548_v53 = vmax.f32 %v4484_v63, 0.0  ;;  %v4392_v55 = vadd.f32 %v4391_v31, %v7967_v42  ;;  %v4393_v56 = vpop.f32.mrb[69].mxu1  ;;  %v4549_v54 = vmax.f32 %v4485_v22, 0.0 }
 0x51d   : > { %v4531_v49 = vmax.f32 %v4467_v59, 0.0  ;;  %v4552_v1 = vmax.f32 %v4488_v50, 0.0  ;;  %v4591_v39 = vpack.c.bf16 %v4530_v40, %v4526_v19  ;;  %v4394_v5 = vadd.f32 %v4393_v56, %v7967_v42  ;;  %v4395_v35 = vpop.f32.mrb[70].mxu1 }
 0x51e   : > { %v4553_v17 = vmax.f32 %v4489_v3, 0.0  ;;  %v4308_v38 = vpop.f32.mrb[80].mxu0  ;;  %v8605_v23 = vmax.f32 %v7548_v0, 0.0  ;;  %v4396_v63 = vadd.f32 %v4395_v35, %v7969_v29  ;;  %v4397_v57 = vpop.f32.mrb[71].mxu1  ;;  %v8606_v19 = vmax.f32 %v7558_v20, 0.0 }
 0x51f   : > { %v4592_v46 = vpack.c.bf16 %v4531_v49, %v4527_v8  ;;  %v4601_v10 = vpack.c.bf16 %v4552_v1, %v4548_v53  ;;  %v4309_v60 = vadd.f32 %v4308_v38, %v8029_v9  ;;  %v4310_v41 = vpop.f32.mrb[81].mxu0  ;;  %v4398_v42 = vadd.f32 %v4397_v57, %v7969_v29 }
 0x520   : > { %v4470_v59 = vadd.f32 %v4392_v55, %v8605_v23  ;;  %v4311_v15 = vadd.f32 %v4310_v41, %v8029_v9  ;;  %v4312_v50 = vpop.f32.mrb[82].mxu0  ;;  %v4602_v22 = vpack.c.bf16 %v4553_v17, %v4549_v54  ;;  %v4471_v40 = vadd.f32 %v4394_v5, %v8606_v19  ;;  %v8053_v54 = vpop.permute.xlu0 %4163 }
 0x521   : > { %4668 = vmatprep.subr.bf16.mxu1 %v4592_v46  ;;  %v8607_v4 = vmax.f32 %v7563_v11, 0.0  ;;  %v4313_v8 = vadd.f32 %v4312_v50, %v8025_v47  ;;  %v4314_v0 = vpop.f32.mrb[83].mxu0  ;;  %v8608_v49 = vmax.f32 %v7568_v25, 0.0  ;;  %v8609_v53 = vmax.f32 %v7572_v48, 0.0  ;;  %v8057_v5 = vpop.permute.xlu1 %4158 }
 0x522   : > { %4669 = vmatpush1.bf16.msra.mxu1 %v4591_v39  ;;  %v4315_v55 = vadd.f32 %v4314_v0, %v8025_v47  ;;  %4633 = vmatprep.subr.bf16.mxu0 %v4602_v22  ;;  %v8610_v20 = vmax.f32 %v7577_v34, 0.0  ;;  %v8611_v56 = vmax.f32 %v7581_v58, 0.0  ;;  %v4534_v17 = vmax.f32 %v4470_v59, 0.0 }
 0x523   : > { %v4492_v3 = vadd.f32 %v4309_v60, %v8607_v4  ;;  %v4474_v31 = vadd.f32 %v4396_v63, %v8608_v49  ;;  %v4493_v1 = vadd.f32 %v4311_v15, %v8609_v53  ;;  %4634 = vmatpush1.bf16.msra.mxu0 %v4601_v10  ;;  %v8612_v25 = vmax.f32 %v7589_v2, 0.0  ;;  %v4401_v46 = vpop.f32.mrb[72].mxu1 }
 0x524   : > { %v4475_v29 = vadd.f32 %v4398_v42, %v8610_v20  ;;  %v4496_v11 = vadd.f32 %v4313_v8, %v8611_v56  ;;  %v4535_v48 = vmax.f32 %v4471_v40, 0.0  ;;  %v4402_v23 = vadd.f32 %v4401_v46, %v7985_v36  ;;  %v4403_v58 = vpop.f32.mrb[73].mxu1 }
 0x525   : > { %v4538_v38 = vmax.f32 %v4474_v31, 0.0  ;;  %v4497_v39 = vadd.f32 %v4315_v55, %v8612_v25  ;;  %v4556_v60 = vmax.f32 %v4492_v3, 0.0  ;;  %v4557_v63 = vmax.f32 %v4493_v1, 0.0  ;;  %v4405_v15 = vpop.f32.mrb[74].mxu1 }
 0x526   : > { %v4539_v35 = vmax.f32 %v4475_v29, 0.0  ;;  %v4560_v41 = vmax.f32 %v4496_v11, 0.0  ;;  %v4318_v57 = vpop.f32.mrb[84].mxu0  ;;  %v4404_v59 = vadd.f32 %v4403_v58, %v7985_v36  ;;  %v8613_v40 = vmax.f32 %v7616_v44, 0.0  ;;  %v4407_v3 = vpop.f32.mrb[75].mxu1  ;;  %v8616_v29 = vld [vmem:[#allocation39_spill] sm:$0xff] }
 0x527   : > { %v4595_v34 = vpack.c.bf16 %v4538_v38, %v4534_v17  ;;  %v4561_v10 = vmax.f32 %v4497_v39, 0.0  ;;  %v4319_v22 = vadd.f32 %v4318_v57, %v8057_v5  ;;  %v4320_v19 = vpop.f32.mrb[85].mxu0  ;;  %v4406_v4 = vadd.f32 %v4405_v15, %v7983_v6  ;;  %v8618_v17 = vld [vmem:[#allocation40_spill] sm:$0xff] }
 0x528   : > { %v4596_v50 = vpack.c.bf16 %v4539_v35, %v4535_v48  ;;  %v4605_v2 = vpack.c.bf16 %v4560_v41, %v4556_v60  ;;  %v4478_v42 = vadd.f32 %v4402_v23, %v8613_v40  ;;  %v4321_v8 = vadd.f32 %v4320_v19, %v8057_v5  ;;  %v4322_v0 = vpop.f32.mrb[86].mxu0  ;;  %v8622_v35 = vld [vmem:[#allocation10_spill] sm:$0xff]  ;;  %v8081_v60 = vpop.permute.xlu0 %4173 }
 0x529   : > { %v4606_v49 = vpack.c.bf16 %v4561_v10, %v4557_v63  ;;  %v8614_v31 = vmax.f32 %v7626_v51, 0.0  ;;  %v4408_v36 = vadd.f32 %v4407_v3, %v7983_v6  ;;  %v8615_v1 = vmax.f32 %v7631_v52, 0.0  ;;  %v4324_v44 = vpop.f32.mrb[87].mxu0  ;;  %v8620_v51 = vld [vmem:[#allocation41_spill] sm:$0xff]  ;;  %v8085_v63 = vpop.permute.xlu1 %4168 }
 0x52a   : > { %4670 = vmatprep.subr.bf16.mxu1 %v4596_v50  ;;  %v4323_v20 = vadd.f32 %v4322_v0, %v8053_v54  ;;  %v8617_v56 = vmax.f32 %v8616_v29, 0.0  ;;  %v8619_v38 = vmax.f32 %v8618_v17, 0.0  ;;  %v4325_v39 = vadd.f32 %v4324_v44, %v8053_v54 }
 0x52b   : > { %v4479_v53 = vadd.f32 %v4404_v59, %v8614_v31  ;;  %v4500_v55 = vadd.f32 %v4319_v22, %v8615_v1  ;;  %4671 = vmatpush1.bf16.msra.mxu1 %v4595_v34  ;;  %4635 = vmatprep.subr.bf16.mxu0 %v4606_v49  ;;  %v8621_v48 = vmax.f32 %v8620_v51, 0.0  ;;  %v8623_v46 = vmax.f32 %v8622_v35, 0.0  ;;  %v4411_v59 = vpop.f32.mrb[76].mxu1  ;;  %v8631_v35 = vld [vmem:[#allocation42_spill] sm:$0xff] }
 0x52c   : > { %v4482_v11 = vadd.f32 %v4406_v4, %v8617_v56  ;;  %v4501_v25 = vadd.f32 %v4321_v8, %v8619_v38  ;;  %4636 = vmatpush1.bf16.msra.mxu0 %v4605_v2  ;;  %v4542_v41 = vmax.f32 %v4478_v42, 0.0  ;;  %v8624_v58 = vmax.f32 %v7657_v21, 0.0  ;;  %v4413_v40 = vpop.f32.mrb[77].mxu1 }
 0x52d   : > { %v4483_v6 = vadd.f32 %v4408_v36, %v8621_v48  ;;  %v4504_v52 = vadd.f32 %v4323_v20, %v8623_v46  ;;  %v4543_v10 = vmax.f32 %v4479_v53, 0.0  ;;  %v4564_v15 = vmax.f32 %v4500_v55, 0.0  ;;  %v4415_v8 = vpop.f32.mrb[78].mxu1  ;;  %v8625_v53 = vld [vmem:[#allocation11_spill] sm:$0xff] }
 0x52e   : > { %v4546_v23 = vmax.f32 %v4482_v11, 0.0  ;;  %v4505_v34 = vadd.f32 %v4325_v39, %v8624_v58  ;;  %v4412_v19 = vadd.f32 %v4411_v59, %v8001_v12  ;;  %v4565_v4 = vmax.f32 %v4501_v25, 0.0  ;;  %v4328_v3 = vpop.f32.mrb[88].mxu0  ;;  %v4417_v20 = vpop.f32.mrb[79].mxu1  ;;  %v8627_v11 = vld [vmem:[#allocation13_spill] sm:$0xff]  ;;  %v8629_v25 = vld [vmem:[#allocation12_spill] sm:$0xff] }
 0x52f   : > { %v4547_v57 = vmax.f32 %v4483_v6, 0.0  ;;  %v4568_v50 = vmax.f32 %v4504_v52, 0.0  ;;  %v4414_v42 = vadd.f32 %v4413_v40, %v8001_v12  ;;  %v4329_v49 = vadd.f32 %v4328_v3, %v8085_v63  ;;  %v4330_v31 = vpop.f32.mrb[89].mxu0 }
 0x530   : > { %v4599_v22 = vpack.c.bf16 %v4546_v23, %v4542_v41  ;;  %v4569_v2 = vmax.f32 %v4505_v34, 0.0  ;;  %v8626_v36 = vmax.f32 %v8625_v53, 0.0  ;;  %v4416_v55 = vadd.f32 %v4415_v8, %v7997_v43  ;;  %v4332_v29 = vpop.f32.mrb[90].mxu0  ;;  %v8634_v34 = vld [vmem:[#allocation14_spill] sm:$0xff] }
 0x531   : > { %v4600_v0 = vpack.c.bf16 %v4547_v57, %v4543_v10  ;;  %v4609_v21 = vpack.c.bf16 %v4568_v50, %v4564_v15  ;;  %v4331_v44 = vadd.f32 %v4330_v31, %v8085_v63  ;;  %v8628_v17 = vmax.f32 %v8627_v11, 0.0  ;;  %v4334_v6 = vpop.f32.mrb[91].mxu0  ;;  %v8636_v57 = vld [vmem:[#allocation15_spill] sm:$0xff]  ;;  %v8109_v50 = vpop.permute.xlu0 %4183 }
 0x532   : > { %v4486_v1 = vadd.f32 %v4412_v19, %v8626_v36  ;;  %v4610_v56 = vpack.c.bf16 %v4569_v2, %v4565_v4  ;;  %v4418_v12 = vadd.f32 %v4417_v20, %v7997_v43  ;;  %v8630_v39 = vmax.f32 %v8629_v25, 0.0  ;;  %v8113_v2 = vpop.permute.xlu1 %4178 }
 0x533   : > { %v4487_v38 = vadd.f32 %v4414_v42, %v8628_v17  ;;  %4672 = vmatprep.subr.bf16.mxu1 %v4600_v0  ;;  %v4333_v48 = vadd.f32 %v4332_v29, %v8081_v60  ;;  %v8632_v46 = vmax.f32 %v8631_v35, 0.0  ;;  %v8633_v41 = vmax.f32 %v7708_v32, 0.0  ;;  %v4421_v42 = vpop.f32.mrb[80].mxu1 }
 0x534   : > { %v4508_v51 = vadd.f32 %v4329_v49, %v8630_v39  ;;  %4673 = vmatpush1.bf16.msra.mxu1 %v4599_v22  ;;  %v4335_v58 = vadd.f32 %v4334_v6, %v8081_v60  ;;  %4637 = vmatprep.subr.bf16.mxu0 %v4610_v56  ;;  %v8635_v10 = vmax.f32 %v8634_v34, 0.0  ;;  %v8637_v59 = vmax.f32 %v8636_v57, 0.0  ;;  %v4423_v53 = vpop.f32.mrb[81].mxu1 }
 0x535   : > { %v4490_v52 = vadd.f32 %v4416_v55, %v8632_v46  ;;  %v4509_v23 = vadd.f32 %v4331_v44, %v8633_v41  ;;  %4638 = vmatpush1.bf16.msra.mxu0 %v4609_v21  ;;  %v4550_v19 = vmax.f32 %v4486_v1, 0.0  ;;  %v8638_v4 = vmax.f32 %v7724_v14, 0.0  ;;  %v4425_v20 = vpop.f32.mrb[82].mxu1 }
 0x536   : > { %v4491_v43 = vadd.f32 %v4418_v12, %v8635_v10  ;;  %v4512_v15 = vadd.f32 %v4333_v48, %v8637_v59  ;;  %v4551_v32 = vmax.f32 %v4487_v38, 0.0  ;;  %v4572_v8 = vmax.f32 %v4508_v51, 0.0  ;;  %v4338_v55 = vpop.f32.mrb[92].mxu0  ;;  %v4427_v12 = vpop.f32.mrb[83].mxu1 }
 0x537   : > { %v4554_v40 = vmax.f32 %v4490_v52, 0.0  ;;  %v4513_v22 = vadd.f32 %v4335_v58, %v8638_v4  ;;  %v4422_v31 = vadd.f32 %v4421_v42, %v8029_v9  ;;  %v4573_v36 = vmax.f32 %v4509_v23, 0.0  ;;  %v4340_v56 = vpop.f32.mrb[93].mxu0 }
 0x538   : > { %v4555_v3 = vmax.f32 %v4491_v43, 0.0  ;;  %v4576_v0 = vmax.f32 %v4512_v15, 0.0  ;;  %v4424_v1 = vadd.f32 %v4423_v53, %v8029_v9  ;;  %v4339_v29 = vadd.f32 %v4338_v55, %v8113_v2  ;;  %v4342_v39 = vpop.f32.mrb[94].mxu0 }
 0x539   : > { %v4603_v49 = vpack.c.bf16 %v4554_v40, %v4550_v19  ;;  %v4577_v21 = vmax.f32 %v4513_v22, 0.0  ;;  %v8639_v11 = vmax.f32 %v7758_v13, 0.0  ;;  %v4426_v38 = vadd.f32 %v4425_v20, %v8025_v47  ;;  %v4344_v13 = vpop.f32.mrb[95].mxu0 }
 0x53a   : > { %v4604_v44 = vpack.c.bf16 %v4555_v3, %v4551_v32  ;;  %v4613_v14 = vpack.c.bf16 %v4576_v0, %v4572_v8  ;;  %v4341_v25 = vadd.f32 %v4340_v56, %v8113_v2  ;;  %v8640_v48 = vmax.f32 %v7762_v28, 0.0 }
 0x53b   : > { %v4494_v17 = vadd.f32 %v4422_v31, %v8639_v11  ;;  %v4614_v51 = vpack.c.bf16 %v4577_v21, %v4573_v36  ;;  %v4428_v9 = vadd.f32 %v4427_v12, %v8025_v47  ;;  %v8641_v35 = vmax.f32 %v7781_v45, 0.0  ;;  %v4431_v4 = vpop.f32.mrb[84].mxu1 }
 0x53c   : > { %v4495_v6 = vadd.f32 %v4424_v1, %v8640_v48  ;;  %4674 = vmatprep.subr.bf16.mxu1 %v4604_v44  ;;  %v4343_v52 = vadd.f32 %v4342_v39, %v8109_v50  ;;  %v8642_v41 = vmax.f32 %v7768_v27, 0.0  ;;  %v8643_v58 = vmax.f32 %v7772_v37, 0.0  ;;  %v4433_v42 = vpop.f32.mrb[85].mxu1 }
 0x53d   : > { %v4516_v46 = vadd.f32 %v4339_v29, %v8641_v35  ;;  %4675 = vmatpush1.bf16.msra.mxu1 %v4603_v49  ;;  %v4345_v10 = vadd.f32 %v4344_v13, %v8109_v50  ;;  %4639 = vmatprep.subr.bf16.mxu0 %v4614_v51  ;;  %v8644_v28 = vmax.f32 %v7777_v61, 0.0  ;;  %v8645_v43 = vmax.f32 %v7785_v16, 0.0  ;;  %v4435_v0 = vpop.f32.mrb[86].mxu1 }
 0x53e   : > { %v4498_v23 = vadd.f32 %v4426_v38, %v8642_v41  ;;  %v4517_v34 = vadd.f32 %v4341_v25, %v8643_v58  ;;  %4640 = vmatpush1.bf16.msra.mxu0 %v4613_v14  ;;  %v4558_v57 = vmax.f32 %v4494_v17, 0.0  ;;  %v8646_v15 = vmax.f32 %v7790_v33, 0.0  ;;  %v4437_v21 = vpop.f32.mrb[87].mxu1  ;;  %v8653_v41 = vld [vmem:[#allocation16_spill] sm:$0xff] }
 0x53f   : > { %v4499_v47 = vadd.f32 %v4428_v9, %v8644_v28  ;;  %v4520_v45 = vadd.f32 %v4343_v52, %v8645_v43  ;;  %v4559_v19 = vmax.f32 %v4495_v6, 0.0  ;;  %v4580_v37 = vmax.f32 %v4516_v46, 0.0 }
 0x540   : > { %v4562_v59 = vmax.f32 %v4498_v23, 0.0  ;;  %v4521_v27 = vadd.f32 %v4345_v10, %v8646_v15  ;;  %v4432_v3 = vadd.f32 %v4431_v4, %v8057_v5  ;;  %v4581_v61 = vmax.f32 %v4517_v34, 0.0  ;;  %v8655_v34 = vld [vmem:[#allocation17_spill] sm:$0xff] }
 0x541   : > { %v4563_v40 = vmax.f32 %v4499_v47, 0.0  ;;  %v4584_v22 = vmax.f32 %v4520_v45, 0.0  ;;  %v4434_v16 = vadd.f32 %v4433_v42, %v8057_v5  ;;  %v8647_v53 = vmax.f32 %v7825_v7, 0.0  ;;  %v4588_v7 = vld [vmem:[%s8240_s6] sm:$0x1] }
 0x542   : > { %v4607_v32 = vpack.c.bf16 %v4562_v59, %v4558_v57  ;;  %v4585_v8 = vmax.f32 %v4521_v27, 0.0  ;;  %v4436_v36 = vadd.f32 %v4435_v0, %v8053_v54  ;;  %v8648_v1 = vmax.f32 %v7816_v18, 0.0 }
 0x543   : > { %v4608_v49 = vpack.c.bf16 %v4563_v40, %v4559_v19  ;;  %v4617_v31 = vpack.c.bf16 %v4584_v22, %v4580_v37  ;;  %v4502_v33 = vadd.f32 %v4432_v3, %v8647_v53  ;;  %v4438_v44 = vadd.f32 %v4437_v21, %v8053_v54  ;;  %v4441_v12 = vpop.f32.mrb[88].mxu1  ;;  %v8657_v19 = vld [vmem:[#allocation19_spill] sm:$0xff] }
 0x544   : > { %v4618_v55 = vpack.c.bf16 %v4585_v8, %v4581_v61  ;;  %v4503_v20 = vadd.f32 %v4434_v16, %v8648_v1  ;;  %v8649_v14 = vmax.f32 %v7829_v62, 0.0  ;;  %v8650_v5 = vmax.f32 %v7836_v30, 0.0  ;;  %v4443_v62 = vpop.f32.mrb[89].mxu1  ;;  %v8661_v8 = vld [vmem:[#allocation20_spill] sm:$0xff] }
 0x545   : > { %4676 = vmatprep.subr.bf16.mxu1 %v4608_v49  ;;  %v4566_v11 = vmax.f32 %v4502_v33, 0.0  ;;  %v4442_v25 = vadd.f32 %v4441_v12, %v8085_v63  ;;  %v4444_v39 = vadd.f32 %v4443_v62, %v8085_v63  ;;  %v4445_v51 = vpop.f32.mrb[90].mxu1  ;;  %v8651_v48 = vmax.f32 %v7861_v26, 0.0  ;;  %v8663_v49 = vld [vmem:[#allocation21_spill] sm:$0xff] }
 0x546   : > { %v4506_v29 = vadd.f32 %v4436_v36, %v8649_v14  ;;  %4677 = vmatpush1.bf16.msra.mxu1 %v4607_v32  ;;  %4641 = vmatprep.subr.bf16.mxu0 %v4618_v55  ;;  %v4507_v56 = vadd.f32 %v4438_v44, %v8650_v5  ;;  %v4567_v18 = vmax.f32 %v4503_v20, 0.0  ;;  %v4446_v9 = vadd.f32 %v4445_v51, %v8081_v60  ;;  %v4447_v35 = vpop.f32.mrb[91].mxu1  ;;  %v8659_v32 = vld [vmem:[#allocation18_spill] sm:$0xff]  ;;  %v4625_v20 = vpop.permute.xlu1 %4624 }
 0x547   : > { %4642 = vmatpush1.bf16.msra.mxu0 %v4617_v31  ;;  %v4510_v6 = vadd.f32 %v4442_v25, %v8651_v48  ;;  %v8652_v46 = vmax.f32 %v7856_v24, 0.0  ;;  %v4448_v13 = vadd.f32 %v4447_v35, %v8081_v60  ;;  %v8654_v23 = vmax.f32 %v8653_v41, 0.0 }
 0x548   : > { %v4570_v17 = vmax.f32 %v4506_v29, 0.0  ;;  %v4571_v38 = vmax.f32 %v4507_v56, 0.0  ;;  %v8656_v63 = vmax.f32 %v8655_v34, 0.0  ;;  %v8658_v40 = vmax.f32 %v8657_v19, 0.0  ;;  %v8665_v56 = vld [vmem:[#allocation6_spill] sm:$0xff]  ;;  %v8667_v34 = vld [vmem:[#allocation8_spill] sm:$0xff] }
 0x549   : > { %v4511_v52 = vadd.f32 %v4444_v39, %v8652_v46  ;;  %v4514_v58 = vadd.f32 %v4446_v9, %v8654_v23  ;;  %v4574_v28 = vmax.f32 %v4510_v6, 0.0  ;;  %v8660_v3 = vmax.f32 %v8659_v32, 0.0 }
 0x54a   : > { %v4611_v54 = vpack.c.bf16 %v4570_v17, %v4566_v11  ;;  %4660 = vmatmul.mubr.bf16.vlgmr.msra.gmra.mrb[96].mxu0 %v4588_v7  ;;  %v4612_v30 = vpack.c.bf16 %v4571_v38, %v4567_v18  ;;  %v4515_v10 = vadd.f32 %v4448_v13, %v8656_v63  ;;  %v8662_v16 = vmax.f32 %v8661_v8, 0.0  ;;  %v8666_v18 = vld [vmem:[#allocation7_spill] sm:$0xff] }
 0x54b   : > { %v4578_v47 = vmax.f32 %v4514_v58, 0.0  ;;  %v4575_v26 = vmax.f32 %v4511_v52, 0.0  ;;  %v4451_v45 = vpop.f32.mrb[92].mxu1  ;;  %v5271_v13 = vmov 1983009808  }
 0x54c   : > { %4678 = vmatprep.subr.bf16.mxu1 %v4612_v30  ;;  %v4579_v43 = vmax.f32 %v4515_v10, 0.0  ;;  %v4452_v59 = vadd.f32 %v4451_v45, %v8113_v2  ;;  %v4453_v24 = vpop.f32.mrb[93].mxu1  ;;  %v4756_v41 = vunpack.c.l.s4 %v5271_v13 }
 0x54d   : > { %4679 = vmatpush1.bf16.msra.mxu1 %v4611_v54  ;;  %v4615_v57 = vpack.c.bf16 %v4578_v47, %v4574_v28  ;;  %v4454_v15 = vadd.f32 %v4453_v24, %v8113_v2  ;;  %v4455_v60 = vpop.f32.mrb[94].mxu1  ;;  %v8664_v2 = vmax.f32 %v8663_v49, 0.0  ;;  %v8668_v28 = vld [vmem:[#allocation9_spill] sm:$0xff] }
 0x54e   : > { %v4616_v27 = vpack.c.bf16 %v4579_v43, %v4575_v26  ;;  %v4518_v4 = vadd.f32 %v4452_v59, %v8658_v40  ;;  %v4456_v37 = vadd.f32 %v4455_v60, %v8109_v50  ;;  %v4457_v22 = vpop.f32.mrb[95].mxu1  ;;  %v4757_v43 = vunpack.c.0.s8 %v4756_v41  ;;  %v8669_v60 = vld [vmem:[#allocation5_spill] sm:$0xff] }
 0x54f   : > { %v4519_v42 = vadd.f32 %v4454_v15, %v8660_v3  ;;  %v4458_v61 = vadd.f32 %v4457_v22, %v8109_v50 }
 0x550   : > { %4680 = vmatprep.subr.bf16.mxu1 %v4616_v27  ;;  %v4522_v0 = vadd.f32 %v4456_v37, %v8662_v16  ;;  %v4582_v53 = vmax.f32 %v4518_v4, 0.0  ;;  %v4760_v27 = vsub.s32 %v4757_v43, %v8669_v60 }
 0x551   : > { %4681 = vmatpush1.bf16.msra.mxu1 %v4615_v57  ;;  %v4523_v31 = vadd.f32 %v4458_v61, %v8664_v2  ;;  %v4583_v36 = vmax.f32 %v4519_v42, 0.0 }
 0x552   : > { %v4586_v33 = vmax.f32 %v4522_v0, 0.0 }
 0x553   : > { %v4587_v21 = vmax.f32 %v4523_v31, 0.0 }
 0x554   : > { %v4619_v55 = vpack.c.bf16 %v4586_v33, %v4582_v53 }
 0x555   : > { %v4620_v1 = vpack.c.bf16 %v4587_v21, %v4583_v36 }
 0x557   : > { %4682 = vmatprep.subr.bf16.mxu1 %v4620_v1 }
 0x558   : > { %4683 = vmatpush1.bf16.msra.mxu1 %v4619_v55 }
 0x55b   : > { %4701 = vmatmul.mubr.bf16.vlgmr.msra.gmra.mrb[96].mxu1 %v4588_v7 }
 0x61d   : > { %v4661_v44 = vpop.f32.mrb[96].mxu0 }
 0x61e   : > { %v4662_v50 = vadd.f32 %v4661_v44, %v4625_v20  ;;  %v4663_v14 = vpop.f32.mrb[97].mxu0 }
 0x61f   : > { %v4664_v29 = vadd.f32 %v4663_v14, %v4625_v20  ;;  %v4665_v5 = vpop.f32.mrb[98].mxu0 }
 0x620   : > { %v4709_v11 = vmul.f32 %v4662_v50, %v8665_v56  ;;  %v4666_v17 = vpop.f32.mrb[99].mxu0 }
 0x621   : > { %v4710_v38 = vmul.f32 %v4664_v29, %v8666_v18 }
 0x622   : > { %v4717_v12 = vrot.slane %v4709_v11, 1 }
 0x623   : > { %v4718_v54 = vrot.slane %v4710_v38, 1 }
 0x624   : > { %v4729_v25 = vadd.f32 %v4717_v12, %v4662_v50  ;;  %v4725_v39 = vsub.f32 %v4662_v50, %v4717_v12 }
 0x625   : > { %v4730_v62 = vadd.f32 %v4718_v54, %v4664_v29  ;;  %v4726_v30 = vsub.f32 %v4664_v29, %v4718_v54 }
 0x626   : > { %v4737_v51 = vrot.slane %v4729_v25, 7 }
 0x627   : > { %v4738_v7 = vrot.slane %v4730_v62, 7 }
 0x628   : > { %v4745_v48 = vsel %vm3189_vm8, %v4725_v39, %v4737_v51 }
 0x629   : > { %v4746_v6 = vsel %vm3189_vm8, %v4726_v30, %v4738_v7 }
 0x62a   : > { %v4753_v9 = vcombine.low %v4745_v48, %v4746_v6 }
 0x62c   : > { %v4761_v32 = vrot.slane %v4753_v9, %v4760_v27 }
 0x62e   : > { %v4702_v35 = vpop.f32.mrb[96].mxu1 }
 0x62f   : > { %v4703_v46 = vadd.f32 %v4702_v35, %v4625_v20  ;;  %v4704_v52 = vpop.f32.mrb[97].mxu1 }
 0x630   : > { %v4705_v23 = vadd.f32 %v4704_v52, %v4625_v20  ;;  %v4706_v58 = vpop.f32.mrb[98].mxu1 }
 0x631   : > { %v4711_v63 = vmul.f32 %v4703_v46, %v8667_v34  ;;  %v4707_v10 = vpop.f32.mrb[99].mxu1 }
 0x632   : > { %v4712_v47 = vmul.f32 %v4705_v23, %v8668_v28 }
 0x633   : > { %v4719_v26 = vrot.slane %v4711_v63, 1 }
 0x634   : > { %v4720_v45 = vrot.slane %v4712_v47, 1 }
 0x635   : > { %v4731_v57 = vadd.f32 %v4719_v26, %v4703_v46  ;;  %v4727_v24 = vsub.f32 %v4703_v46, %v4719_v26 }
 0x636   : > { %v4732_v59 = vadd.f32 %v4720_v45, %v4705_v23  ;;  %v4728_v19 = vsub.f32 %v4705_v23, %v4720_v45 }
 0x637   : > { %v4739_v15 = vrot.slane %v4731_v57, 7 }
 0x638   : > { %v4740_v40 = vrot.slane %v4732_v59, 7 }
 0x639   : > { %v4747_v4 = vsel %vm3189_vm8, %v4727_v24, %v4739_v15 }
 0x63a   : > { %v4748_v37 = vsel %vm3189_vm8, %v4728_v19, %v4740_v40 }
 0x63b   : > { %v4754_v22 = vcombine.low %v4747_v4, %v4748_v37 }
 0x63d   : > { %v4768_v3 = vrot.slane %v4754_v22, %v4760_v27 }
 0x63f   : > { %v4769_v42 = vcombine.low %v4761_v32, %v4768_v3 }
 0x641   : > { %4771 = vst [vmem:[%s299_s23] sm:$0xff] %v4769_v42 }
 0x642   : > { %5212 = shalt.err (!%p5209_p3)
}
 0x643   : > { %s5213_s19 = scalar_lea.hbm %s8192_s26, 128  ;;  %s5217_s22 = scalar_lea.hbm %s8242_s8, 256 }
 0x644   : > { %p5214_p4 = scmp.ne.s32.totalorder %s8192_s26, %s5213_s19  ;;  %p5218_p9 = scmp.lt.u32.totalorder %s8192_s26, %s8242_s8 }
 0x645   : > { %p5219_p10 = scmp.lt.u32.totalorder %s5217_s22, %s5213_s19  ;;  %p5221_p12 = scmp.lt.u32.totalorder %s5213_s19, %s8192_s26 }
 0x646   : > { %p5215_p7 = pnand %p5214_p4, %p5356_p5 }
 0x647   : > { %p5220_p11 = por %p5219_p10, %p5218_p9 }
 0x648   : > { %p5216_p8 = pneg %p5215_p7 }
 0x649   : > { %p5222_p13 = por %p5221_p12, %p5220_p11 }
 0x64b   : > { %p5223_p0 = pnand %p5222_p13, %p5216_p8 }
 0x64d   : > { %5226 = shalt.err (!%p5223_p0)
}
 0x64e   : > { %5075 = dma.vmem_to_hbm [thread:$0]  (%p5356_p5), %s8194_s24, 128, %s8192_s26, %s4773_s10  }
 0x64f PF: > { %p5081_p1 = scmp.ge.s32.totalorder %s5261_s30, 2  ;;  %s4799_s17 = sand.u32 1, %s5249_s27  }
 0x650   : > { %s4800_s12 = scalar_lea.sflag [#allocation3], %s4799_s17 }
 0x651   : > { %p5078_p2 = pnand %p5081_p1, %p5360_p6 }
 0x653   : > { %5244 = dma.done.wait (!%p5078_p2), %s4800_s12, 128  }
 0x654   : > { %5246 = vsyncadd (!%p5078_p2), %s4800_s12, 4294967168  ;;  %p18_p3 = scmp.ge.s32.totalorder %s5343_s11, 4   ;;  %s8670_s27 = smov %s5253_s28 }
 0x655   : > { %s8671_s28 = smov %s5257_s29  ;;  %s8672_s29 = smov %s5354_s14 }
 0x656   : > { %s8673_s30 = smov %s5343_s11  ;;  %20 = sbr.rel (!%p18_p3) target bundleno = 3 (0x3), region = 89 }
 0x65d   :  { %4805 = vsyncpa [#allocation3], 1 }
 0x65e   :  { %4807 = vsyncpa [#allocation3 + $0x1], 1 }

</bundles_post_ra>
